<compile_context>
chip_gen: v6e
topology: v6e:2x2x1
jax: 0.10.0
libtpu: 0.0.40
codegen_flags: <defaults>
</compile_context>

<pallas_src>
import functools
import random

import jax
import jax.numpy as jnp
from jax import lax
from jax.experimental import pallas as pl
from jax.experimental.pallas import tpu as pltpu

# ---- model config (small, consistent with the module's forward) ----
H = 32              # hidden_size
MAX_LENGTH = 8      # MAX_LENGTH used for encoder_outputs / attention
INPUT_VOCAB = 16    # encoder embedding rows
OUTPUT_VOCAB = 16   # decoder.output_size
SOS_TOKEN = 0

# ---- packed parameter slab layout (lane width 128, rows in multiples of 8) ----
LANES = 128
assert 4 * H == LANES and MAX_LENGTH <= LANES and OUTPUT_VOCAB <= LANES
NEG_BIG = -1e30     # pad value for unused output-logit lanes


def _round8(n):
    return ((n + 7) // 8) * 8


ENC_EMB_OFF   = 0
DEC_EMB_OFF   = ENC_EMB_OFF + _round8(INPUT_VOCAB)
ENC_GRU_W_OFF = DEC_EMB_OFF + _round8(OUTPUT_VOCAB)
DEC_GRU_W_OFF = ENC_GRU_W_OFF + _round8(2 * H)
ATTN_W_OFF    = DEC_GRU_W_OFF + _round8(2 * H)
COMB_W_OFF    = ATTN_W_OFF + _round8(2 * H)
OUT_W_OFF     = COMB_W_OFF + _round8(2 * H)
BIAS_OFF      = OUT_W_OFF + _round8(H)
SLAB_ROWS     = BIAS_OFF + 8
# bias row indices within the bias block
B_ENC_GRU, B_DEC_GRU, B_ATTN, B_COMB, B_OUT = 0, 1, 2, 3, 4


# ------------------------- kernel helpers -------------------------
def _gru_gates(g, h):
    """Apply PyTorch GRU gates to pre-activations.

    g : (1, 4H) = (1, 128) with column blocks [r | z | gi_n | gh_n]
        (r/z blocks already contain bih+bhh; gi_n has bih_n, gh_n has bhh_n).
    """
    sg = jax.nn.sigmoid(g)                     # one EUP pass over the full vreg
    r = sg[:, 0:H]
    z = sg[:, H:2 * H]
    # TODO(synk): pltpu.roll-based lane alignment of gh_n under r (XLU slot)
    # would shave a few VALU lane-selects per step; kept simple slices here.
    n = jnp.tanh(g[:, 2 * H:3 * H] + r * g[:, 3 * H:4 * H])
    return (1.0 - z) * n + z * h


# ------------------------------ kernel ------------------------------
def seq2seq_kernel(
    use_teacher_force,                       # static python bool (functools.partial)
    # scalar-prefetch refs (SMEM):
    in_tok_ref, tgt_tok_ref,
    # packed parameter slab (VMEM):
    slab_ref,                                # (SLAB_ROWS, LANES) float32
    # output (lane-dense):
    dec_out_ref,                             # (target_length, LANES)
):
    input_length = in_tok_ref.shape[0]
    target_length = tgt_tok_ref.shape[0]
    f32 = jnp.float32

    # ============================ encoder ============================
    # Gather ALL input embeddings up front (off the recurrence critical path).
    emb_rows = [slab_ref[pl.ds(ENC_EMB_OFF + in_tok_ref[i], 1), :]
                for i in range(input_length)]
    enc_emb = jnp.concatenate(emb_rows, axis=0)[:, 0:H]                       # (T_in, H)

    # Batch the input->hidden contribution into one matmul (incl. fused bias).
    enc_w_x = slab_ref[ENC_GRU_W_OFF:ENC_GRU_W_OFF + H, :]                    # (H, 4H)
    enc_w_h = slab_ref[ENC_GRU_W_OFF + H:ENC_GRU_W_OFF + 2 * H, :]            # (H, 4H)
    enc_b   = slab_ref[BIAS_OFF + B_ENC_GRU:BIAS_OFF + B_ENC_GRU + 1, :]      # (1, 4H)
    gi_all = jnp.dot(enc_emb, enc_w_x, preferred_element_type=f32) + enc_b    # (T_in, 4H)

    # TODO(synk): hold enc_w_h / dec_w_h resident in the MXU with
    # pltpu.matmul_push_rhs / matmul_acc_lhs / matmul_pop to avoid re-streaming
    # the recurrent weight on every serial step; kept jnp.dot for robustness.
    h = jnp.zeros((1, H), f32)
    enc_rows = []
    for i in range(input_length):
        g = gi_all[i:i + 1, :] + jnp.dot(h, enc_w_h, preferred_element_type=f32)
        h = _gru_gates(g, h)
        enc_rows.append(h)
    for _ in range(MAX_LENGTH - input_length):                                # unfilled rows = 0
        enc_rows.append(jnp.zeros((1, H), f32))
    enc_outs = jnp.concatenate(enc_rows, axis=0)                              # (MAX_LENGTH, H)

    # ==================== decoder weights (hoisted) ====================
    dec_w_x = slab_ref[DEC_GRU_W_OFF:DEC_GRU_W_OFF + H, :]                    # (H, 4H)
    dec_w_h = slab_ref[DEC_GRU_W_OFF + H:DEC_GRU_W_OFF + 2 * H, :]            # (H, 4H)
    dec_b   = slab_ref[BIAS_OFF + B_DEC_GRU:BIAS_OFF + B_DEC_GRU + 1, :]      # (1, 4H)
    attn_we = slab_ref[ATTN_W_OFF:ATTN_W_OFF + H, :][:, 0:MAX_LENGTH]         # (H, L)
    attn_wh = slab_ref[ATTN_W_OFF + H:ATTN_W_OFF + 2 * H, :][:, 0:MAX_LENGTH] # (H, L)
    attn_b  = slab_ref[BIAS_OFF + B_ATTN:BIAS_OFF + B_ATTN + 1, :][:, 0:MAX_LENGTH]
    comb_we = slab_ref[COMB_W_OFF:COMB_W_OFF + H, :][:, 0:H]                  # (H, H)
    comb_wa = slab_ref[COMB_W_OFF + H:COMB_W_OFF + 2 * H, :][:, 0:H]          # (H, H)
    comb_b  = slab_ref[BIAS_OFF + B_COMB:BIAS_OFF + B_COMB + 1, :][:, 0:H]
    out_w   = slab_ref[OUT_W_OFF:OUT_W_OFF + H, :]                            # (H, 128) lane-dense
    out_b   = slab_ref[BIAS_OFF + B_OUT:BIAS_OFF + B_OUT + 1, :]              # (1, 128), pad lanes = -1e30

    # TODO(synk): bf16 MXU inputs (weights packed bf16, f32 accumulate) would
    # cut MXU pushes on the serial chain but risks the 1e-3 recurrence
    # tolerance; kept f32 end-to-end.

    # Precompute per-step "embedded" contributions off the serial chain.
    if use_teacher_force:
        # Decoder inputs are known: [SOS, tgt[0], ..., tgt[T-2]].
        din_rows = [slab_ref[DEC_EMB_OFF + SOS_TOKEN:DEC_EMB_OFF + SOS_TOKEN + 1, :]]
        for t in range(1, target_length):
            din_rows.append(slab_ref[pl.ds(DEC_EMB_OFF + tgt_tok_ref[t - 1], 1), :])
        dec_emb = jnp.concatenate(din_rows, axis=0)[:, 0:H]                   # (T, H)
        pre_attn = jnp.dot(dec_emb, attn_we, preferred_element_type=f32)      # (T, L)
        pre_comb = jnp.dot(dec_emb, comb_we, preferred_element_type=f32)      # (T, H)
    else:
        # Greedy feedback: fold embedding table through attn / attn_combine
        # "embedded" halves once, so each step needs only one-hot dots.
        dec_emb_tbl = slab_ref[DEC_EMB_OFF:DEC_EMB_OFF + OUTPUT_VOCAB, :][:, 0:H]   # (V, H)
        attn_tbl = jnp.dot(dec_emb_tbl, attn_we, preferred_element_type=f32)  # (V, L)
        comb_tbl = jnp.dot(dec_emb_tbl, comb_we, preferred_element_type=f32)  # (V, H)

    # ============================ decoder loop ============================
    prev_vec = None                  # (1,1) int32 greedy-feedback token (t>0)
    rows = []
    for t in range(target_length):
        # ---- "embedded" contributions for this step (dropout = eval identity) ----
        if use_teacher_force:
            pre_attn_t = pre_attn[t:t + 1, :]
            pre_comb_t = pre_comb[t:t + 1, :]
        elif t == 0:
            pre_attn_t = attn_tbl[SOS_TOKEN:SOS_TOKEN + 1, :]
            pre_comb_t = comb_tbl[SOS_TOKEN:SOS_TOKEN + 1, :]
        else:
            iota = lax.broadcasted_iota(jnp.int32, (1, OUTPUT_VOCAB), 1)
            onehot = (iota == prev_vec).astype(f32)                           # (1, V)
            pre_attn_t = jnp.dot(onehot, attn_tbl, preferred_element_type=f32)
            pre_comb_t = jnp.dot(onehot, comb_tbl, preferred_element_type=f32)

        # attn_weights = softmax(Linear(cat(embedded, hidden)))
        attn_logits = (pre_attn_t
                       + jnp.dot(h, attn_wh, preferred_element_type=f32)
                       + attn_b)                                              # (1, L)
        amax = jnp.max(attn_logits, axis=1, keepdims=True)
        aexp = jnp.exp(attn_logits - amax)
        attn_weights = aexp * pl.reciprocal(jnp.sum(aexp, axis=1, keepdims=True),
                                            approx=True)

        # attn_applied = bmm(attn_weights, encoder_outputs)
        attn_applied = jnp.dot(attn_weights, enc_outs,
                               preferred_element_type=f32)                    # (1, H)

        # relu(attn_combine(cat(embedded, attn_applied)))
        x = jnp.maximum(pre_comb_t
                        + jnp.dot(attn_applied, comb_wa, preferred_element_type=f32)
                        + comb_b, 0.0)                                        # (1, H)

        # decoder GRU (x-part and h-part dots, no lane concat)
        g = (jnp.dot(x, dec_w_x, preferred_element_type=f32)
             + jnp.dot(h, dec_w_h, preferred_element_type=f32)
             + dec_b)                                                         # (1, 4H)
        h = _gru_gates(g, h)

        # output projection + log_softmax over the full 128 lanes
        # (padded lanes carry -1e30 bias -> contribute exp(..)=0, max unaffected)
        logits = jnp.dot(h, out_w, preferred_element_type=f32) + out_b        # (1, 128)
        m = jnp.max(logits, axis=1, keepdims=True)
        lse = m + jnp.log(jnp.sum(jnp.exp(logits - m), axis=1, keepdims=True))
        log_probs = logits - lse
        rows.append(log_probs)

        # next decoder input (greedy path only; teacher-forced inputs are precomputed)
        if not use_teacher_force:
            # topk(1): lowest index achieving the max (greedy decoding)
            vmax = jnp.max(log_probs, axis=1, keepdims=True)
            idx = lax.broadcasted_iota(jnp.int32, log_probs.shape, 1)
            prev_vec = jnp.min(jnp.where(log_probs == vmax, idx, LANES),
                               axis=1, keepdims=True)                         # (1,1) int32

    # single lane-dense (T,128) store of all decoder log-prob rows
    dec_out_ref[...] = jnp.concatenate(rows, axis=0)


# --------------------- host-side parameter packing ---------------------
def _fuse_gru(wih_t, whh_t, bih, bhh):
    """Build the fused (2H,4H) GRU weight / (1,4H) bias. Gate order r, z, n.

    Row block 0:H  = x-part  [Wih_r | Wih_z | Wih_n | 0    ]
    Row block H:2H = h-part  [Whh_r | Whh_z | 0     | Whh_n]
    """
    zeros = jnp.zeros((H, H), jnp.float32)
    w = jnp.concatenate([
        jnp.concatenate([wih_t[:, 0:H],         whh_t[:, 0:H]],         axis=0),  # r
        jnp.concatenate([wih_t[:, H:2 * H],     whh_t[:, H:2 * H]],     axis=0),  # z
        jnp.concatenate([wih_t[:, 2 * H:3 * H], zeros],                 axis=0),  # gi_n
        jnp.concatenate([zeros,                 whh_t[:, 2 * H:3 * H]], axis=0),  # gh_n
    ], axis=1)
    b = jnp.concatenate([
        bih[:, 0:H] + bhh[:, 0:H],
        bih[:, H:2 * H] + bhh[:, H:2 * H],
        bih[:, 2 * H:3 * H],
        bhh[:, 2 * H:3 * H],
    ], axis=1)
    return w, b


def pack_params(p):
    enc_w, enc_b = _fuse_gru(p["enc_wih_t"], p["enc_whh_t"], p["enc_bih"], p["enc_bhh"])
    dec_w, dec_b = _fuse_gru(p["dec_wih_t"], p["dec_whh_t"], p["dec_bih"], p["dec_bhh"])
    attn_w = jnp.concatenate([p["attn_we"], p["attn_wh"]], axis=0)   # (2H, MAX_LENGTH)
    comb_w = jnp.concatenate([p["comb_we"], p["comb_wa"]], axis=0)   # (2H, H)

    slab = jnp.zeros((SLAB_ROWS, LANES), jnp.float32)

    def put(s, row, a):
        return s.at[row:row + a.shape[0], 0:a.shape[1]].set(a)

    slab = put(slab, ENC_EMB_OFF, p["enc_emb"])
    slab = put(slab, DEC_EMB_OFF, p["dec_emb"])
    slab = put(slab, ENC_GRU_W_OFF, enc_w)
    slab = put(slab, DEC_GRU_W_OFF, dec_w)
    slab = put(slab, ATTN_W_OFF, attn_w)
    slab = put(slab, COMB_W_OFF, comb_w)
    slab = put(slab, OUT_W_OFF, p["out_w"])
    slab = put(slab, BIAS_OFF + B_ENC_GRU, enc_b)
    slab = put(slab, BIAS_OFF + B_DEC_GRU, dec_b)
    slab = put(slab, BIAS_OFF + B_ATTN, p["attn_b"])
    slab = put(slab, BIAS_OFF + B_COMB, p["comb_b"])
    slab = put(slab, BIAS_OFF + B_OUT, p["out_b"])
    # Pad unused output-logit lanes of the out-bias row with a huge negative so
    # the kernel can log_softmax / argmax / store over the full 128 lanes.
    slab = slab.at[BIAS_OFF + B_OUT, OUTPUT_VOCAB:].set(NEG_BIG)
    return slab


# ------------------------------ wrapper ------------------------------
def seq2seq_forward(packed_slab, input_tokens, target_tokens, teacher_forcing_ratio=0.5):
    # random.random() < ratio, evaluated host-side exactly like the PyTorch module
    use_teacher_force = random.random() < teacher_forcing_ratio
    target_length = int(target_tokens.shape[0])

    kernel = functools.partial(seq2seq_kernel, use_teacher_force)

    out_full = pl.pallas_call(
        kernel,
        # lane-dense output (T, 128): single unmasked store, dense HBM writeback
        out_shape=jax.ShapeDtypeStruct((target_length, LANES), jnp.float32),
        grid_spec=pltpu.PrefetchScalarGridSpec(
            num_scalar_prefetch=2,
            grid=(1,),
            in_specs=[pl.BlockSpec((SLAB_ROWS, LANES), lambda i, *_: (0, 0))],
            out_specs=pl.BlockSpec((target_length, LANES), lambda i, *_: (0, 0)),
            scratch_shapes=[],
        ),
        compiler_params=pltpu.CompilerParams(dimension_semantics=("arbitrary",)),
        # TODO(synk): for throughput on v6e/v7x, batch independent sequences as a
        # "parallel" grid axis (fills the 256x256 MXU and v7x's second core);
        # the module itself is single-sequence, so batch=1 is kept here.
    )(input_tokens.astype(jnp.int32), target_tokens.astype(jnp.int32), packed_slab)
    return out_full[:, :OUTPUT_VOCAB]


# ------------------------- pure-JAX reference -------------------------
def reference_forward(params, input_tokens, target_tokens, use_teacher_force):
    def gru(x, h, wih_t, whh_t, bih, bhh):
        gi = x @ wih_t + bih
        gh = h @ whh_t + bhh
        r = jax.nn.sigmoid(gi[:, :H] + gh[:, :H])
        z = jax.nn.sigmoid(gi[:, H:2 * H] + gh[:, H:2 * H])
        n = jnp.tanh(gi[:, 2 * H:] + r * gh[:, 2 * H:])
        return (1.0 - z) * n + z * h

    hidden = jnp.zeros((1, H), jnp.float32)
    enc_outs = jnp.zeros((MAX_LENGTH, H), jnp.float32)
    for i in range(int(input_tokens.shape[0])):
        emb = params["enc_emb"][input_tokens[i]][None, :]
        hidden = gru(emb, hidden, params["enc_wih_t"], params["enc_whh_t"],
                     params["enc_bih"], params["enc_bhh"])
        enc_outs = enc_outs.at[i].set(hidden[0])

    outs = []
    tok = jnp.int32(SOS_TOKEN)
    for t in range(int(target_tokens.shape[0])):
        emb = params["dec_emb"][tok][None, :]
        attn_logits = emb @ params["attn_we"] + hidden @ params["attn_wh"] + params["attn_b"]
        attn_w = jax.nn.softmax(attn_logits, axis=1)
        attn_applied = attn_w @ enc_outs
        x = jax.nn.relu(emb @ params["comb_we"] + attn_applied @ params["comb_wa"]
                        + params["comb_b"])
        hidden = gru(x, hidden, params["dec_wih_t"], params["dec_whh_t"],
                     params["dec_bih"], params["dec_bhh"])
        logits = hidden @ params["out_w"] + params["out_b"]
        log_probs = jax.nn.log_softmax(logits, axis=1)
        outs.append(log_probs[0])
        tok = target_tokens[t] if use_teacher_force else jnp.argmax(log_probs[0]).astype(jnp.int32)
    return jnp.stack(outs)


# ------------------------------- main -------------------------------
def make_params(key):
    ks = jax.random.split(key, 18)

    def rnd(k, shape):
        return (jax.random.normal(k, shape, jnp.float32) * 0.1).astype(jnp.float32)

    return {
        "enc_emb":   rnd(ks[0], (INPUT_VOCAB, H)),
        "enc_wih_t": rnd(ks[1], (H, 3 * H)),
        "enc_whh_t": rnd(ks[2], (H, 3 * H)),
        "enc_bih":   rnd(ks[3], (1, 3 * H)),
        "enc_bhh":   rnd(ks[4], (1, 3 * H)),
        "dec_emb":   rnd(ks[5], (OUTPUT_VOCAB, H)),
        "attn_we":   rnd(ks[6], (H, MAX_LENGTH)),   # Linear(2H, MAX_LENGTH) split: embedded half
        "attn_wh":   rnd(ks[7], (H, MAX_LENGTH)),   #                               hidden half
        "attn_b":    rnd(ks[8], (1, MAX_LENGTH)),
        "comb_we":   rnd(ks[9], (H, H)),            # Linear(2H, H) split: embedded half
        "comb_wa":   rnd(ks[10], (H, H)),           #                      attn_applied half
        "comb_b":    rnd(ks[11], (1, H)),
        "dec_wih_t": rnd(ks[12], (H, 3 * H)),
        "dec_whh_t": rnd(ks[13], (H, 3 * H)),
        "dec_bih":   rnd(ks[14], (1, 3 * H)),
        "dec_bhh":   rnd(ks[15], (1, 3 * H)),
        "out_w":     rnd(ks[16], (H, OUTPUT_VOCAB)),
        "out_b":     rnd(ks[17], (1, OUTPUT_VOCAB)),
    }


if __name__ == "__main__":
    random.seed(0)
    key = jax.random.PRNGKey(0)
    pkey, ikey, tkey = jax.random.split(key, 3)
    params = make_params(pkey)
    slab = pack_params(params)

    input_length, target_length = MAX_LENGTH, MAX_LENGTH
    input_tokens = jax.random.randint(ikey, (input_length,), 0, INPUT_VOCAB, jnp.int32)
    target_tokens = jax.random.randint(tkey, (target_length,), 0, OUTPUT_VOCAB, jnp.int32)

    # Run 1: teacher forcing (ratio=1.0 -> deterministic), check vs pure-JAX reference.
    out_tf = seq2seq_forward(slab, input_tokens, target_tokens, teacher_forcing_ratio=1.0)
    out_tf = jax.block_until_ready(out_tf)
    ref_tf = reference_forward(params, input_tokens, target_tokens, use_teacher_force=True)
    assert out_tf.shape == (target_length, OUTPUT_VOCAB)
    assert jnp.allclose(out_tf, ref_tf, atol=1e-3, rtol=1e-3)

    # Run 2: greedy feedback path (ratio=0.0 -> no teacher forcing).
    out_greedy = seq2seq_forward(slab, input_tokens, target_tokens, teacher_forcing_ratio=0.0)
    out_greedy = jax.block_until_ready(out_greedy)
    assert out_greedy.shape == (target_length, OUTPUT_VOCAB)
    assert bool(jnp.all(jnp.isfinite(out_greedy)))
    # log-softmax rows must sum to 1 in prob space
    assert jnp.allclose(jnp.sum(jnp.exp(out_greedy), axis=1), 1.0, atol=1e-3)

    print("KERNEL_OK")
</pallas_src>

<mosaic_0001>
module attributes {stable_mosaic.version = 11 : i64} {
  func.func @seq2seq_kernel(%arg0: i32, %arg1: memref<8xi32, #tpu.memory_space<smem>>, %arg2: memref<8xi32, #tpu.memory_space<smem>>, %arg3: memref<328x128xf32, #tpu.memory_space<vmem>>, %arg4: memref<8x128xf32, #tpu.memory_space<vmem>>) attributes {dimension_semantics = [#tpu.dimension_semantics<arbitrary>], iteration_bounds = array<i64: 1>, scalar_prefetch = 2 : i64, scratch_operands = 0 : i64, tpu.core_type = #tpu.core_type<tc>, window_params = [{pipeline_mode = #tpu.pipeline_mode<synchronous>, transform_indices = @transform_0, window_bounds = array<i64: 328, 128>}, {pipeline_mode = #tpu.pipeline_mode<synchronous>, transform_indices = @transform_1, window_bounds = array<i64: 8, 128>}]} {
    %c0 = arith.constant 0 : index
    %0 = memref.load %arg1[%c0] : memref<8xi32, #tpu.memory_space<smem>>
    %c0_i32 = arith.constant 0 : i32
    %1 = arith.addi %c0_i32, %0 : i32
    %2 = arith.index_cast %1 : i32 to index
    %c0_0 = arith.constant 0 : index
    %3 = vector.load %arg3[%2, %c0_0] : memref<328x128xf32, #tpu.memory_space<vmem>>, vector<1x128xf32>
    %c1 = arith.constant 1 : index
    %4 = memref.load %arg1[%c1] : memref<8xi32, #tpu.memory_space<smem>>
    %c0_i32_1 = arith.constant 0 : i32
    %5 = arith.addi %c0_i32_1, %4 : i32
    %6 = arith.index_cast %5 : i32 to index
    %c0_2 = arith.constant 0 : index
    %7 = vector.load %arg3[%6, %c0_2] : memref<328x128xf32, #tpu.memory_space<vmem>>, vector<1x128xf32>
    %c2 = arith.constant 2 : index
    %8 = memref.load %arg1[%c2] : memref<8xi32, #tpu.memory_space<smem>>
    %c0_i32_3 = arith.constant 0 : i32
    %9 = arith.addi %c0_i32_3, %8 : i32
    %10 = arith.index_cast %9 : i32 to index
    %c0_4 = arith.constant 0 : index
    %11 = vector.load %arg3[%10, %c0_4] : memref<328x128xf32, #tpu.memory_space<vmem>>, vector<1x128xf32>
    %c3 = arith.constant 3 : index
    %12 = memref.load %arg1[%c3] : memref<8xi32, #tpu.memory_space<smem>>
    %c0_i32_5 = arith.constant 0 : i32
    %13 = arith.addi %c0_i32_5, %12 : i32
    %14 = arith.index_cast %13 : i32 to index
    %c0_6 = arith.constant 0 : index
    %15 = vector.load %arg3[%14, %c0_6] : memref<328x128xf32, #tpu.memory_space<vmem>>, vector<1x128xf32>
    %c4 = arith.constant 4 : index
    %16 = memref.load %arg1[%c4] : memref<8xi32, #tpu.memory_space<smem>>
    %c0_i32_7 = arith.constant 0 : i32
    %17 = arith.addi %c0_i32_7, %16 : i32
    %18 = arith.index_cast %17 : i32 to index
    %c0_8 = arith.constant 0 : index
    %19 = vector.load %arg3[%18, %c0_8] : memref<328x128xf32, #tpu.memory_space<vmem>>, vector<1x128xf32>
    %c5 = arith.constant 5 : index
    %20 = memref.load %arg1[%c5] : memref<8xi32, #tpu.memory_space<smem>>
    %c0_i32_9 = arith.constant 0 : i32
    %21 = arith.addi %c0_i32_9, %20 : i32
    %22 = arith.index_cast %21 : i32 to index
    %c0_10 = arith.constant 0 : index
    %23 = vector.load %arg3[%22, %c0_10] : memref<328x128xf32, #tpu.memory_space<vmem>>, vector<1x128xf32>
    %c6 = arith.constant 6 : index
    %24 = memref.load %arg1[%c6] : memref<8xi32, #tpu.memory_space<smem>>
    %c0_i32_11 = arith.constant 0 : i32
    %25 = arith.addi %c0_i32_11, %24 : i32
    %26 = arith.index_cast %25 : i32 to index
    %c0_12 = arith.constant 0 : index
    %27 = vector.load %arg3[%26, %c0_12] : memref<328x128xf32, #tpu.memory_space<vmem>>, vector<1x128xf32>
    %c7 = arith.constant 7 : index
    %28 = memref.load %arg1[%c7] : memref<8xi32, #tpu.memory_space<smem>>
    %c0_i32_13 = arith.constant 0 : i32
    %29 = arith.addi %c0_i32_13, %28 : i32
    %30 = arith.index_cast %29 : i32 to index
    %c0_14 = arith.constant 0 : index
    %31 = vector.load %arg3[%30, %c0_14] : memref<328x128xf32, #tpu.memory_space<vmem>>, vector<1x128xf32>
    %32 = tpu.concatenate %3, %7, %11, %15, %19, %23, %27, %31 in 0 : vector<1x128xf32>, vector<1x128xf32>, vector<1x128xf32>, vector<1x128xf32>, vector<1x128xf32>, vector<1x128xf32>, vector<1x128xf32>, vector<1x128xf32> -> vector<8x128xf32>
    %33 = vector.extract_strided_slice %32 {offsets = [0, 0], sizes = [8, 32], strides = [1, 1]} : vector<8x128xf32> to vector<8x32xf32>
    %c32 = arith.constant 32 : index
    %c0_15 = arith.constant 0 : index
    %34 = vector.load %arg3[%c32, %c0_15] : memref<328x128xf32, #tpu.memory_space<vmem>>, vector<32x128xf32>
    %c64 = arith.constant 64 : index
    %c0_16 = arith.constant 0 : index
    %35 = vector.load %arg3[%c64, %c0_16] : memref<328x128xf32, #tpu.memory_space<vmem>>, vector<32x128xf32>
    %c320 = arith.constant 320 : index
    %c0_17 = arith.constant 0 : index
    %36 = vector.load %arg3[%c320, %c0_17] : memref<328x128xf32, #tpu.memory_space<vmem>>, vector<1x128xf32>
    %cst = arith.constant dense<0.000000e+00> : vector<8x128xf32>
    %37 = tpu.matmul %33, %34, %cst {dimension_numbers = #tpu.dot_dimension_numbers<[1], [0], [0], [1], [0, 0, 1, 1], [], []>} : vector<8x32xf32>, vector<32x128xf32>, vector<8x128xf32> -> vector<8x128xf32>
    %38 = vector.broadcast %36 : vector<1x128xf32> to vector<8x128xf32>
    %39 = arith.addf %37, %38 : vector<8x128xf32>
    %cst_18 = arith.constant 0.000000e+00 : f32
    %40 = vector.broadcast %cst_18 : f32 to vector<1x32xf32>
    %41 = vector.extract_strided_slice %39 {offsets = [0, 0], sizes = [1, 128], strides = [1, 1]} : vector<8x128xf32> to vector<1x128xf32>
    %cst_19 = arith.constant dense<0.000000e+00> : vector<1x128xf32>
    %42 = tpu.matmul %40, %35, %cst_19 {dimension_numbers = #tpu.dot_dimension_numbers<[1], [0], [0], [1], [0, 0, 1, 1], [], []>} : vector<1x32xf32>, vector<32x128xf32>, vector<1x128xf32> -> vector<1x128xf32>
    %43 = arith.addf %41, %42 : vector<1x128xf32>
    %44 = arith.negf %43 : vector<1x128xf32>
    %45 = math.exp %44 : vector<1x128xf32>
    %cst_20 = arith.constant 1.000000e+00 : f32
    %46 = vector.broadcast %cst_20 : f32 to vector<1x128xf32>
    %47 = arith.addf %46, %45 : vector<1x128xf32>
    %48 = arith.divf %46, %47 : vector<1x128xf32>
    %49 = vector.extract_strided_slice %48 {offsets = [0, 0], sizes = [1, 32], strides = [1, 1]} : vector<1x128xf32> to vector<1x32xf32>
    %50 = vector.extract_strided_slice %48 {offsets = [0, 32], sizes = [1, 32], strides = [1, 1]} : vector<1x128xf32> to vector<1x32xf32>
    %51 = vector.extract_strided_slice %43 {offsets = [0, 64], sizes = [1, 32], strides = [1, 1]} : vector<1x128xf32> to vector<1x32xf32>
    %52 = vector.extract_strided_slice %43 {offsets = [0, 96], sizes = [1, 32], strides = [1, 1]} : vector<1x128xf32> to vector<1x32xf32>
    %53 = arith.mulf %49, %52 : vector<1x32xf32>
    %54 = arith.addf %51, %53 : vector<1x32xf32>
    %55 = math.tanh %54 : vector<1x32xf32>
    %cst_21 = arith.constant 1.000000e+00 : f32
    %56 = vector.broadcast %cst_21 : f32 to vector<1x32xf32>
    %57 = arith.subf %56, %50 : vector<1x32xf32>
    %58 = arith.mulf %57, %55 : vector<1x32xf32>
    %59 = arith.mulf %50, %40 : vector<1x32xf32>
    %60 = arith.addf %58, %59 : vector<1x32xf32>
    %61 = vector.extract_strided_slice %39 {offsets = [1, 0], sizes = [1, 128], strides = [1, 1]} : vector<8x128xf32> to vector<1x128xf32>
    %cst_22 = arith.constant dense<0.000000e+00> : vector<1x128xf32>
    %62 = tpu.matmul %60, %35, %cst_22 {dimension_numbers = #tpu.dot_dimension_numbers<[1], [0], [0], [1], [0, 0, 1, 1], [], []>} : vector<1x32xf32>, vector<32x128xf32>, vector<1x128xf32> -> vector<1x128xf32>
    %63 = arith.addf %61, %62 : vector<1x128xf32>
    %64 = arith.negf %63 : vector<1x128xf32>
    %65 = math.exp %64 : vector<1x128xf32>
    %cst_23 = arith.constant 1.000000e+00 : f32
    %66 = vector.broadcast %cst_23 : f32 to vector<1x128xf32>
    %67 = arith.addf %66, %65 : vector<1x128xf32>
    %68 = arith.divf %66, %67 : vector<1x128xf32>
    %69 = vector.extract_strided_slice %68 {offsets = [0, 0], sizes = [1, 32], strides = [1, 1]} : vector<1x128xf32> to vector<1x32xf32>
    %70 = vector.extract_strided_slice %68 {offsets = [0, 32], sizes = [1, 32], strides = [1, 1]} : vector<1x128xf32> to vector<1x32xf32>
    %71 = vector.extract_strided_slice %63 {offsets = [0, 64], sizes = [1, 32], strides = [1, 1]} : vector<1x128xf32> to vector<1x32xf32>
    %72 = vector.extract_strided_slice %63 {offsets = [0, 96], sizes = [1, 32], strides = [1, 1]} : vector<1x128xf32> to vector<1x32xf32>
    %73 = arith.mulf %69, %72 : vector<1x32xf32>
    %74 = arith.addf %71, %73 : vector<1x32xf32>
    %75 = math.tanh %74 : vector<1x32xf32>
    %cst_24 = arith.constant 1.000000e+00 : f32
    %76 = vector.broadcast %cst_24 : f32 to vector<1x32xf32>
    %77 = arith.subf %76, %70 : vector<1x32xf32>
    %78 = arith.mulf %77, %75 : vector<1x32xf32>
    %79 = arith.mulf %70, %60 : vector<1x32xf32>
    %80 = arith.addf %78, %79 : vector<1x32xf32>
    %81 = vector.extract_strided_slice %39 {offsets = [2, 0], sizes = [1, 128], strides = [1, 1]} : vector<8x128xf32> to vector<1x128xf32>
    %cst_25 = arith.constant dense<0.000000e+00> : vector<1x128xf32>
    %82 = tpu.matmul %80, %35, %cst_25 {dimension_numbers = #tpu.dot_dimension_numbers<[1], [0], [0], [1], [0, 0, 1, 1], [], []>} : vector<1x32xf32>, vector<32x128xf32>, vector<1x128xf32> -> vector<1x128xf32>
    %83 = arith.addf %81, %82 : vector<1x128xf32>
    %84 = arith.negf %83 : vector<1x128xf32>
    %85 = math.exp %84 : vector<1x128xf32>
    %cst_26 = arith.constant 1.000000e+00 : f32
    %86 = vector.broadcast %cst_26 : f32 to vector<1x128xf32>
    %87 = arith.addf %86, %85 : vector<1x128xf32>
    %88 = arith.divf %86, %87 : vector<1x128xf32>
    %89 = vector.extract_strided_slice %88 {offsets = [0, 0], sizes = [1, 32], strides = [1, 1]} : vector<1x128xf32> to vector<1x32xf32>
    %90 = vector.extract_strided_slice %88 {offsets = [0, 32], sizes = [1, 32], strides = [1, 1]} : vector<1x128xf32> to vector<1x32xf32>
    %91 = vector.extract_strided_slice %83 {offsets = [0, 64], sizes = [1, 32], strides = [1, 1]} : vector<1x128xf32> to vector<1x32xf32>
    %92 = vector.extract_strided_slice %83 {offsets = [0, 96], sizes = [1, 32], strides = [1, 1]} : vector<1x128xf32> to vector<1x32xf32>
    %93 = arith.mulf %89, %92 : vector<1x32xf32>
    %94 = arith.addf %91, %93 : vector<1x32xf32>
    %95 = math.tanh %94 : vector<1x32xf32>
    %cst_27 = arith.constant 1.000000e+00 : f32
    %96 = vector.broadcast %cst_27 : f32 to vector<1x32xf32>
    %97 = arith.subf %96, %90 : vector<1x32xf32>
    %98 = arith.mulf %97, %95 : vector<1x32xf32>
    %99 = arith.mulf %90, %80 : vector<1x32xf32>
    %100 = arith.addf %98, %99 : vector<1x32xf32>
    %101 = vector.extract_strided_slice %39 {offsets = [3, 0], sizes = [1, 128], strides = [1, 1]} : vector<8x128xf32> to vector<1x128xf32>
    %cst_28 = arith.constant dense<0.000000e+00> : vector<1x128xf32>
    %102 = tpu.matmul %100, %35, %cst_28 {dimension_numbers = #tpu.dot_dimension_numbers<[1], [0], [0], [1], [0, 0, 1, 1], [], []>} : vector<1x32xf32>, vector<32x128xf32>, vector<1x128xf32> -> vector<1x128xf32>
    %103 = arith.addf %101, %102 : vector<1x128xf32>
    %104 = arith.negf %103 : vector<1x128xf32>
    %105 = math.exp %104 : vector<1x128xf32>
    %cst_29 = arith.constant 1.000000e+00 : f32
    %106 = vector.broadcast %cst_29 : f32 to vector<1x128xf32>
    %107 = arith.addf %106, %105 : vector<1x128xf32>
    %108 = arith.divf %106, %107 : vector<1x128xf32>
    %109 = vector.extract_strided_slice %108 {offsets = [0, 0], sizes = [1, 32], strides = [1, 1]} : vector<1x128xf32> to vector<1x32xf32>
    %110 = vector.extract_strided_slice %108 {offsets = [0, 32], sizes = [1, 32], strides = [1, 1]} : vector<1x128xf32> to vector<1x32xf32>
    %111 = vector.extract_strided_slice %103 {offsets = [0, 64], sizes = [1, 32], strides = [1, 1]} : vector<1x128xf32> to vector<1x32xf32>
    %112 = vector.extract_strided_slice %103 {offsets = [0, 96], sizes = [1, 32], strides = [1, 1]} : vector<1x128xf32> to vector<1x32xf32>
    %113 = arith.mulf %109, %112 : vector<1x32xf32>
    %114 = arith.addf %111, %113 : vector<1x32xf32>
    %115 = math.tanh %114 : vector<1x32xf32>
    %cst_30 = arith.constant 1.000000e+00 : f32
    %116 = vector.broadcast %cst_30 : f32 to vector<1x32xf32>
    %117 = arith.subf %116, %110 : vector<1x32xf32>
    %118 = arith.mulf %117, %115 : vector<1x32xf32>
    %119 = arith.mulf %110, %100 : vector<1x32xf32>
    %120 = arith.addf %118, %119 : vector<1x32xf32>
    %121 = vector.extract_strided_slice %39 {offsets = [4, 0], sizes = [1, 128], strides = [1, 1]} : vector<8x128xf32> to vector<1x128xf32>
    %cst_31 = arith.constant dense<0.000000e+00> : vector<1x128xf32>
    %122 = tpu.matmul %120, %35, %cst_31 {dimension_numbers = #tpu.dot_dimension_numbers<[1], [0], [0], [1], [0, 0, 1, 1], [], []>} : vector<1x32xf32>, vector<32x128xf32>, vector<1x128xf32> -> vector<1x128xf32>
    %123 = arith.addf %121, %122 : vector<1x128xf32>
    %124 = arith.negf %123 : vector<1x128xf32>
    %125 = math.exp %124 : vector<1x128xf32>
    %cst_32 = arith.constant 1.000000e+00 : f32
    %126 = vector.broadcast %cst_32 : f32 to vector<1x128xf32>
    %127 = arith.addf %126, %125 : vector<1x128xf32>
    %128 = arith.divf %126, %127 : vector<1x128xf32>
    %129 = vector.extract_strided_slice %128 {offsets = [0, 0], sizes = [1, 32], strides = [1, 1]} : vector<1x128xf32> to vector<1x32xf32>
    %130 = vector.extract_strided_slice %128 {offsets = [0, 32], sizes = [1, 32], strides = [1, 1]} : vector<1x128xf32> to vector<1x32xf32>
    %131 = vector.extract_strided_slice %123 {offsets = [0, 64], sizes = [1, 32], strides = [1, 1]} : vector<1x128xf32> to vector<1x32xf32>
    %132 = vector.extract_strided_slice %123 {offsets = [0, 96], sizes = [1, 32], strides = [1, 1]} : vector<1x128xf32> to vector<1x32xf32>
    %133 = arith.mulf %129, %132 : vector<1x32xf32>
    %134 = arith.addf %131, %133 : vector<1x32xf32>
    %135 = math.tanh %134 : vector<1x32xf32>
    %cst_33 = arith.constant 1.000000e+00 : f32
    %136 = vector.broadcast %cst_33 : f32 to vector<1x32xf32>
    %137 = arith.subf %136, %130 : vector<1x32xf32>
    %138 = arith.mulf %137, %135 : vector<1x32xf32>
    %139 = arith.mulf %130, %120 : vector<1x32xf32>
    %140 = arith.addf %138, %139 : vector<1x32xf32>
    %141 = vector.extract_strided_slice %39 {offsets = [5, 0], sizes = [1, 128], strides = [1, 1]} : vector<8x128xf32> to vector<1x128xf32>
    %cst_34 = arith.constant dense<0.000000e+00> : vector<1x128xf32>
    %142 = tpu.matmul %140, %35, %cst_34 {dimension_numbers = #tpu.dot_dimension_numbers<[1], [0], [0], [1], [0, 0, 1, 1], [], []>} : vector<1x32xf32>, vector<32x128xf32>, vector<1x128xf32> -> vector<1x128xf32>
    %143 = arith.addf %141, %142 : vector<1x128xf32>
    %144 = arith.negf %143 : vector<1x128xf32>
    %145 = math.exp %144 : vector<1x128xf32>
    %cst_35 = arith.constant 1.000000e+00 : f32
    %146 = vector.broadcast %cst_35 : f32 to vector<1x128xf32>
    %147 = arith.addf %146, %145 : vector<1x128xf32>
    %148 = arith.divf %146, %147 : vector<1x128xf32>
    %149 = vector.extract_strided_slice %148 {offsets = [0, 0], sizes = [1, 32], strides = [1, 1]} : vector<1x128xf32> to vector<1x32xf32>
    %150 = vector.extract_strided_slice %148 {offsets = [0, 32], sizes = [1, 32], strides = [1, 1]} : vector<1x128xf32> to vector<1x32xf32>
    %151 = vector.extract_strided_slice %143 {offsets = [0, 64], sizes = [1, 32], strides = [1, 1]} : vector<1x128xf32> to vector<1x32xf32>
    %152 = vector.extract_strided_slice %143 {offsets = [0, 96], sizes = [1, 32], strides = [1, 1]} : vector<1x128xf32> to vector<1x32xf32>
    %153 = arith.mulf %149, %152 : vector<1x32xf32>
    %154 = arith.addf %151, %153 : vector<1x32xf32>
    %155 = math.tanh %154 : vector<1x32xf32>
    %cst_36 = arith.constant 1.000000e+00 : f32
    %156 = vector.broadcast %cst_36 : f32 to vector<1x32xf32>
    %157 = arith.subf %156, %150 : vector<1x32xf32>
    %158 = arith.mulf %157, %155 : vector<1x32xf32>
    %159 = arith.mulf %150, %140 : vector<1x32xf32>
    %160 = arith.addf %158, %159 : vector<1x32xf32>
    %161 = vector.extract_strided_slice %39 {offsets = [6, 0], sizes = [1, 128], strides = [1, 1]} : vector<8x128xf32> to vector<1x128xf32>
    %cst_37 = arith.constant dense<0.000000e+00> : vector<1x128xf32>
    %162 = tpu.matmul %160, %35, %cst_37 {dimension_numbers = #tpu.dot_dimension_numbers<[1], [0], [0], [1], [0, 0, 1, 1], [], []>} : vector<1x32xf32>, vector<32x128xf32>, vector<1x128xf32> -> vector<1x128xf32>
    %163 = arith.addf %161, %162 : vector<1x128xf32>
    %164 = arith.negf %163 : vector<1x128xf32>
    %165 = math.exp %164 : vector<1x128xf32>
    %cst_38 = arith.constant 1.000000e+00 : f32
    %166 = vector.broadcast %cst_38 : f32 to vector<1x128xf32>
    %167 = arith.addf %166, %165 : vector<1x128xf32>
    %168 = arith.divf %166, %167 : vector<1x128xf32>
    %169 = vector.extract_strided_slice %168 {offsets = [0, 0], sizes = [1, 32], strides = [1, 1]} : vector<1x128xf32> to vector<1x32xf32>
    %170 = vector.extract_strided_slice %168 {offsets = [0, 32], sizes = [1, 32], strides = [1, 1]} : vector<1x128xf32> to vector<1x32xf32>
    %171 = vector.extract_strided_slice %163 {offsets = [0, 64], sizes = [1, 32], strides = [1, 1]} : vector<1x128xf32> to vector<1x32xf32>
    %172 = vector.extract_strided_slice %163 {offsets = [0, 96], sizes = [1, 32], strides = [1, 1]} : vector<1x128xf32> to vector<1x32xf32>
    %173 = arith.mulf %169, %172 : vector<1x32xf32>
    %174 = arith.addf %171, %173 : vector<1x32xf32>
    %175 = math.tanh %174 : vector<1x32xf32>
    %cst_39 = arith.constant 1.000000e+00 : f32
    %176 = vector.broadcast %cst_39 : f32 to vector<1x32xf32>
    %177 = arith.subf %176, %170 : vector<1x32xf32>
    %178 = arith.mulf %177, %175 : vector<1x32xf32>
    %179 = arith.mulf %170, %160 : vector<1x32xf32>
    %180 = arith.addf %178, %179 : vector<1x32xf32>
    %181 = vector.extract_strided_slice %39 {offsets = [7, 0], sizes = [1, 128], strides = [1, 1]} : vector<8x128xf32> to vector<1x128xf32>
    %cst_40 = arith.constant dense<0.000000e+00> : vector<1x128xf32>
    %182 = tpu.matmul %180, %35, %cst_40 {dimension_numbers = #tpu.dot_dimension_numbers<[1], [0], [0], [1], [0, 0, 1, 1], [], []>} : vector<1x32xf32>, vector<32x128xf32>, vector<1x128xf32> -> vector<1x128xf32>
    %183 = arith.addf %181, %182 : vector<1x128xf32>
    %184 = arith.negf %183 : vector<1x128xf32>
    %185 = math.exp %184 : vector<1x128xf32>
    %cst_41 = arith.constant 1.000000e+00 : f32
    %186 = vector.broadcast %cst_41 : f32 to vector<1x128xf32>
    %187 = arith.addf %186, %185 : vector<1x128xf32>
    %188 = arith.divf %186, %187 : vector<1x128xf32>
    %189 = vector.extract_strided_slice %188 {offsets = [0, 0], sizes = [1, 32], strides = [1, 1]} : vector<1x128xf32> to vector<1x32xf32>
    %190 = vector.extract_strided_slice %188 {offsets = [0, 32], sizes = [1, 32], strides = [1, 1]} : vector<1x128xf32> to vector<1x32xf32>
    %191 = vector.extract_strided_slice %183 {offsets = [0, 64], sizes = [1, 32], strides = [1, 1]} : vector<1x128xf32> to vector<1x32xf32>
    %192 = vector.extract_strided_slice %183 {offsets = [0, 96], sizes = [1, 32], strides = [1, 1]} : vector<1x128xf32> to vector<1x32xf32>
    %193 = arith.mulf %189, %192 : vector<1x32xf32>
    %194 = arith.addf %191, %193 : vector<1x32xf32>
    %195 = math.tanh %194 : vector<1x32xf32>
    %cst_42 = arith.constant 1.000000e+00 : f32
    %196 = vector.broadcast %cst_42 : f32 to vector<1x32xf32>
    %197 = arith.subf %196, %190 : vector<1x32xf32>
    %198 = arith.mulf %197, %195 : vector<1x32xf32>
    %199 = arith.mulf %190, %180 : vector<1x32xf32>
    %200 = arith.addf %198, %199 : vector<1x32xf32>
    %201 = tpu.concatenate %60, %80, %100, %120, %140, %160, %180, %200 in 0 : vector<1x32xf32>, vector<1x32xf32>, vector<1x32xf32>, vector<1x32xf32>, vector<1x32xf32>, vector<1x32xf32>, vector<1x32xf32>, vector<1x32xf32> -> vector<8x32xf32>
    %c96 = arith.constant 96 : index
    %c0_43 = arith.constant 0 : index
    %202 = vector.load %arg3[%c96, %c0_43] : memref<328x128xf32, #tpu.memory_space<vmem>>, vector<32x128xf32>
    %c128 = arith.constant 128 : index
    %c0_44 = arith.constant 0 : index
    %203 = vector.load %arg3[%c128, %c0_44] : memref<328x128xf32, #tpu.memory_space<vmem>>, vector<32x128xf32>
    %c321 = arith.constant 321 : index
    %c0_45 = arith.constant 0 : index
    %204 = vector.load %arg3[%c321, %c0_45] : memref<328x128xf32, #tpu.memory_space<vmem>>, vector<1x128xf32>
    %c160 = arith.constant 160 : index
    %c0_46 = arith.constant 0 : index
    %205 = vector.load %arg3[%c160, %c0_46] : memref<328x128xf32, #tpu.memory_space<vmem>>, vector<32x128xf32>
    %206 = vector.extract_strided_slice %205 {offsets = [0, 0], sizes = [32, 8], strides = [1, 1]} : vector<32x128xf32> to vector<32x8xf32>
    %c192 = arith.constant 192 : index
    %c0_47 = arith.constant 0 : index
    %207 = vector.load %arg3[%c192, %c0_47] : memref<328x128xf32, #tpu.memory_space<vmem>>, vector<32x128xf32>
    %208 = vector.extract_strided_slice %207 {offsets = [0, 0], sizes = [32, 8], strides = [1, 1]} : vector<32x128xf32> to vector<32x8xf32>
    %c322 = arith.constant 322 : index
    %c0_48 = arith.constant 0 : index
    %209 = vector.load %arg3[%c322, %c0_48] : memref<328x128xf32, #tpu.memory_space<vmem>>, vector<1x128xf32>
    %210 = vector.extract_strided_slice %209 {offsets = [0, 0], sizes = [1, 8], strides = [1, 1]} : vector<1x128xf32> to vector<1x8xf32>
    %c224 = arith.constant 224 : index
    %c0_49 = arith.constant 0 : index
    %211 = vector.load %arg3[%c224, %c0_49] : memref<328x128xf32, #tpu.memory_space<vmem>>, vector<32x128xf32>
    %212 = vector.extract_strided_slice %211 {offsets = [0, 0], sizes = [32, 32], strides = [1, 1]} : vector<32x128xf32> to vector<32x32xf32>
    %c256 = arith.constant 256 : index
    %c0_50 = arith.constant 0 : index
    %213 = vector.load %arg3[%c256, %c0_50] : memref<328x128xf32, #tpu.memory_space<vmem>>, vector<32x128xf32>
    %214 = vector.extract_strided_slice %213 {offsets = [0, 0], sizes = [32, 32], strides = [1, 1]} : vector<32x128xf32> to vector<32x32xf32>
    %c323 = arith.constant 323 : index
    %c0_51 = arith.constant 0 : index
    %215 = vector.load %arg3[%c323, %c0_51] : memref<328x128xf32, #tpu.memory_space<vmem>>, vector<1x128xf32>
    %216 = vector.extract_strided_slice %215 {offsets = [0, 0], sizes = [1, 32], strides = [1, 1]} : vector<1x128xf32> to vector<1x32xf32>
    %c288 = arith.constant 288 : index
    %c0_52 = arith.constant 0 : index
    %217 = vector.load %arg3[%c288, %c0_52] : memref<328x128xf32, #tpu.memory_space<vmem>>, vector<32x128xf32>
    %c324 = arith.constant 324 : index
    %c0_53 = arith.constant 0 : index
    %218 = vector.load %arg3[%c324, %c0_53] : memref<328x128xf32, #tpu.memory_space<vmem>>, vector<1x128xf32>
    %c16 = arith.constant 16 : index
    %c0_54 = arith.constant 0 : index
    %219 = vector.load %arg3[%c16, %c0_54] : memref<328x128xf32, #tpu.memory_space<vmem>>, vector<1x128xf32>
    %c0_55 = arith.constant 0 : index
    %220 = memref.load %arg2[%c0_55] : memref<8xi32, #tpu.memory_space<smem>>
    %c16_i32 = arith.constant 16 : i32
    %221 = arith.addi %c16_i32, %220 : i32
    %222 = arith.index_cast %221 : i32 to index
    %c0_56 = arith.constant 0 : index
    %223 = vector.load %arg3[%222, %c0_56] : memref<328x128xf32, #tpu.memory_space<vmem>>, vector<1x128xf32>
    %c1_57 = arith.constant 1 : index
    %224 = memref.load %arg2[%c1_57] : memref<8xi32, #tpu.memory_space<smem>>
    %c16_i32_58 = arith.constant 16 : i32
    %225 = arith.addi %c16_i32_58, %224 : i32
    %226 = arith.index_cast %225 : i32 to index
    %c0_59 = arith.constant 0 : index
    %227 = vector.load %arg3[%226, %c0_59] : memref<328x128xf32, #tpu.memory_space<vmem>>, vector<1x128xf32>
    %c2_60 = arith.constant 2 : index
    %228 = memref.load %arg2[%c2_60] : memref<8xi32, #tpu.memory_space<smem>>
    %c16_i32_61 = arith.constant 16 : i32
    %229 = arith.addi %c16_i32_61, %228 : i32
    %230 = arith.index_cast %229 : i32 to index
    %c0_62 = arith.constant 0 : index
    %231 = vector.load %arg3[%230, %c0_62] : memref<328x128xf32, #tpu.memory_space<vmem>>, vector<1x128xf32>
    %c3_63 = arith.constant 3 : index
    %232 = memref.load %arg2[%c3_63] : memref<8xi32, #tpu.memory_space<smem>>
    %c16_i32_64 = arith.constant 16 : i32
    %233 = arith.addi %c16_i32_64, %232 : i32
    %234 = arith.index_cast %233 : i32 to index
    %c0_65 = arith.constant 0 : index
    %235 = vector.load %arg3[%234, %c0_65] : memref<328x128xf32, #tpu.memory_space<vmem>>, vector<1x128xf32>
    %c4_66 = arith.constant 4 : index
    %236 = memref.load %arg2[%c4_66] : memref<8xi32, #tpu.memory_space<smem>>
    %c16_i32_67 = arith.constant 16 : i32
    %237 = arith.addi %c16_i32_67, %236 : i32
    %238 = arith.index_cast %237 : i32 to index
    %c0_68 = arith.constant 0 : index
    %239 = vector.load %arg3[%238, %c0_68] : memref<328x128xf32, #tpu.memory_space<vmem>>, vector<1x128xf32>
    %c5_69 = arith.constant 5 : index
    %240 = memref.load %arg2[%c5_69] : memref<8xi32, #tpu.memory_space<smem>>
    %c16_i32_70 = arith.constant 16 : i32
    %241 = arith.addi %c16_i32_70, %240 : i32
    %242 = arith.index_cast %241 : i32 to index
    %c0_71 = arith.constant 0 : index
    %243 = vector.load %arg3[%242, %c0_71] : memref<328x128xf32, #tpu.memory_space<vmem>>, vector<1x128xf32>
    %c6_72 = arith.constant 6 : index
    %244 = memref.load %arg2[%c6_72] : memref<8xi32, #tpu.memory_space<smem>>
    %c16_i32_73 = arith.constant 16 : i32
    %245 = arith.addi %c16_i32_73, %244 : i32
    %246 = arith.index_cast %245 : i32 to index
    %c0_74 = arith.constant 0 : index
    %247 = vector.load %arg3[%246, %c0_74] : memref<328x128xf32, #tpu.memory_space<vmem>>, vector<1x128xf32>
    %248 = tpu.concatenate %219, %223, %227, %231, %235, %239, %243, %247 in 0 : vector<1x128xf32>, vector<1x128xf32>, vector<1x128xf32>, vector<1x128xf32>, vector<1x128xf32>, vector<1x128xf32>, vector<1x128xf32>, vector<1x128xf32> -> vector<8x128xf32>
    %249 = vector.extract_strided_slice %248 {offsets = [0, 0], sizes = [8, 32], strides = [1, 1]} : vector<8x128xf32> to vector<8x32xf32>
    %cst_75 = arith.constant dense<0.000000e+00> : vector<8x8xf32>
    %250 = tpu.matmul %249, %206, %cst_75 {dimension_numbers = #tpu.dot_dimension_numbers<[1], [0], [0], [1], [0, 0, 1, 1], [], []>} : vector<8x32xf32>, vector<32x8xf32>, vector<8x8xf32> -> vector<8x8xf32>
    %cst_76 = arith.constant dense<0.000000e+00> : vector<8x32xf32>
    %251 = tpu.matmul %249, %212, %cst_76 {dimension_numbers = #tpu.dot_dimension_numbers<[1], [0], [0], [1], [0, 0, 1, 1], [], []>} : vector<8x32xf32>, vector<32x32xf32>, vector<8x32xf32> -> vector<8x32xf32>
    %252 = vector.extract_strided_slice %250 {offsets = [0, 0], sizes = [1, 8], strides = [1, 1]} : vector<8x8xf32> to vector<1x8xf32>
    %253 = vector.extract_strided_slice %251 {offsets = [0, 0], sizes = [1, 32], strides = [1, 1]} : vector<8x32xf32> to vector<1x32xf32>
    %cst_77 = arith.constant dense<0.000000e+00> : vector<1x8xf32>
    %254 = tpu.matmul %200, %208, %cst_77 {dimension_numbers = #tpu.dot_dimension_numbers<[1], [0], [0], [1], [0, 0, 1, 1], [], []>} : vector<1x32xf32>, vector<32x8xf32>, vector<1x8xf32> -> vector<1x8xf32>
    %255 = arith.addf %252, %254 : vector<1x8xf32>
    %256 = arith.addf %255, %210 : vector<1x8xf32>
    %cst_78 = arith.constant dense<0xFF800000> : vector<1xf32>
    %257 = vector.multi_reduction <maximumf>, %256, %cst_78 [1] : vector<1x8xf32> to vector<1xf32>
    %258 = vector.shape_cast %257 : vector<1xf32> to vector<1x1xf32>
    %259 = vector.broadcast %258 : vector<1x1xf32> to vector<1x8xf32>
    %260 = arith.subf %256, %259 : vector<1x8xf32>
    %261 = math.exp %260 : vector<1x8xf32>
    %cst_79 = arith.constant dense<0.000000e+00> : vector<1xf32>
    %262 = vector.multi_reduction <add>, %261, %cst_79 [1] : vector<1x8xf32> to vector<1xf32>
    %263 = vector.shape_cast %262 : vector<1xf32> to vector<1x1xf32>
    %264 = tpu.reciprocal %263 {approx = true} : vector<1x1xf32> -> vector<1x1xf32>
    %265 = vector.broadcast %264 : vector<1x1xf32> to vector<1x8xf32>
    %266 = arith.mulf %261, %265 : vector<1x8xf32>
    %cst_80 = arith.constant dense<0.000000e+00> : vector<1x32xf32>
    %267 = tpu.matmul %266, %201, %cst_80 {dimension_numbers = #tpu.dot_dimension_numbers<[1], [0], [0], [1], [0, 0, 1, 1], [], []>} : vector<1x8xf32>, vector<8x32xf32>, vector<1x32xf32> -> vector<1x32xf32>
    %cst_81 = arith.constant dense<0.000000e+00> : vector<1x32xf32>
    %268 = tpu.matmul %267, %214, %cst_81 {dimension_numbers = #tpu.dot_dimension_numbers<[1], [0], [0], [1], [0, 0, 1, 1], [], []>} : vector<1x32xf32>, vector<32x32xf32>, vector<1x32xf32> -> vector<1x32xf32>
    %269 = arith.addf %253, %268 : vector<1x32xf32>
    %270 = arith.addf %269, %216 : vector<1x32xf32>
    %cst_82 = arith.constant 0.000000e+00 : f32
    %271 = vector.broadcast %cst_82 : f32 to vector<1x32xf32>
    %272 = arith.maximumf %270, %271 : vector<1x32xf32>
    %cst_83 = arith.constant dense<0.000000e+00> : vector<1x128xf32>
    %273 = tpu.matmul %272, %202, %cst_83 {dimension_numbers = #tpu.dot_dimension_numbers<[1], [0], [0], [1], [0, 0, 1, 1], [], []>} : vector<1x32xf32>, vector<32x128xf32>, vector<1x128xf32> -> vector<1x128xf32>
    %cst_84 = arith.constant dense<0.000000e+00> : vector<1x128xf32>
    %274 = tpu.matmul %200, %203, %cst_84 {dimension_numbers = #tpu.dot_dimension_numbers<[1], [0], [0], [1], [0, 0, 1, 1], [], []>} : vector<1x32xf32>, vector<32x128xf32>, vector<1x128xf32> -> vector<1x128xf32>
    %275 = arith.addf %273, %274 : vector<1x128xf32>
    %276 = arith.addf %275, %204 : vector<1x128xf32>
    %277 = arith.negf %276 : vector<1x128xf32>
    %278 = math.exp %277 : vector<1x128xf32>
    %cst_85 = arith.constant 1.000000e+00 : f32
    %279 = vector.broadcast %cst_85 : f32 to vector<1x128xf32>
    %280 = arith.addf %279, %278 : vector<1x128xf32>
    %281 = arith.divf %279, %280 : vector<1x128xf32>
    %282 = vector.extract_strided_slice %281 {offsets = [0, 0], sizes = [1, 32], strides = [1, 1]} : vector<1x128xf32> to vector<1x32xf32>
    %283 = vector.extract_strided_slice %281 {offsets = [0, 32], sizes = [1, 32], strides = [1, 1]} : vector<1x128xf32> to vector<1x32xf32>
    %284 = vector.extract_strided_slice %276 {offsets = [0, 64], sizes = [1, 32], strides = [1, 1]} : vector<1x128xf32> to vector<1x32xf32>
    %285 = vector.extract_strided_slice %276 {offsets = [0, 96], sizes = [1, 32], strides = [1, 1]} : vector<1x128xf32> to vector<1x32xf32>
    %286 = arith.mulf %282, %285 : vector<1x32xf32>
    %287 = arith.addf %284, %286 : vector<1x32xf32>
    %288 = math.tanh %287 : vector<1x32xf32>
    %cst_86 = arith.constant 1.000000e+00 : f32
    %289 = vector.broadcast %cst_86 : f32 to vector<1x32xf32>
    %290 = arith.subf %289, %283 : vector<1x32xf32>
    %291 = arith.mulf %290, %288 : vector<1x32xf32>
    %292 = arith.mulf %283, %200 : vector<1x32xf32>
    %293 = arith.addf %291, %292 : vector<1x32xf32>
    %cst_87 = arith.constant dense<0.000000e+00> : vector<1x128xf32>
    %294 = tpu.matmul %293, %217, %cst_87 {dimension_numbers = #tpu.dot_dimension_numbers<[1], [0], [0], [1], [0, 0, 1, 1], [], []>} : vector<1x32xf32>, vector<32x128xf32>, vector<1x128xf32> -> vector<1x128xf32>
    %295 = arith.addf %294, %218 : vector<1x128xf32>
    %cst_88 = arith.constant dense<0xFF800000> : vector<1xf32>
    %296 = vector.multi_reduction <maximumf>, %295, %cst_88 [1] : vector<1x128xf32> to vector<1xf32>
    %297 = vector.shape_cast %296 : vector<1xf32> to vector<1x1xf32>
    %298 = vector.broadcast %297 : vector<1x1xf32> to vector<1x128xf32>
    %299 = arith.subf %295, %298 : vector<1x128xf32>
    %300 = math.exp %299 : vector<1x128xf32>
    %cst_89 = arith.constant dense<0.000000e+00> : vector<1xf32>
    %301 = vector.multi_reduction <add>, %300, %cst_89 [1] : vector<1x128xf32> to vector<1xf32>
    %302 = vector.shape_cast %301 : vector<1xf32> to vector<1x1xf32>
    %303 = math.log %302 : vector<1x1xf32>
    %304 = arith.addf %297, %303 : vector<1x1xf32>
    %305 = vector.broadcast %304 : vector<1x1xf32> to vector<1x128xf32>
    %306 = arith.subf %295, %305 : vector<1x128xf32>
    %307 = vector.extract_strided_slice %250 {offsets = [1, 0], sizes = [1, 8], strides = [1, 1]} : vector<8x8xf32> to vector<1x8xf32>
    %308 = vector.extract_strided_slice %251 {offsets = [1, 0], sizes = [1, 32], strides = [1, 1]} : vector<8x32xf32> to vector<1x32xf32>
    %cst_90 = arith.constant dense<0.000000e+00> : vector<1x8xf32>
    %309 = tpu.matmul %293, %208, %cst_90 {dimension_numbers = #tpu.dot_dimension_numbers<[1], [0], [0], [1], [0, 0, 1, 1], [], []>} : vector<1x32xf32>, vector<32x8xf32>, vector<1x8xf32> -> vector<1x8xf32>
    %310 = arith.addf %307, %309 : vector<1x8xf32>
    %311 = arith.addf %310, %210 : vector<1x8xf32>
    %cst_91 = arith.constant dense<0xFF800000> : vector<1xf32>
    %312 = vector.multi_reduction <maximumf>, %311, %cst_91 [1] : vector<1x8xf32> to vector<1xf32>
    %313 = vector.shape_cast %312 : vector<1xf32> to vector<1x1xf32>
    %314 = vector.broadcast %313 : vector<1x1xf32> to vector<1x8xf32>
    %315 = arith.subf %311, %314 : vector<1x8xf32>
    %316 = math.exp %315 : vector<1x8xf32>
    %cst_92 = arith.constant dense<0.000000e+00> : vector<1xf32>
    %317 = vector.multi_reduction <add>, %316, %cst_92 [1] : vector<1x8xf32> to vector<1xf32>
    %318 = vector.shape_cast %317 : vector<1xf32> to vector<1x1xf32>
    %319 = tpu.reciprocal %318 {approx = true} : vector<1x1xf32> -> vector<1x1xf32>
    %320 = vector.broadcast %319 : vector<1x1xf32> to vector<1x8xf32>
    %321 = arith.mulf %316, %320 : vector<1x8xf32>
    %cst_93 = arith.constant dense<0.000000e+00> : vector<1x32xf32>
    %322 = tpu.matmul %321, %201, %cst_93 {dimension_numbers = #tpu.dot_dimension_numbers<[1], [0], [0], [1], [0, 0, 1, 1], [], []>} : vector<1x8xf32>, vector<8x32xf32>, vector<1x32xf32> -> vector<1x32xf32>
    %cst_94 = arith.constant dense<0.000000e+00> : vector<1x32xf32>
    %323 = tpu.matmul %322, %214, %cst_94 {dimension_numbers = #tpu.dot_dimension_numbers<[1], [0], [0], [1], [0, 0, 1, 1], [], []>} : vector<1x32xf32>, vector<32x32xf32>, vector<1x32xf32> -> vector<1x32xf32>
    %324 = arith.addf %308, %323 : vector<1x32xf32>
    %325 = arith.addf %324, %216 : vector<1x32xf32>
    %cst_95 = arith.constant 0.000000e+00 : f32
    %326 = vector.broadcast %cst_95 : f32 to vector<1x32xf32>
    %327 = arith.maximumf %325, %326 : vector<1x32xf32>
    %cst_96 = arith.constant dense<0.000000e+00> : vector<1x128xf32>
    %328 = tpu.matmul %327, %202, %cst_96 {dimension_numbers = #tpu.dot_dimension_numbers<[1], [0], [0], [1], [0, 0, 1, 1], [], []>} : vector<1x32xf32>, vector<32x128xf32>, vector<1x128xf32> -> vector<1x128xf32>
    %cst_97 = arith.constant dense<0.000000e+00> : vector<1x128xf32>
    %329 = tpu.matmul %293, %203, %cst_97 {dimension_numbers = #tpu.dot_dimension_numbers<[1], [0], [0], [1], [0, 0, 1, 1], [], []>} : vector<1x32xf32>, vector<32x128xf32>, vector<1x128xf32> -> vector<1x128xf32>
    %330 = arith.addf %328, %329 : vector<1x128xf32>
    %331 = arith.addf %330, %204 : vector<1x128xf32>
    %332 = arith.negf %331 : vector<1x128xf32>
    %333 = math.exp %332 : vector<1x128xf32>
    %cst_98 = arith.constant 1.000000e+00 : f32
    %334 = vector.broadcast %cst_98 : f32 to vector<1x128xf32>
    %335 = arith.addf %334, %333 : vector<1x128xf32>
    %336 = arith.divf %334, %335 : vector<1x128xf32>
    %337 = vector.extract_strided_slice %336 {offsets = [0, 0], sizes = [1, 32], strides = [1, 1]} : vector<1x128xf32> to vector<1x32xf32>
    %338 = vector.extract_strided_slice %336 {offsets = [0, 32], sizes = [1, 32], strides = [1, 1]} : vector<1x128xf32> to vector<1x32xf32>
    %339 = vector.extract_strided_slice %331 {offsets = [0, 64], sizes = [1, 32], strides = [1, 1]} : vector<1x128xf32> to vector<1x32xf32>
    %340 = vector.extract_strided_slice %331 {offsets = [0, 96], sizes = [1, 32], strides = [1, 1]} : vector<1x128xf32> to vector<1x32xf32>
    %341 = arith.mulf %337, %340 : vector<1x32xf32>
    %342 = arith.addf %339, %341 : vector<1x32xf32>
    %343 = math.tanh %342 : vector<1x32xf32>
    %cst_99 = arith.constant 1.000000e+00 : f32
    %344 = vector.broadcast %cst_99 : f32 to vector<1x32xf32>
    %345 = arith.subf %344, %338 : vector<1x32xf32>
    %346 = arith.mulf %345, %343 : vector<1x32xf32>
    %347 = arith.mulf %338, %293 : vector<1x32xf32>
    %348 = arith.addf %346, %347 : vector<1x32xf32>
    %cst_100 = arith.constant dense<0.000000e+00> : vector<1x128xf32>
    %349 = tpu.matmul %348, %217, %cst_100 {dimension_numbers = #tpu.dot_dimension_numbers<[1], [0], [0], [1], [0, 0, 1, 1], [], []>} : vector<1x32xf32>, vector<32x128xf32>, vector<1x128xf32> -> vector<1x128xf32>
    %350 = arith.addf %349, %218 : vector<1x128xf32>
    %cst_101 = arith.constant dense<0xFF800000> : vector<1xf32>
    %351 = vector.multi_reduction <maximumf>, %350, %cst_101 [1] : vector<1x128xf32> to vector<1xf32>
    %352 = vector.shape_cast %351 : vector<1xf32> to vector<1x1xf32>
    %353 = vector.broadcast %352 : vector<1x1xf32> to vector<1x128xf32>
    %354 = arith.subf %350, %353 : vector<1x128xf32>
    %355 = math.exp %354 : vector<1x128xf32>
    %cst_102 = arith.constant dense<0.000000e+00> : vector<1xf32>
    %356 = vector.multi_reduction <add>, %355, %cst_102 [1] : vector<1x128xf32> to vector<1xf32>
    %357 = vector.shape_cast %356 : vector<1xf32> to vector<1x1xf32>
    %358 = math.log %357 : vector<1x1xf32>
    %359 = arith.addf %352, %358 : vector<1x1xf32>
    %360 = vector.broadcast %359 : vector<1x1xf32> to vector<1x128xf32>
    %361 = arith.subf %350, %360 : vector<1x128xf32>
    %362 = vector.extract_strided_slice %250 {offsets = [2, 0], sizes = [1, 8], strides = [1, 1]} : vector<8x8xf32> to vector<1x8xf32>
    %363 = vector.extract_strided_slice %251 {offsets = [2, 0], sizes = [1, 32], strides = [1, 1]} : vector<8x32xf32> to vector<1x32xf32>
    %cst_103 = arith.constant dense<0.000000e+00> : vector<1x8xf32>
    %364 = tpu.matmul %348, %208, %cst_103 {dimension_numbers = #tpu.dot_dimension_numbers<[1], [0], [0], [1], [0, 0, 1, 1], [], []>} : vector<1x32xf32>, vector<32x8xf32>, vector<1x8xf32> -> vector<1x8xf32>
    %365 = arith.addf %362, %364 : vector<1x8xf32>
    %366 = arith.addf %365, %210 : vector<1x8xf32>
    %cst_104 = arith.constant dense<0xFF800000> : vector<1xf32>
    %367 = vector.multi_reduction <maximumf>, %366, %cst_104 [1] : vector<1x8xf32> to vector<1xf32>
    %368 = vector.shape_cast %367 : vector<1xf32> to vector<1x1xf32>
    %369 = vector.broadcast %368 : vector<1x1xf32> to vector<1x8xf32>
    %370 = arith.subf %366, %369 : vector<1x8xf32>
    %371 = math.exp %370 : vector<1x8xf32>
    %cst_105 = arith.constant dense<0.000000e+00> : vector<1xf32>
    %372 = vector.multi_reduction <add>, %371, %cst_105 [1] : vector<1x8xf32> to vector<1xf32>
    %373 = vector.shape_cast %372 : vector<1xf32> to vector<1x1xf32>
    %374 = tpu.reciprocal %373 {approx = true} : vector<1x1xf32> -> vector<1x1xf32>
    %375 = vector.broadcast %374 : vector<1x1xf32> to vector<1x8xf32>
    %376 = arith.mulf %371, %375 : vector<1x8xf32>
    %cst_106 = arith.constant dense<0.000000e+00> : vector<1x32xf32>
    %377 = tpu.matmul %376, %201, %cst_106 {dimension_numbers = #tpu.dot_dimension_numbers<[1], [0], [0], [1], [0, 0, 1, 1], [], []>} : vector<1x8xf32>, vector<8x32xf32>, vector<1x32xf32> -> vector<1x32xf32>
    %cst_107 = arith.constant dense<0.000000e+00> : vector<1x32xf32>
    %378 = tpu.matmul %377, %214, %cst_107 {dimension_numbers = #tpu.dot_dimension_numbers<[1], [0], [0], [1], [0, 0, 1, 1], [], []>} : vector<1x32xf32>, vector<32x32xf32>, vector<1x32xf32> -> vector<1x32xf32>
    %379 = arith.addf %363, %378 : vector<1x32xf32>
    %380 = arith.addf %379, %216 : vector<1x32xf32>
    %cst_108 = arith.constant 0.000000e+00 : f32
    %381 = vector.broadcast %cst_108 : f32 to vector<1x32xf32>
    %382 = arith.maximumf %380, %381 : vector<1x32xf32>
    %cst_109 = arith.constant dense<0.000000e+00> : vector<1x128xf32>
    %383 = tpu.matmul %382, %202, %cst_109 {dimension_numbers = #tpu.dot_dimension_numbers<[1], [0], [0], [1], [0, 0, 1, 1], [], []>} : vector<1x32xf32>, vector<32x128xf32>, vector<1x128xf32> -> vector<1x128xf32>
    %cst_110 = arith.constant dense<0.000000e+00> : vector<1x128xf32>
    %384 = tpu.matmul %348, %203, %cst_110 {dimension_numbers = #tpu.dot_dimension_numbers<[1], [0], [0], [1], [0, 0, 1, 1], [], []>} : vector<1x32xf32>, vector<32x128xf32>, vector<1x128xf32> -> vector<1x128xf32>
    %385 = arith.addf %383, %384 : vector<1x128xf32>
    %386 = arith.addf %385, %204 : vector<1x128xf32>
    %387 = arith.negf %386 : vector<1x128xf32>
    %388 = math.exp %387 : vector<1x128xf32>
    %cst_111 = arith.constant 1.000000e+00 : f32
    %389 = vector.broadcast %cst_111 : f32 to vector<1x128xf32>
    %390 = arith.addf %389, %388 : vector<1x128xf32>
    %391 = arith.divf %389, %390 : vector<1x128xf32>
    %392 = vector.extract_strided_slice %391 {offsets = [0, 0], sizes = [1, 32], strides = [1, 1]} : vector<1x128xf32> to vector<1x32xf32>
    %393 = vector.extract_strided_slice %391 {offsets = [0, 32], sizes = [1, 32], strides = [1, 1]} : vector<1x128xf32> to vector<1x32xf32>
    %394 = vector.extract_strided_slice %386 {offsets = [0, 64], sizes = [1, 32], strides = [1, 1]} : vector<1x128xf32> to vector<1x32xf32>
    %395 = vector.extract_strided_slice %386 {offsets = [0, 96], sizes = [1, 32], strides = [1, 1]} : vector<1x128xf32> to vector<1x32xf32>
    %396 = arith.mulf %392, %395 : vector<1x32xf32>
    %397 = arith.addf %394, %396 : vector<1x32xf32>
    %398 = math.tanh %397 : vector<1x32xf32>
    %cst_112 = arith.constant 1.000000e+00 : f32
    %399 = vector.broadcast %cst_112 : f32 to vector<1x32xf32>
    %400 = arith.subf %399, %393 : vector<1x32xf32>
    %401 = arith.mulf %400, %398 : vector<1x32xf32>
    %402 = arith.mulf %393, %348 : vector<1x32xf32>
    %403 = arith.addf %401, %402 : vector<1x32xf32>
    %cst_113 = arith.constant dense<0.000000e+00> : vector<1x128xf32>
    %404 = tpu.matmul %403, %217, %cst_113 {dimension_numbers = #tpu.dot_dimension_numbers<[1], [0], [0], [1], [0, 0, 1, 1], [], []>} : vector<1x32xf32>, vector<32x128xf32>, vector<1x128xf32> -> vector<1x128xf32>
    %405 = arith.addf %404, %218 : vector<1x128xf32>
    %cst_114 = arith.constant dense<0xFF800000> : vector<1xf32>
    %406 = vector.multi_reduction <maximumf>, %405, %cst_114 [1] : vector<1x128xf32> to vector<1xf32>
    %407 = vector.shape_cast %406 : vector<1xf32> to vector<1x1xf32>
    %408 = vector.broadcast %407 : vector<1x1xf32> to vector<1x128xf32>
    %409 = arith.subf %405, %408 : vector<1x128xf32>
    %410 = math.exp %409 : vector<1x128xf32>
    %cst_115 = arith.constant dense<0.000000e+00> : vector<1xf32>
    %411 = vector.multi_reduction <add>, %410, %cst_115 [1] : vector<1x128xf32> to vector<1xf32>
    %412 = vector.shape_cast %411 : vector<1xf32> to vector<1x1xf32>
    %413 = math.log %412 : vector<1x1xf32>
    %414 = arith.addf %407, %413 : vector<1x1xf32>
    %415 = vector.broadcast %414 : vector<1x1xf32> to vector<1x128xf32>
    %416 = arith.subf %405, %415 : vector<1x128xf32>
    %417 = vector.extract_strided_slice %250 {offsets = [3, 0], sizes = [1, 8], strides = [1, 1]} : vector<8x8xf32> to vector<1x8xf32>
    %418 = vector.extract_strided_slice %251 {offsets = [3, 0], sizes = [1, 32], strides = [1, 1]} : vector<8x32xf32> to vector<1x32xf32>
    %cst_116 = arith.constant dense<0.000000e+00> : vector<1x8xf32>
    %419 = tpu.matmul %403, %208, %cst_116 {dimension_numbers = #tpu.dot_dimension_numbers<[1], [0], [0], [1], [0, 0, 1, 1], [], []>} : vector<1x32xf32>, vector<32x8xf32>, vector<1x8xf32> -> vector<1x8xf32>
    %420 = arith.addf %417, %419 : vector<1x8xf32>
    %421 = arith.addf %420, %210 : vector<1x8xf32>
    %cst_117 = arith.constant dense<0xFF800000> : vector<1xf32>
    %422 = vector.multi_reduction <maximumf>, %421, %cst_117 [1] : vector<1x8xf32> to vector<1xf32>
    %423 = vector.shape_cast %422 : vector<1xf32> to vector<1x1xf32>
    %424 = vector.broadcast %423 : vector<1x1xf32> to vector<1x8xf32>
    %425 = arith.subf %421, %424 : vector<1x8xf32>
    %426 = math.exp %425 : vector<1x8xf32>
    %cst_118 = arith.constant dense<0.000000e+00> : vector<1xf32>
    %427 = vector.multi_reduction <add>, %426, %cst_118 [1] : vector<1x8xf32> to vector<1xf32>
    %428 = vector.shape_cast %427 : vector<1xf32> to vector<1x1xf32>
    %429 = tpu.reciprocal %428 {approx = true} : vector<1x1xf32> -> vector<1x1xf32>
    %430 = vector.broadcast %429 : vector<1x1xf32> to vector<1x8xf32>
    %431 = arith.mulf %426, %430 : vector<1x8xf32>
    %cst_119 = arith.constant dense<0.000000e+00> : vector<1x32xf32>
    %432 = tpu.matmul %431, %201, %cst_119 {dimension_numbers = #tpu.dot_dimension_numbers<[1], [0], [0], [1], [0, 0, 1, 1], [], []>} : vector<1x8xf32>, vector<8x32xf32>, vector<1x32xf32> -> vector<1x32xf32>
    %cst_120 = arith.constant dense<0.000000e+00> : vector<1x32xf32>
    %433 = tpu.matmul %432, %214, %cst_120 {dimension_numbers = #tpu.dot_dimension_numbers<[1], [0], [0], [1], [0, 0, 1, 1], [], []>} : vector<1x32xf32>, vector<32x32xf32>, vector<1x32xf32> -> vector<1x32xf32>
    %434 = arith.addf %418, %433 : vector<1x32xf32>
    %435 = arith.addf %434, %216 : vector<1x32xf32>
    %cst_121 = arith.constant 0.000000e+00 : f32
    %436 = vector.broadcast %cst_121 : f32 to vector<1x32xf32>
    %437 = arith.maximumf %435, %436 : vector<1x32xf32>
    %cst_122 = arith.constant dense<0.000000e+00> : vector<1x128xf32>
    %438 = tpu.matmul %437, %202, %cst_122 {dimension_numbers = #tpu.dot_dimension_numbers<[1], [0], [0], [1], [0, 0, 1, 1], [], []>} : vector<1x32xf32>, vector<32x128xf32>, vector<1x128xf32> -> vector<1x128xf32>
    %cst_123 = arith.constant dense<0.000000e+00> : vector<1x128xf32>
    %439 = tpu.matmul %403, %203, %cst_123 {dimension_numbers = #tpu.dot_dimension_numbers<[1], [0], [0], [1], [0, 0, 1, 1], [], []>} : vector<1x32xf32>, vector<32x128xf32>, vector<1x128xf32> -> vector<1x128xf32>
    %440 = arith.addf %438, %439 : vector<1x128xf32>
    %441 = arith.addf %440, %204 : vector<1x128xf32>
    %442 = arith.negf %441 : vector<1x128xf32>
    %443 = math.exp %442 : vector<1x128xf32>
    %cst_124 = arith.constant 1.000000e+00 : f32
    %444 = vector.broadcast %cst_124 : f32 to vector<1x128xf32>
    %445 = arith.addf %444, %443 : vector<1x128xf32>
    %446 = arith.divf %444, %445 : vector<1x128xf32>
    %447 = vector.extract_strided_slice %446 {offsets = [0, 0], sizes = [1, 32], strides = [1, 1]} : vector<1x128xf32> to vector<1x32xf32>
    %448 = vector.extract_strided_slice %446 {offsets = [0, 32], sizes = [1, 32], strides = [1, 1]} : vector<1x128xf32> to vector<1x32xf32>
    %449 = vector.extract_strided_slice %441 {offsets = [0, 64], sizes = [1, 32], strides = [1, 1]} : vector<1x128xf32> to vector<1x32xf32>
    %450 = vector.extract_strided_slice %441 {offsets = [0, 96], sizes = [1, 32], strides = [1, 1]} : vector<1x128xf32> to vector<1x32xf32>
    %451 = arith.mulf %447, %450 : vector<1x32xf32>
    %452 = arith.addf %449, %451 : vector<1x32xf32>
    %453 = math.tanh %452 : vector<1x32xf32>
    %cst_125 = arith.constant 1.000000e+00 : f32
    %454 = vector.broadcast %cst_125 : f32 to vector<1x32xf32>
    %455 = arith.subf %454, %448 : vector<1x32xf32>
    %456 = arith.mulf %455, %453 : vector<1x32xf32>
    %457 = arith.mulf %448, %403 : vector<1x32xf32>
    %458 = arith.addf %456, %457 : vector<1x32xf32>
    %cst_126 = arith.constant dense<0.000000e+00> : vector<1x128xf32>
    %459 = tpu.matmul %458, %217, %cst_126 {dimension_numbers = #tpu.dot_dimension_numbers<[1], [0], [0], [1], [0, 0, 1, 1], [], []>} : vector<1x32xf32>, vector<32x128xf32>, vector<1x128xf32> -> vector<1x128xf32>
    %460 = arith.addf %459, %218 : vector<1x128xf32>
    %cst_127 = arith.constant dense<0xFF800000> : vector<1xf32>
    %461 = vector.multi_reduction <maximumf>, %460, %cst_127 [1] : vector<1x128xf32> to vector<1xf32>
    %462 = vector.shape_cast %461 : vector<1xf32> to vector<1x1xf32>
    %463 = vector.broadcast %462 : vector<1x1xf32> to vector<1x128xf32>
    %464 = arith.subf %460, %463 : vector<1x128xf32>
    %465 = math.exp %464 : vector<1x128xf32>
    %cst_128 = arith.constant dense<0.000000e+00> : vector<1xf32>
    %466 = vector.multi_reduction <add>, %465, %cst_128 [1] : vector<1x128xf32> to vector<1xf32>
    %467 = vector.shape_cast %466 : vector<1xf32> to vector<1x1xf32>
    %468 = math.log %467 : vector<1x1xf32>
    %469 = arith.addf %462, %468 : vector<1x1xf32>
    %470 = vector.broadcast %469 : vector<1x1xf32> to vector<1x128xf32>
    %471 = arith.subf %460, %470 : vector<1x128xf32>
    %472 = vector.extract_strided_slice %250 {offsets = [4, 0], sizes = [1, 8], strides = [1, 1]} : vector<8x8xf32> to vector<1x8xf32>
    %473 = vector.extract_strided_slice %251 {offsets = [4, 0], sizes = [1, 32], strides = [1, 1]} : vector<8x32xf32> to vector<1x32xf32>
    %cst_129 = arith.constant dense<0.000000e+00> : vector<1x8xf32>
    %474 = tpu.matmul %458, %208, %cst_129 {dimension_numbers = #tpu.dot_dimension_numbers<[1], [0], [0], [1], [0, 0, 1, 1], [], []>} : vector<1x32xf32>, vector<32x8xf32>, vector<1x8xf32> -> vector<1x8xf32>
    %475 = arith.addf %472, %474 : vector<1x8xf32>
    %476 = arith.addf %475, %210 : vector<1x8xf32>
    %cst_130 = arith.constant dense<0xFF800000> : vector<1xf32>
    %477 = vector.multi_reduction <maximumf>, %476, %cst_130 [1] : vector<1x8xf32> to vector<1xf32>
    %478 = vector.shape_cast %477 : vector<1xf32> to vector<1x1xf32>
    %479 = vector.broadcast %478 : vector<1x1xf32> to vector<1x8xf32>
    %480 = arith.subf %476, %479 : vector<1x8xf32>
    %481 = math.exp %480 : vector<1x8xf32>
    %cst_131 = arith.constant dense<0.000000e+00> : vector<1xf32>
    %482 = vector.multi_reduction <add>, %481, %cst_131 [1] : vector<1x8xf32> to vector<1xf32>
    %483 = vector.shape_cast %482 : vector<1xf32> to vector<1x1xf32>
    %484 = tpu.reciprocal %483 {approx = true} : vector<1x1xf32> -> vector<1x1xf32>
    %485 = vector.broadcast %484 : vector<1x1xf32> to vector<1x8xf32>
    %486 = arith.mulf %481, %485 : vector<1x8xf32>
    %cst_132 = arith.constant dense<0.000000e+00> : vector<1x32xf32>
    %487 = tpu.matmul %486, %201, %cst_132 {dimension_numbers = #tpu.dot_dimension_numbers<[1], [0], [0], [1], [0, 0, 1, 1], [], []>} : vector<1x8xf32>, vector<8x32xf32>, vector<1x32xf32> -> vector<1x32xf32>
    %cst_133 = arith.constant dense<0.000000e+00> : vector<1x32xf32>
    %488 = tpu.matmul %487, %214, %cst_133 {dimension_numbers = #tpu.dot_dimension_numbers<[1], [0], [0], [1], [0, 0, 1, 1], [], []>} : vector<1x32xf32>, vector<32x32xf32>, vector<1x32xf32> -> vector<1x32xf32>
    %489 = arith.addf %473, %488 : vector<1x32xf32>
    %490 = arith.addf %489, %216 : vector<1x32xf32>
    %cst_134 = arith.constant 0.000000e+00 : f32
    %491 = vector.broadcast %cst_134 : f32 to vector<1x32xf32>
    %492 = arith.maximumf %490, %491 : vector<1x32xf32>
    %cst_135 = arith.constant dense<0.000000e+00> : vector<1x128xf32>
    %493 = tpu.matmul %492, %202, %cst_135 {dimension_numbers = #tpu.dot_dimension_numbers<[1], [0], [0], [1], [0, 0, 1, 1], [], []>} : vector<1x32xf32>, vector<32x128xf32>, vector<1x128xf32> -> vector<1x128xf32>
    %cst_136 = arith.constant dense<0.000000e+00> : vector<1x128xf32>
    %494 = tpu.matmul %458, %203, %cst_136 {dimension_numbers = #tpu.dot_dimension_numbers<[1], [0], [0], [1], [0, 0, 1, 1], [], []>} : vector<1x32xf32>, vector<32x128xf32>, vector<1x128xf32> -> vector<1x128xf32>
    %495 = arith.addf %493, %494 : vector<1x128xf32>
    %496 = arith.addf %495, %204 : vector<1x128xf32>
    %497 = arith.negf %496 : vector<1x128xf32>
    %498 = math.exp %497 : vector<1x128xf32>
    %cst_137 = arith.constant 1.000000e+00 : f32
    %499 = vector.broadcast %cst_137 : f32 to vector<1x128xf32>
    %500 = arith.addf %499, %498 : vector<1x128xf32>
    %501 = arith.divf %499, %500 : vector<1x128xf32>
    %502 = vector.extract_strided_slice %501 {offsets = [0, 0], sizes = [1, 32], strides = [1, 1]} : vector<1x128xf32> to vector<1x32xf32>
    %503 = vector.extract_strided_slice %501 {offsets = [0, 32], sizes = [1, 32], strides = [1, 1]} : vector<1x128xf32> to vector<1x32xf32>
    %504 = vector.extract_strided_slice %496 {offsets = [0, 64], sizes = [1, 32], strides = [1, 1]} : vector<1x128xf32> to vector<1x32xf32>
    %505 = vector.extract_strided_slice %496 {offsets = [0, 96], sizes = [1, 32], strides = [1, 1]} : vector<1x128xf32> to vector<1x32xf32>
    %506 = arith.mulf %502, %505 : vector<1x32xf32>
    %507 = arith.addf %504, %506 : vector<1x32xf32>
    %508 = math.tanh %507 : vector<1x32xf32>
    %cst_138 = arith.constant 1.000000e+00 : f32
    %509 = vector.broadcast %cst_138 : f32 to vector<1x32xf32>
    %510 = arith.subf %509, %503 : vector<1x32xf32>
    %511 = arith.mulf %510, %508 : vector<1x32xf32>
    %512 = arith.mulf %503, %458 : vector<1x32xf32>
    %513 = arith.addf %511, %512 : vector<1x32xf32>
    %cst_139 = arith.constant dense<0.000000e+00> : vector<1x128xf32>
    %514 = tpu.matmul %513, %217, %cst_139 {dimension_numbers = #tpu.dot_dimension_numbers<[1], [0], [0], [1], [0, 0, 1, 1], [], []>} : vector<1x32xf32>, vector<32x128xf32>, vector<1x128xf32> -> vector<1x128xf32>
    %515 = arith.addf %514, %218 : vector<1x128xf32>
    %cst_140 = arith.constant dense<0xFF800000> : vector<1xf32>
    %516 = vector.multi_reduction <maximumf>, %515, %cst_140 [1] : vector<1x128xf32> to vector<1xf32>
    %517 = vector.shape_cast %516 : vector<1xf32> to vector<1x1xf32>
    %518 = vector.broadcast %517 : vector<1x1xf32> to vector<1x128xf32>
    %519 = arith.subf %515, %518 : vector<1x128xf32>
    %520 = math.exp %519 : vector<1x128xf32>
    %cst_141 = arith.constant dense<0.000000e+00> : vector<1xf32>
    %521 = vector.multi_reduction <add>, %520, %cst_141 [1] : vector<1x128xf32> to vector<1xf32>
    %522 = vector.shape_cast %521 : vector<1xf32> to vector<1x1xf32>
    %523 = math.log %522 : vector<1x1xf32>
    %524 = arith.addf %517, %523 : vector<1x1xf32>
    %525 = vector.broadcast %524 : vector<1x1xf32> to vector<1x128xf32>
    %526 = arith.subf %515, %525 : vector<1x128xf32>
    %527 = vector.extract_strided_slice %250 {offsets = [5, 0], sizes = [1, 8], strides = [1, 1]} : vector<8x8xf32> to vector<1x8xf32>
    %528 = vector.extract_strided_slice %251 {offsets = [5, 0], sizes = [1, 32], strides = [1, 1]} : vector<8x32xf32> to vector<1x32xf32>
    %cst_142 = arith.constant dense<0.000000e+00> : vector<1x8xf32>
    %529 = tpu.matmul %513, %208, %cst_142 {dimension_numbers = #tpu.dot_dimension_numbers<[1], [0], [0], [1], [0, 0, 1, 1], [], []>} : vector<1x32xf32>, vector<32x8xf32>, vector<1x8xf32> -> vector<1x8xf32>
    %530 = arith.addf %527, %529 : vector<1x8xf32>
    %531 = arith.addf %530, %210 : vector<1x8xf32>
    %cst_143 = arith.constant dense<0xFF800000> : vector<1xf32>
    %532 = vector.multi_reduction <maximumf>, %531, %cst_143 [1] : vector<1x8xf32> to vector<1xf32>
    %533 = vector.shape_cast %532 : vector<1xf32> to vector<1x1xf32>
    %534 = vector.broadcast %533 : vector<1x1xf32> to vector<1x8xf32>
    %535 = arith.subf %531, %534 : vector<1x8xf32>
    %536 = math.exp %535 : vector<1x8xf32>
    %cst_144 = arith.constant dense<0.000000e+00> : vector<1xf32>
    %537 = vector.multi_reduction <add>, %536, %cst_144 [1] : vector<1x8xf32> to vector<1xf32>
    %538 = vector.shape_cast %537 : vector<1xf32> to vector<1x1xf32>
    %539 = tpu.reciprocal %538 {approx = true} : vector<1x1xf32> -> vector<1x1xf32>
    %540 = vector.broadcast %539 : vector<1x1xf32> to vector<1x8xf32>
    %541 = arith.mulf %536, %540 : vector<1x8xf32>
    %cst_145 = arith.constant dense<0.000000e+00> : vector<1x32xf32>
    %542 = tpu.matmul %541, %201, %cst_145 {dimension_numbers = #tpu.dot_dimension_numbers<[1], [0], [0], [1], [0, 0, 1, 1], [], []>} : vector<1x8xf32>, vector<8x32xf32>, vector<1x32xf32> -> vector<1x32xf32>
    %cst_146 = arith.constant dense<0.000000e+00> : vector<1x32xf32>
    %543 = tpu.matmul %542, %214, %cst_146 {dimension_numbers = #tpu.dot_dimension_numbers<[1], [0], [0], [1], [0, 0, 1, 1], [], []>} : vector<1x32xf32>, vector<32x32xf32>, vector<1x32xf32> -> vector<1x32xf32>
    %544 = arith.addf %528, %543 : vector<1x32xf32>
    %545 = arith.addf %544, %216 : vector<1x32xf32>
    %cst_147 = arith.constant 0.000000e+00 : f32
    %546 = vector.broadcast %cst_147 : f32 to vector<1x32xf32>
    %547 = arith.maximumf %545, %546 : vector<1x32xf32>
    %cst_148 = arith.constant dense<0.000000e+00> : vector<1x128xf32>
    %548 = tpu.matmul %547, %202, %cst_148 {dimension_numbers = #tpu.dot_dimension_numbers<[1], [0], [0], [1], [0, 0, 1, 1], [], []>} : vector<1x32xf32>, vector<32x128xf32>, vector<1x128xf32> -> vector<1x128xf32>
    %cst_149 = arith.constant dense<0.000000e+00> : vector<1x128xf32>
    %549 = tpu.matmul %513, %203, %cst_149 {dimension_numbers = #tpu.dot_dimension_numbers<[1], [0], [0], [1], [0, 0, 1, 1], [], []>} : vector<1x32xf32>, vector<32x128xf32>, vector<1x128xf32> -> vector<1x128xf32>
    %550 = arith.addf %548, %549 : vector<1x128xf32>
    %551 = arith.addf %550, %204 : vector<1x128xf32>
    %552 = arith.negf %551 : vector<1x128xf32>
    %553 = math.exp %552 : vector<1x128xf32>
    %cst_150 = arith.constant 1.000000e+00 : f32
    %554 = vector.broadcast %cst_150 : f32 to vector<1x128xf32>
    %555 = arith.addf %554, %553 : vector<1x128xf32>
    %556 = arith.divf %554, %555 : vector<1x128xf32>
    %557 = vector.extract_strided_slice %556 {offsets = [0, 0], sizes = [1, 32], strides = [1, 1]} : vector<1x128xf32> to vector<1x32xf32>
    %558 = vector.extract_strided_slice %556 {offsets = [0, 32], sizes = [1, 32], strides = [1, 1]} : vector<1x128xf32> to vector<1x32xf32>
    %559 = vector.extract_strided_slice %551 {offsets = [0, 64], sizes = [1, 32], strides = [1, 1]} : vector<1x128xf32> to vector<1x32xf32>
    %560 = vector.extract_strided_slice %551 {offsets = [0, 96], sizes = [1, 32], strides = [1, 1]} : vector<1x128xf32> to vector<1x32xf32>
    %561 = arith.mulf %557, %560 : vector<1x32xf32>
    %562 = arith.addf %559, %561 : vector<1x32xf32>
    %563 = math.tanh %562 : vector<1x32xf32>
    %cst_151 = arith.constant 1.000000e+00 : f32
    %564 = vector.broadcast %cst_151 : f32 to vector<1x32xf32>
    %565 = arith.subf %564, %558 : vector<1x32xf32>
    %566 = arith.mulf %565, %563 : vector<1x32xf32>
    %567 = arith.mulf %558, %513 : vector<1x32xf32>
    %568 = arith.addf %566, %567 : vector<1x32xf32>
    %cst_152 = arith.constant dense<0.000000e+00> : vector<1x128xf32>
    %569 = tpu.matmul %568, %217, %cst_152 {dimension_numbers = #tpu.dot_dimension_numbers<[1], [0], [0], [1], [0, 0, 1, 1], [], []>} : vector<1x32xf32>, vector<32x128xf32>, vector<1x128xf32> -> vector<1x128xf32>
    %570 = arith.addf %569, %218 : vector<1x128xf32>
    %cst_153 = arith.constant dense<0xFF800000> : vector<1xf32>
    %571 = vector.multi_reduction <maximumf>, %570, %cst_153 [1] : vector<1x128xf32> to vector<1xf32>
    %572 = vector.shape_cast %571 : vector<1xf32> to vector<1x1xf32>
    %573 = vector.broadcast %572 : vector<1x1xf32> to vector<1x128xf32>
    %574 = arith.subf %570, %573 : vector<1x128xf32>
    %575 = math.exp %574 : vector<1x128xf32>
    %cst_154 = arith.constant dense<0.000000e+00> : vector<1xf32>
    %576 = vector.multi_reduction <add>, %575, %cst_154 [1] : vector<1x128xf32> to vector<1xf32>
    %577 = vector.shape_cast %576 : vector<1xf32> to vector<1x1xf32>
    %578 = math.log %577 : vector<1x1xf32>
    %579 = arith.addf %572, %578 : vector<1x1xf32>
    %580 = vector.broadcast %579 : vector<1x1xf32> to vector<1x128xf32>
    %581 = arith.subf %570, %580 : vector<1x128xf32>
    %582 = vector.extract_strided_slice %250 {offsets = [6, 0], sizes = [1, 8], strides = [1, 1]} : vector<8x8xf32> to vector<1x8xf32>
    %583 = vector.extract_strided_slice %251 {offsets = [6, 0], sizes = [1, 32], strides = [1, 1]} : vector<8x32xf32> to vector<1x32xf32>
    %cst_155 = arith.constant dense<0.000000e+00> : vector<1x8xf32>
    %584 = tpu.matmul %568, %208, %cst_155 {dimension_numbers = #tpu.dot_dimension_numbers<[1], [0], [0], [1], [0, 0, 1, 1], [], []>} : vector<1x32xf32>, vector<32x8xf32>, vector<1x8xf32> -> vector<1x8xf32>
    %585 = arith.addf %582, %584 : vector<1x8xf32>
    %586 = arith.addf %585, %210 : vector<1x8xf32>
    %cst_156 = arith.constant dense<0xFF800000> : vector<1xf32>
    %587 = vector.multi_reduction <maximumf>, %586, %cst_156 [1] : vector<1x8xf32> to vector<1xf32>
    %588 = vector.shape_cast %587 : vector<1xf32> to vector<1x1xf32>
    %589 = vector.broadcast %588 : vector<1x1xf32> to vector<1x8xf32>
    %590 = arith.subf %586, %589 : vector<1x8xf32>
    %591 = math.exp %590 : vector<1x8xf32>
    %cst_157 = arith.constant dense<0.000000e+00> : vector<1xf32>
    %592 = vector.multi_reduction <add>, %591, %cst_157 [1] : vector<1x8xf32> to vector<1xf32>
    %593 = vector.shape_cast %592 : vector<1xf32> to vector<1x1xf32>
    %594 = tpu.reciprocal %593 {approx = true} : vector<1x1xf32> -> vector<1x1xf32>
    %595 = vector.broadcast %594 : vector<1x1xf32> to vector<1x8xf32>
    %596 = arith.mulf %591, %595 : vector<1x8xf32>
    %cst_158 = arith.constant dense<0.000000e+00> : vector<1x32xf32>
    %597 = tpu.matmul %596, %201, %cst_158 {dimension_numbers = #tpu.dot_dimension_numbers<[1], [0], [0], [1], [0, 0, 1, 1], [], []>} : vector<1x8xf32>, vector<8x32xf32>, vector<1x32xf32> -> vector<1x32xf32>
    %cst_159 = arith.constant dense<0.000000e+00> : vector<1x32xf32>
    %598 = tpu.matmul %597, %214, %cst_159 {dimension_numbers = #tpu.dot_dimension_numbers<[1], [0], [0], [1], [0, 0, 1, 1], [], []>} : vector<1x32xf32>, vector<32x32xf32>, vector<1x32xf32> -> vector<1x32xf32>
    %599 = arith.addf %583, %598 : vector<1x32xf32>
    %600 = arith.addf %599, %216 : vector<1x32xf32>
    %cst_160 = arith.constant 0.000000e+00 : f32
    %601 = vector.broadcast %cst_160 : f32 to vector<1x32xf32>
    %602 = arith.maximumf %600, %601 : vector<1x32xf32>
    %cst_161 = arith.constant dense<0.000000e+00> : vector<1x128xf32>
    %603 = tpu.matmul %602, %202, %cst_161 {dimension_numbers = #tpu.dot_dimension_numbers<[1], [0], [0], [1], [0, 0, 1, 1], [], []>} : vector<1x32xf32>, vector<32x128xf32>, vector<1x128xf32> -> vector<1x128xf32>
    %cst_162 = arith.constant dense<0.000000e+00> : vector<1x128xf32>
    %604 = tpu.matmul %568, %203, %cst_162 {dimension_numbers = #tpu.dot_dimension_numbers<[1], [0], [0], [1], [0, 0, 1, 1], [], []>} : vector<1x32xf32>, vector<32x128xf32>, vector<1x128xf32> -> vector<1x128xf32>
    %605 = arith.addf %603, %604 : vector<1x128xf32>
    %606 = arith.addf %605, %204 : vector<1x128xf32>
    %607 = arith.negf %606 : vector<1x128xf32>
    %608 = math.exp %607 : vector<1x128xf32>
    %cst_163 = arith.constant 1.000000e+00 : f32
    %609 = vector.broadcast %cst_163 : f32 to vector<1x128xf32>
    %610 = arith.addf %609, %608 : vector<1x128xf32>
    %611 = arith.divf %609, %610 : vector<1x128xf32>
    %612 = vector.extract_strided_slice %611 {offsets = [0, 0], sizes = [1, 32], strides = [1, 1]} : vector<1x128xf32> to vector<1x32xf32>
    %613 = vector.extract_strided_slice %611 {offsets = [0, 32], sizes = [1, 32], strides = [1, 1]} : vector<1x128xf32> to vector<1x32xf32>
    %614 = vector.extract_strided_slice %606 {offsets = [0, 64], sizes = [1, 32], strides = [1, 1]} : vector<1x128xf32> to vector<1x32xf32>
    %615 = vector.extract_strided_slice %606 {offsets = [0, 96], sizes = [1, 32], strides = [1, 1]} : vector<1x128xf32> to vector<1x32xf32>
    %616 = arith.mulf %612, %615 : vector<1x32xf32>
    %617 = arith.addf %614, %616 : vector<1x32xf32>
    %618 = math.tanh %617 : vector<1x32xf32>
    %cst_164 = arith.constant 1.000000e+00 : f32
    %619 = vector.broadcast %cst_164 : f32 to vector<1x32xf32>
    %620 = arith.subf %619, %613 : vector<1x32xf32>
    %621 = arith.mulf %620, %618 : vector<1x32xf32>
    %622 = arith.mulf %613, %568 : vector<1x32xf32>
    %623 = arith.addf %621, %622 : vector<1x32xf32>
    %cst_165 = arith.constant dense<0.000000e+00> : vector<1x128xf32>
    %624 = tpu.matmul %623, %217, %cst_165 {dimension_numbers = #tpu.dot_dimension_numbers<[1], [0], [0], [1], [0, 0, 1, 1], [], []>} : vector<1x32xf32>, vector<32x128xf32>, vector<1x128xf32> -> vector<1x128xf32>
    %625 = arith.addf %624, %218 : vector<1x128xf32>
    %cst_166 = arith.constant dense<0xFF800000> : vector<1xf32>
    %626 = vector.multi_reduction <maximumf>, %625, %cst_166 [1] : vector<1x128xf32> to vector<1xf32>
    %627 = vector.shape_cast %626 : vector<1xf32> to vector<1x1xf32>
    %628 = vector.broadcast %627 : vector<1x1xf32> to vector<1x128xf32>
    %629 = arith.subf %625, %628 : vector<1x128xf32>
    %630 = math.exp %629 : vector<1x128xf32>
    %cst_167 = arith.constant dense<0.000000e+00> : vector<1xf32>
    %631 = vector.multi_reduction <add>, %630, %cst_167 [1] : vector<1x128xf32> to vector<1xf32>
    %632 = vector.shape_cast %631 : vector<1xf32> to vector<1x1xf32>
    %633 = math.log %632 : vector<1x1xf32>
    %634 = arith.addf %627, %633 : vector<1x1xf32>
    %635 = vector.broadcast %634 : vector<1x1xf32> to vector<1x128xf32>
    %636 = arith.subf %625, %635 : vector<1x128xf32>
    %637 = vector.extract_strided_slice %250 {offsets = [7, 0], sizes = [1, 8], strides = [1, 1]} : vector<8x8xf32> to vector<1x8xf32>
    %638 = vector.extract_strided_slice %251 {offsets = [7, 0], sizes = [1, 32], strides = [1, 1]} : vector<8x32xf32> to vector<1x32xf32>
    %cst_168 = arith.constant dense<0.000000e+00> : vector<1x8xf32>
    %639 = tpu.matmul %623, %208, %cst_168 {dimension_numbers = #tpu.dot_dimension_numbers<[1], [0], [0], [1], [0, 0, 1, 1], [], []>} : vector<1x32xf32>, vector<32x8xf32>, vector<1x8xf32> -> vector<1x8xf32>
    %640 = arith.addf %637, %639 : vector<1x8xf32>
    %641 = arith.addf %640, %210 : vector<1x8xf32>
    %cst_169 = arith.constant dense<0xFF800000> : vector<1xf32>
    %642 = vector.multi_reduction <maximumf>, %641, %cst_169 [1] : vector<1x8xf32> to vector<1xf32>
    %643 = vector.shape_cast %642 : vector<1xf32> to vector<1x1xf32>
    %644 = vector.broadcast %643 : vector<1x1xf32> to vector<1x8xf32>
    %645 = arith.subf %641, %644 : vector<1x8xf32>
    %646 = math.exp %645 : vector<1x8xf32>
    %cst_170 = arith.constant dense<0.000000e+00> : vector<1xf32>
    %647 = vector.multi_reduction <add>, %646, %cst_170 [1] : vector<1x8xf32> to vector<1xf32>
    %648 = vector.shape_cast %647 : vector<1xf32> to vector<1x1xf32>
    %649 = tpu.reciprocal %648 {approx = true} : vector<1x1xf32> -> vector<1x1xf32>
    %650 = vector.broadcast %649 : vector<1x1xf32> to vector<1x8xf32>
    %651 = arith.mulf %646, %650 : vector<1x8xf32>
    %cst_171 = arith.constant dense<0.000000e+00> : vector<1x32xf32>
    %652 = tpu.matmul %651, %201, %cst_171 {dimension_numbers = #tpu.dot_dimension_numbers<[1], [0], [0], [1], [0, 0, 1, 1], [], []>} : vector<1x8xf32>, vector<8x32xf32>, vector<1x32xf32> -> vector<1x32xf32>
    %cst_172 = arith.constant dense<0.000000e+00> : vector<1x32xf32>
    %653 = tpu.matmul %652, %214, %cst_172 {dimension_numbers = #tpu.dot_dimension_numbers<[1], [0], [0], [1], [0, 0, 1, 1], [], []>} : vector<1x32xf32>, vector<32x32xf32>, vector<1x32xf32> -> vector<1x32xf32>
    %654 = arith.addf %638, %653 : vector<1x32xf32>
    %655 = arith.addf %654, %216 : vector<1x32xf32>
    %cst_173 = arith.constant 0.000000e+00 : f32
    %656 = vector.broadcast %cst_173 : f32 to vector<1x32xf32>
    %657 = arith.maximumf %655, %656 : vector<1x32xf32>
    %cst_174 = arith.constant dense<0.000000e+00> : vector<1x128xf32>
    %658 = tpu.matmul %657, %202, %cst_174 {dimension_numbers = #tpu.dot_dimension_numbers<[1], [0], [0], [1], [0, 0, 1, 1], [], []>} : vector<1x32xf32>, vector<32x128xf32>, vector<1x128xf32> -> vector<1x128xf32>
    %cst_175 = arith.constant dense<0.000000e+00> : vector<1x128xf32>
    %659 = tpu.matmul %623, %203, %cst_175 {dimension_numbers = #tpu.dot_dimension_numbers<[1], [0], [0], [1], [0, 0, 1, 1], [], []>} : vector<1x32xf32>, vector<32x128xf32>, vector<1x128xf32> -> vector<1x128xf32>
    %660 = arith.addf %658, %659 : vector<1x128xf32>
    %661 = arith.addf %660, %204 : vector<1x128xf32>
    %662 = arith.negf %661 : vector<1x128xf32>
    %663 = math.exp %662 : vector<1x128xf32>
    %cst_176 = arith.constant 1.000000e+00 : f32
    %664 = vector.broadcast %cst_176 : f32 to vector<1x128xf32>
    %665 = arith.addf %664, %663 : vector<1x128xf32>
    %666 = arith.divf %664, %665 : vector<1x128xf32>
    %667 = vector.extract_strided_slice %666 {offsets = [0, 0], sizes = [1, 32], strides = [1, 1]} : vector<1x128xf32> to vector<1x32xf32>
    %668 = vector.extract_strided_slice %666 {offsets = [0, 32], sizes = [1, 32], strides = [1, 1]} : vector<1x128xf32> to vector<1x32xf32>
    %669 = vector.extract_strided_slice %661 {offsets = [0, 64], sizes = [1, 32], strides = [1, 1]} : vector<1x128xf32> to vector<1x32xf32>
    %670 = vector.extract_strided_slice %661 {offsets = [0, 96], sizes = [1, 32], strides = [1, 1]} : vector<1x128xf32> to vector<1x32xf32>
    %671 = arith.mulf %667, %670 : vector<1x32xf32>
    %672 = arith.addf %669, %671 : vector<1x32xf32>
    %673 = math.tanh %672 : vector<1x32xf32>
    %cst_177 = arith.constant 1.000000e+00 : f32
    %674 = vector.broadcast %cst_177 : f32 to vector<1x32xf32>
    %675 = arith.subf %674, %668 : vector<1x32xf32>
    %676 = arith.mulf %675, %673 : vector<1x32xf32>
    %677 = arith.mulf %668, %623 : vector<1x32xf32>
    %678 = arith.addf %676, %677 : vector<1x32xf32>
    %cst_178 = arith.constant dense<0.000000e+00> : vector<1x128xf32>
    %679 = tpu.matmul %678, %217, %cst_178 {dimension_numbers = #tpu.dot_dimension_numbers<[1], [0], [0], [1], [0, 0, 1, 1], [], []>} : vector<1x32xf32>, vector<32x128xf32>, vector<1x128xf32> -> vector<1x128xf32>
    %680 = arith.addf %679, %218 : vector<1x128xf32>
    %cst_179 = arith.constant dense<0xFF800000> : vector<1xf32>
    %681 = vector.multi_reduction <maximumf>, %680, %cst_179 [1] : vector<1x128xf32> to vector<1xf32>
    %682 = vector.shape_cast %681 : vector<1xf32> to vector<1x1xf32>
    %683 = vector.broadcast %682 : vector<1x1xf32> to vector<1x128xf32>
    %684 = arith.subf %680, %683 : vector<1x128xf32>
    %685 = math.exp %684 : vector<1x128xf32>
    %cst_180 = arith.constant dense<0.000000e+00> : vector<1xf32>
    %686 = vector.multi_reduction <add>, %685, %cst_180 [1] : vector<1x128xf32> to vector<1xf32>
    %687 = vector.shape_cast %686 : vector<1xf32> to vector<1x1xf32>
    %688 = math.log %687 : vector<1x1xf32>
    %689 = arith.addf %682, %688 : vector<1x1xf32>
    %690 = vector.broadcast %689 : vector<1x1xf32> to vector<1x128xf32>
    %691 = arith.subf %680, %690 : vector<1x128xf32>
    %692 = tpu.concatenate %306, %361, %416, %471, %526, %581, %636, %691 in 0 : vector<1x128xf32>, vector<1x128xf32>, vector<1x128xf32>, vector<1x128xf32>, vector<1x128xf32>, vector<1x128xf32>, vector<1x128xf32>, vector<1x128xf32> -> vector<8x128xf32>
    %c0_181 = arith.constant 0 : index
    %c0_182 = arith.constant 0 : index
    %693 = vector.load %arg4[%c0_181, %c0_182] : memref<8x128xf32, #tpu.memory_space<vmem>>, vector<8x128xf32>
    tpu.vector_store %arg4[%c0_181, %c0_182], %692 {strides = array<i32>} : memref<8x128xf32, #tpu.memory_space<vmem>>, vector<8x128xf32>,
    return
  }
  func.func @transform_0(%arg0: i32, %arg1: memref<8xi32, #tpu.memory_space<smem>>, %arg2: memref<8xi32, #tpu.memory_space<smem>>) -> (i32, i32) {
    %c0_i32 = arith.constant 0 : i32
    %c0_i32_0 = arith.constant 0 : i32
    %c0_i32_1 = arith.constant 0 : i32
    return %c0_i32, %c0_i32_0 : i32, i32
  }
  func.func @transform_1(%arg0: i32, %arg1: memref<8xi32, #tpu.memory_space<smem>>, %arg2: memref<8xi32, #tpu.memory_space<smem>>) -> (i32, i32) {
    %c0_i32 = arith.constant 0 : i32
    %c0_i32_0 = arith.constant 0 : i32
    %c0_i32_1 = arith.constant 0 : i32
    return %c0_i32, %c0_i32_0 : i32, i32
  }
}

</mosaic_0001>

<bundles_post_ra>
// kernel: tpu_custom_call.1
= control target key start
LH: loop header
LB: loop body
LE: loop exit
PB: predicated region body
PF: predicated region fallthrough
CT: control target
= control target key end

     0   :  { %s6576_s12 = smov [#allocation3]   ;;  %s7646_s0 = inlined_call_operand.hbm [shape: s32[8], index: 0, kind: input, shape index: {}]   ;;  %s7647_s2 = inlined_call_operand.hbm [shape: f32[328,128], index: 2, kind: input, shape index: {}]   ;;  %s7648_s3 = inlined_call_operand.hbm [shape: f32[8,128], index: 3, kind: output, shape index: {}]   ;;  %s7649_s1 = inlined_call_operand.vmem [shape: s32[8], index: 1, kind: input, shape index: {}]  }
   0x1   :  { %9 = dma.hbm_to_smem %s7646_s0, 16, %s6576_s12, [#allocation2] }
   0x2   :  { %s10_s17 = sshll.u32 %s7649_s1, 4  ;;  %s11_s17 = int_to_ptr.vmem [resolvable:$true] %s10_s17 }
   0x3   :  { %s6518_s18 = scalar_lea.vmem %s11_s17, 16  ;;  %p6523_p1 = scmp.lt.s32.totalorder %s11_s17, %s11_s17 }
   0x4   :  { %p6519_p0 = scmp.ne.s32.totalorder %s11_s17, %s6518_s18  ;;  %p6524_p2 = scmp.lt.s32.totalorder %s6518_s18, %s6518_s18 }
   0x6   :  { %p6525_p3 = por %p6524_p2, %p6523_p1 }
   0x8   :  { %p6526_p4 = pnand %p6525_p3, %p6519_p0 }
   0xa   :  { %6529 = shalt.err (!%p6526_p4)  }
   0xb   :  { %s6577_s19 = smov [#allocation4]  }
   0xc   :  { %13 = dma.vmem_to_smem %s11_s17, 16, %s6577_s19, [#allocation2] }
   0xd   :  { %6570 = dma.done.wait [#allocation2], 32 }
   0xe   :  { %6571 = vsyncadd [#allocation2], 4294967264 }
   0xf   :  { %15 = sfence }
  0x10   :  { %16 = vsyncpa [#allocation6], 0 }
  0x11   :  { %17 = vsyncpa [#allocation7], 0  ;;  %s6578_s0 = smov [#allocation5]  }
  0x12   :  { %s23_s20 = sshll.u32 %s6578_s0, 4  ;;  %s24_s20 = int_to_ptr.vmem [resolvable:$true] %s23_s20 }
  0x13   :  { %s6538_s21 = scalar_lea.vmem %s24_s20, 5248  ;;  %p6543_p6 = scmp.lt.s32.totalorder %s24_s20, %s24_s20 }
  0x14   :  { %p6539_p5 = scmp.ne.s32.totalorder %s24_s20, %s6538_s21  ;;  %p6544_p7 = scmp.lt.s32.totalorder %s6538_s21, %s6538_s21 }
  0x16   :  { %p6545_p8 = por %p6544_p7, %p6543_p6 }
  0x18   :  { %p6546_p9 = pnand %p6545_p8, %p6539_p5 }
  0x1a   :  { %6549 = shalt.err (!%p6546_p9)
}
  0x1b   :  { %s6579_s1 = smov 128   ;;  %s6580_s22 = smov 8  }
  0x1c   :  { %29 = dma.hbm_to_vmem [thread:$0]  %s7647_s2, 5248, %s24_s20, [#allocation6], %s6579_s1, %s6579_s1, %s6580_s22  }
  0x1d   :  { %6572 = dma.done.wait [#allocation6], 5248  }
  0x1e   :  { %6573 = vsyncadd [#allocation6], 4294962048  ;;  %v6581_v0 = vmov 0.0   ;;  %s33_s25 = sld [smem:[#allocation3]]  ;;  %vm6582_vm0 = vmmov 0   ;;  %v95_v1 = vld [vmem:[#allocation5 + $0x38] sm:$0xff] }
  0x1f   :  { %5715 = vmatprep.subr.mxu0 %v6581_v0  ;;  %5726 = vmatprep.subr.mxu1 %v6581_v0  ;;  %s5349_s26 = sld [smem:[#allocation3 + $0x1]]  ;;  %v6628_v2 = vld [vmem:[#allocation5 + $0x58] sm:$0xff]  ;;  %v94_v3 = vld [vmem:[#allocation5 + $0x30] sm:$0xff]  ;;  %vm78_vm1 = vcmask 1040384   ;;  %v93_v5 = vld [vmem:[#allocation5 + $0x28] sm:$0xff]  ;;  %vm80_vm2 = vcmask 1041408  }
  0x20   :  { %5723 = vmatprep.mubr.msk.f32.mxu0 %vm6582_vm0, %v6581_v0  ;;  %5734 = vmatprep.mubr.msk.f32.mxu1 %vm6582_vm0, %v6581_v0  ;;  %s5350_s27 = sld [smem:[#allocation3 + $0x2]]  ;;  %v6633_v4 = vld [vmem:[#allocation5 + $0x50] sm:$0xff]  ;;  %v6639_v6 = vld [vmem:[#allocation5 + $0x48] sm:$0xff]  ;;  %v92_v8 = vld [vmem:[#allocation5 + $0x20] sm:$0xff]  ;;  %vm82_vm3 = vcmask 1042432   ;;  %vm84_vm4 = vcmask 1043456  }
  0x21   :  { %s6622_s28 = sld [smem:[#allocation3 + $0x3]]  ;;  %5716 = vmatpush3.msra.mxu0 %v95_v1  ;;  %5727 = vmatpush3.msra.mxu1 %v6628_v2  ;;  %v6644_v11 = vld [vmem:[#allocation5 + $0x40] sm:$0xff]  ;;  %vm86_vm5 = vcmask 1044480   ;;  %vm88_vm6 = vcmask 1045504   ;;  %vm90_vm7 = vcmask 1046528   ;;  %vm105_vm8 = vcmask 261120  }
  0x22   :  { %s6624_s2 = sld [smem:[#allocation3 + $0x4]]  ;;  %5717 = vmatprep.subr.mxu0 %v6581_v0  ;;  %5728 = vmatprep.subr.mxu1 %v6581_v0  ;;  %v5356_v33 = vld [vmem:[#allocation5 + $0x140] ss:$0 sm:$0xff]  ;;  %s6583_s13 = smov 32   ;;  %vm1343_vm9 = vcmask 57344   ;;  %vm1359_vm10 = vcmask 64512  }
  0x23   :  { %s6626_s29 = sld [smem:[#allocation3 + $0x5]]  ;;  %5718 = vmatpush3.msra.mxu0 %v94_v3  ;;  %5729 = vmatpush3.msra.mxu1 %v6633_v4  ;;  %s6584_s14 = smov 64   ;;  %vm1845_vm11 = vcmask 58369   ;;  %vm2348_vm12 = vcmask 59394   ;;  %vm2850_vm13 = vcmask 60419   ;;  %vm3352_vm14 = vcmask 61444  }
  0x24   :  { %s6630_s30 = sld [smem:[#allocation3 + $0x6]]  ;;  %s34_s5 = scalar_lea.vmem [#allocation5], %s33_s25  ;;  %5719 = vmatprep.subr.mxu0 %v6581_v0  ;;  %5730 = vmatprep.subr.mxu1 %v6581_v0  ;;  %vm3854_vm15 = vcmask 62469  }
  0x25   :  { %s6635_s4 = sld [smem:[#allocation3 + $0x7]]  ;;  %v35_v7 = vld [vmem:[%s34_s5] sm:$0x1]  ;;  %s37_s6 = scalar_lea.vmem [#allocation5], %s5349_s26  ;;  %5720 = vmatpush3.msra.mxu0 %v93_v5  ;;  %5731 = vmatpush3.msra.mxu1 %v6639_v6 }
  0x26   :  { %v38_v9 = vld [vmem:[%s37_s6] sm:$0x1]  ;;  %s40_s7 = scalar_lea.vmem [#allocation5], %s5350_s27  ;;  %5721 = vmatprep.subr.mxu0 %v6581_v0  ;;  %5732 = vmatprep.subr.mxu1 %v6581_v0  ;;  %s6585_s15 = smov 96  }
  0x27   :  { %v41_v10 = vld [vmem:[%s40_s7] sm:$0x1]  ;;  %s43_s8 = scalar_lea.vmem [#allocation5], %s6622_s28  ;;  %v58_v13 = vrot.slane %v38_v9, 7  ;;  %5722 = vmatpush3.msra.mxu0 %v92_v8  ;;  %5733 = vmatpush3.msra.mxu1 %v6644_v11  ;;  %s1066_s16 = sld [smem:[#allocation4]] }
  0x28   :  { %v44_v12 = vld [vmem:[%s43_s8] sm:$0x1]  ;;  %v61_v14 = vrot.slane %v41_v10, 6  ;;  %s46_s9 = scalar_lea.vmem [#allocation5], %s6624_s2  ;;  %5735 = vmatmul.mubr.f32.vlgmr.msra.gmra.mxu1 %v6581_v0  ;;  %5737 = vmatprep.subr.mxu0 %v6581_v0  ;;  %s5374_s17 = sld [smem:[#allocation4 + $0x1]] }
  0x29   :  { %v47_v15 = vld [vmem:[%s46_s9] sm:$0x1]  ;;  %v64_v16 = vrot.slane %v44_v12, 5  ;;  %s49_s10 = scalar_lea.vmem [#allocation5], %s6626_s29  ;;  %v79_v19 = vsel %vm78_vm1, %v35_v7, %v58_v13  ;;  %5748 = vmatprep.subr.mxu1 %v6581_v0  ;;  %5756 = vmatprep.mubr.msk.f32.mxu1 %vm6582_vm0, %v6581_v0  ;;  %s5376_s18 = sld [smem:[#allocation4 + $0x2]] }
  0x2a   :  { %v50_v17 = vld [vmem:[%s49_s10] sm:$0x1]  ;;  %v67_v18 = vrot.slane %v47_v15, 4  ;;  %s52_s11 = scalar_lea.vmem [#allocation5], %s6630_s30  ;;  %v81_v22 = vsel %vm80_vm2, %v79_v19, %v61_v14  ;;  %5749 = vmatpush3.msra.mxu1 %v6628_v2  ;;  %s5378_s19 = sld [smem:[#allocation4 + $0x3]] }
  0x2b   :  { %v53_v20 = vld [vmem:[%s52_s11] sm:$0x1]  ;;  %v70_v21 = vrot.slane %v50_v17, 3  ;;  %s55_s12 = scalar_lea.vmem [#allocation5], %s6635_s4  ;;  %v83_v25 = vsel %vm82_vm3, %v81_v22, %v64_v16  ;;  %5750 = vmatprep.subr.mxu1 %v6581_v0  ;;  %s5380_s0 = sld [smem:[#allocation4 + $0x4]] }
  0x2c   :  { %v56_v23 = vld [vmem:[%s55_s12] sm:$0x1]  ;;  %v73_v24 = vrot.slane %v53_v20, 2  ;;  %v85_v27 = vsel %vm84_vm4, %v83_v25, %v67_v18  ;;  %5751 = vmatpush3.msra.mxu1 %v6633_v4  ;;  %s5382_s20 = sld [smem:[#allocation4 + $0x5]]  ;;  %s6586_s28 = smov [#allocation8]  }
  0x2d   :  { %v76_v26 = vrot.slane %v56_v23, 1  ;;  %v87_v28 = vsel %vm86_vm5, %v85_v27, %v70_v21  ;;  %5752 = vmatprep.subr.mxu1 %v6581_v0  ;;  %s5384_s21 = sld [smem:[#allocation4 + $0x6]]  ;;  %s5335_s1 = scalar_lea.vmem [#allocation5], %s1066_s16 }
  0x2e   :  { %v89_v29 = vsel %vm88_vm6, %v87_v28, %v73_v24  ;;  %5753 = vmatpush3.msra.mxu1 %v6639_v6  ;;  %s5337_s22 = scalar_lea.vmem [#allocation5], %s5374_s17  ;;  %s5318_s2 = sshll.u32 %s6586_s28, 4  ;;  %s5319_s2 = int_to_ptr.vmem [resolvable:$true] %s5318_s2 }
  0x2f   :  { %v91_v30 = vsel %vm90_vm7, %v89_v29, %v76_v26  ;;  %5754 = vmatprep.subr.mxu1 %v6581_v0  ;;  %s5339_s23 = scalar_lea.vmem [#allocation5], %s5376_s18  ;;  %s6550_s29 = scalar_lea.vmem %s5319_s2, 128 }
  0x30   :  { %5724 = vmatmul.mubr.msk.f32.vlgmr.msra.gmra.mxu0 %vm105_vm8, %v91_v30  ;;  %5755 = vmatpush3.msra.mxu1 %v6644_v11  ;;  %s5341_s24 = scalar_lea.vmem [#allocation5], %s5378_s19  ;;  %p6551_p10 = scmp.ne.s32.totalorder %s5319_s2, %s6550_s29 }
  0x31   :  { %5738 = vmatpush3.msra.mxu0 %v6628_v2  ;;  %5745 = vmatprep.mubr.msk.f32.mxu0 %vm6582_vm0, %v6581_v0  ;;  %s5343_s25 = scalar_lea.vmem [#allocation5], %s5380_s0  ;;  %p6555_p11 = scmp.lt.s32.totalorder %s5319_s2, %s5319_s2 }
  0x32   :  { %5739 = vmatprep.subr.mxu0 %v6581_v0  ;;  %5770 = vmatprep.subr.mxu1 %v6581_v0  ;;  %s5345_s26 = scalar_lea.vmem [#allocation5], %s5382_s20  ;;  %p6556_p12 = scmp.lt.s32.totalorder %s6550_s29, %s6550_s29 }
  0x33   :  { %5740 = vmatpush3.msra.mxu0 %v6633_v4  ;;  %s5347_s27 = scalar_lea.vmem [#allocation5], %s5384_s21 }
  0x34   :  { %5741 = vmatprep.subr.mxu0 %v6581_v0  ;;  %p6557_p13 = por %p6556_p12, %p6555_p11 }
  0x35   :  { %5742 = vmatpush3.msra.mxu0 %v6639_v6 }
  0x36   :  { %5743 = vmatprep.subr.mxu0 %v6581_v0  ;;  %p6558_p0 = pnand %p6557_p13, %p6551_p10 }
  0x37   :  { %5744 = vmatpush3.msra.mxu0 %v6644_v11 }
  0x38   :  { %5759 = vmatprep.subr.mxu0 %v6581_v0 }
  0xe8   :  { %v248_v31 = vpop.f32.mrf.mxu1 }
  0xea   :  { %v5736_v32 = vpop.f32.mrf.mxu1 }
  0xf0   :  { %v175_v34 = vpop.f32.mrf.mxu0 }
  0xf1   :  { %v6686_v35 = vadd.f32 %v5356_v33, %v175_v34 }
  0xf2   :  { %v5725_v36 = vpop.f32.mrf.mxu0 }
  0xf3   :  { %v252_v37 = vadd.f32 %v248_v31, %v6686_v35 }
  0xf5   :  { %260 = vrot.lane.b32.xlu0 %v252_v37, %s6583_s13  ;;  %v5358_v38 = vmul.f32 -1.442695, %v252_v37 }
  0xf7   :  { %6327 = vpow2.f32 %v5358_v38 }
 0x104   :  { %v6328_v39 = vpop.eup %6327 }
 0x105   :  { %v256_v40 = vadd.f32 1.0, %v6328_v39 }
 0x107   :  { %6329 = vrcp.f32 %v256_v40 }
 0x114   :  { %v6330_v41 = vpop.eup %6329 }
 0x115   :  { %v270_v47 = vsub.f32 1.0, %v6330_v41  ;;  %v276_v49 = vmul.f32 0.0, %v6330_v41 }
 0x167   :  { %v261_v42 = vpop.permute.xlu0 %260 }
 0x168   :  { %v263_v43 = vmul.f32 %v6330_v41, %v261_v42 }
 0x16a   :  { %265 = vrot.lane.b32.xlu0 %v263_v43, %s6584_s14 }
 0x1dc   :  { %v266_v44 = vpop.permute.xlu0 %265 }
 0x1dd   :  { %v268_v45 = vadd.f32 %v266_v44, %v252_v37 }
 0x1df   :  { %6331 = vtanh.f32 %v268_v45 }
 0x1ec   :  { %v6332_v46 = vpop.eup %6331 }
 0x1ed   :  { %272 = vrot.lane.b32.xlu1 %v6332_v46, %s6585_s15 }
 0x25f   :  { %v273_v48 = vpop.permute.xlu1 %272 }
 0x260   :  { %v275_v50 = vmul.f32 %v273_v48, %v270_v47 }
 0x262   :  { %v6692_v51 = vadd.f32 %v276_v49, %v275_v50 }
 0x264   :  { %279 = vrot.lane.b32.xlu1 %v6692_v51, %s6585_s15  ;;  %v380_v7 = vrot.slane %v6692_v51, 7 }
 0x2d6   :  { %v280_v52 = vpop.permute.xlu1 %279 }
 0x2d7   :  { %5746 = vmatmul.mubr.msk.f32.vlgmr.msra.gmra.mxu0 %vm105_vm8, %v280_v52 }
 0x2d8   :  { %5760 = vmatpush3.msra.mxu0 %v6628_v2  ;;  %5767 = vmatprep.mubr.msk.f32.mxu0 %vm6582_vm0, %v6581_v0 }
 0x2d9   :  { %5761 = vmatprep.subr.mxu0 %v6581_v0 }
 0x2da   :  { %5762 = vmatpush3.msra.mxu0 %v6633_v4 }
 0x2db   :  { %5763 = vmatprep.subr.mxu0 %v6581_v0 }
 0x2dc   :  { %5764 = vmatpush3.msra.mxu0 %v6639_v6 }
 0x2dd   :  { %5765 = vmatprep.subr.mxu0 %v6581_v0 }
 0x2de   :  { %5766 = vmatpush3.msra.mxu0 %v6644_v11 }
 0x2df   :  { %5781 = vmatprep.subr.mxu0 %v6581_v0 }
 0x397   :  { %v349_v53 = vpop.f32.mrf.mxu0 }
 0x398   :  { %v354_v54 = vrot.slane %v349_v53, 7 }
 0x399   :  { %v5747_v55 = vpop.f32.mrf.mxu0 }
 0x39a   :  { %v356_v56 = vadd.f32 %v354_v54, %v6686_v35 }
 0x39c   :  { %364 = vrot.lane.b32.xlu0 %v356_v56, %s6583_s13  ;;  %v5360_v57 = vmul.f32 -1.442695, %v356_v56 }
 0x39e   :  { %6333 = vpow2.f32 %v5360_v57 }
 0x3ab   :  { %v6334_v58 = vpop.eup %6333 }
 0x3ac   :  { %v360_v59 = vadd.f32 1.0, %v6334_v58 }
 0x3ae   :  { %6335 = vrcp.f32 %v360_v59 }
 0x3bb   :  { %v6336_v60 = vpop.eup %6335 }
 0x3bc   :  { %v374_v5 = vsub.f32 1.0, %v6336_v60  ;;  %v382_v9 = vmul.f32 %v6336_v60, %v380_v7 }
 0x40e   :  { %v365_v61 = vpop.permute.xlu0 %364 }
 0x40f   :  { %v367_v62 = vmul.f32 %v6336_v60, %v365_v61 }
 0x411   :  { %369 = vrot.lane.b32.xlu1 %v367_v62, %s6584_s14 }
 0x483   :  { %v370_v63 = vpop.permute.xlu1 %369 }
 0x484   :  { %v372_v1 = vadd.f32 %v370_v63, %v356_v56 }
 0x486   :  { %6337 = vtanh.f32 %v372_v1 }
 0x493   :  { %v6338_v3 = vpop.eup %6337 }
 0x494   :  { %376 = vrot.lane.b32.xlu0 %v6338_v3, %s6585_s15 }
 0x506   :  { %v377_v8 = vpop.permute.xlu0 %376 }
 0x507   :  { %v379_v10 = vmul.f32 %v377_v8, %v374_v5 }
 0x509   :  { %v383_v12 = vadd.f32 %v382_v9, %v379_v10 }
 0x50b   :  { %v385_v13 = vrot.slane %v383_v12, 1  ;;  %v487_v29 = vrot.slane %v383_v12, 7  ;;  %v1026_v34 = vsel %vm78_vm1, %v6692_v51, %v383_v12 }
 0x50d   :  { %386 = vrot.lane.b32.xlu1 %v385_v13, %s6585_s15 }
 0x57f   :  { %v387_v14 = vpop.permute.xlu1 %386 }
 0x580   :  { %5757 = vmatmul.mubr.msk.f32.vlgmr.msra.gmra.mxu1 %vm105_vm8, %v387_v14 }
 0x581   :  { %5771 = vmatpush3.msra.mxu1 %v6628_v2  ;;  %5778 = vmatprep.mubr.msk.f32.mxu1 %vm6582_vm0, %v6581_v0 }
 0x582   :  { %5772 = vmatprep.subr.mxu1 %v6581_v0 }
 0x583   :  { %5773 = vmatpush3.msra.mxu1 %v6633_v4 }
 0x584   :  { %5774 = vmatprep.subr.mxu1 %v6581_v0 }
 0x585   :  { %5775 = vmatpush3.msra.mxu1 %v6639_v6 }
 0x586   :  { %5776 = vmatprep.subr.mxu1 %v6581_v0 }
 0x587   :  { %5777 = vmatpush3.msra.mxu1 %v6644_v11 }
 0x588   :  { %5792 = vmatprep.subr.mxu1 %v6581_v0 }
 0x640   :  { %v456_v15 = vpop.f32.mrf.mxu1 }
 0x641   :  { %v461_v16 = vrot.slane %v456_v15, 6 }
 0x642   :  { %v5758_v17 = vpop.f32.mrf.mxu1 }
 0x643   :  { %v463_v18 = vadd.f32 %v461_v16, %v6686_v35 }
 0x645   :  { %471 = vrot.lane.b32.xlu0 %v463_v18, %s6583_s13  ;;  %v5362_v19 = vmul.f32 -1.442695, %v463_v18 }
 0x647   :  { %6339 = vpow2.f32 %v5362_v19 }
 0x654   :  { %v6340_v20 = vpop.eup %6339 }
 0x655   :  { %v467_v21 = vadd.f32 1.0, %v6340_v20 }
 0x657   :  { %6341 = vrcp.f32 %v467_v21 }
 0x664   :  { %v6342_v22 = vpop.eup %6341 }
 0x665   :  { %v481_v28 = vsub.f32 1.0, %v6342_v22  ;;  %v489_v31 = vmul.f32 %v6342_v22, %v487_v29 }
 0x6b7   :  { %v472_v23 = vpop.permute.xlu0 %471 }
 0x6b8   :  { %v474_v24 = vmul.f32 %v6342_v22, %v472_v23 }
 0x6ba   :  { %476 = vrot.lane.b32.xlu1 %v474_v24, %s6584_s14 }
 0x72c   :  { %v477_v25 = vpop.permute.xlu1 %476 }
 0x72d   :  { %v479_v26 = vadd.f32 %v477_v25, %v463_v18 }
 0x72f   :  { %6343 = vtanh.f32 %v479_v26 }
 0x73c   :  { %v6344_v27 = vpop.eup %6343 }
 0x73d   :  { %483 = vrot.lane.b32.xlu0 %v6344_v27, %s6585_s15 }
 0x7af   :  { %v484_v30 = vpop.permute.xlu0 %483 }
 0x7b0   :  { %v486_v32 = vmul.f32 %v484_v30, %v481_v28 }
 0x7b2   :  { %v490_v33 = vadd.f32 %v489_v31, %v486_v32 }
 0x7b4   :  { %v1027_v36 = vsel %vm80_vm2, %v1026_v34, %v490_v33  ;;  %v492_v37 = vrot.slane %v490_v33, 2  ;;  %v594_v53 = vrot.slane %v490_v33, 7 }
 0x7b6   :  { %493 = vrot.lane.b32.xlu1 %v492_v37, %s6585_s15 }
 0x828   :  { %v494_v38 = vpop.permute.xlu1 %493 }
 0x829   :  { %5768 = vmatmul.mubr.msk.f32.vlgmr.msra.gmra.mxu0 %vm105_vm8, %v494_v38 }
 0x82a   :  { %5782 = vmatpush3.msra.mxu0 %v6628_v2  ;;  %5789 = vmatprep.mubr.msk.f32.mxu0 %vm6582_vm0, %v6581_v0 }
 0x82b   :  { %5783 = vmatprep.subr.mxu0 %v6581_v0 }
 0x82c   :  { %5784 = vmatpush3.msra.mxu0 %v6633_v4 }
 0x82d   :  { %5785 = vmatprep.subr.mxu0 %v6581_v0 }
 0x82e   :  { %5786 = vmatpush3.msra.mxu0 %v6639_v6 }
 0x82f   :  { %5787 = vmatprep.subr.mxu0 %v6581_v0 }
 0x830   :  { %5788 = vmatpush3.msra.mxu0 %v6644_v11 }
 0x831   :  { %5803 = vmatprep.subr.mxu0 %v6581_v0 }
 0x8e9   :  { %v563_v39 = vpop.f32.mrf.mxu0 }
 0x8ea   :  { %v568_v40 = vrot.slane %v563_v39, 5 }
 0x8eb   :  { %v5769_v41 = vpop.f32.mrf.mxu0 }
 0x8ec   :  { %v570_v42 = vadd.f32 %v568_v40, %v6686_v35 }
 0x8ee   :  { %578 = vrot.lane.b32.xlu0 %v570_v42, %s6583_s13  ;;  %v5364_v43 = vmul.f32 -1.442695, %v570_v42 }
 0x8f0   :  { %6345 = vpow2.f32 %v5364_v43 }
 0x8fd   :  { %v6346_v44 = vpop.eup %6345 }
 0x8fe   :  { %v574_v45 = vadd.f32 1.0, %v6346_v44 }
 0x900   :  { %6347 = vrcp.f32 %v574_v45 }
 0x90d   :  { %v6348_v46 = vpop.eup %6347 }
 0x90e   :  { %v588_v52 = vsub.f32 1.0, %v6348_v46  ;;  %v596_v55 = vmul.f32 %v6348_v46, %v594_v53 }
 0x960   :  { %v579_v47 = vpop.permute.xlu0 %578 }
 0x961   :  { %v581_v48 = vmul.f32 %v6348_v46, %v579_v47 }
 0x963   :  { %583 = vrot.lane.b32.xlu1 %v581_v48, %s6584_s14 }
 0x9d5   :  { %v584_v49 = vpop.permute.xlu1 %583 }
 0x9d6   :  { %v586_v50 = vadd.f32 %v584_v49, %v570_v42 }
 0x9d8   :  { %6349 = vtanh.f32 %v586_v50 }
 0x9e5   :  { %v6350_v51 = vpop.eup %6349 }
 0x9e6   :  { %590 = vrot.lane.b32.xlu0 %v6350_v51, %s6585_s15 }
 0xa58   :  { %v591_v54 = vpop.permute.xlu0 %590 }
 0xa59   :  { %v593_v56 = vmul.f32 %v591_v54, %v588_v52 }
 0xa5b   :  { %v597_v57 = vadd.f32 %v596_v55, %v593_v56 }
 0xa5d   :  { %v1028_v58 = vsel %vm82_vm3, %v1027_v36, %v597_v57  ;;  %v599_v59 = vrot.slane %v597_v57, 3  ;;  %v701_v16 = vrot.slane %v597_v57, 7 }
 0xa5f   :  { %600 = vrot.lane.b32.xlu1 %v599_v59, %s6585_s15 }
 0xad1   :  { %v601_v60 = vpop.permute.xlu1 %600 }
 0xad2   :  { %5779 = vmatmul.mubr.msk.f32.vlgmr.msra.gmra.mxu1 %vm105_vm8, %v601_v60 }
 0xad3   :  { %5793 = vmatpush3.msra.mxu1 %v6628_v2  ;;  %5800 = vmatprep.mubr.msk.f32.mxu1 %vm6582_vm0, %v6581_v0 }
 0xad4   :  { %5794 = vmatprep.subr.mxu1 %v6581_v0 }
 0xad5   :  { %5795 = vmatpush3.msra.mxu1 %v6633_v4 }
 0xad6   :  { %5796 = vmatprep.subr.mxu1 %v6581_v0 }
 0xad7   :  { %5797 = vmatpush3.msra.mxu1 %v6639_v6 }
 0xad8   :  { %5798 = vmatprep.subr.mxu1 %v6581_v0 }
 0xad9   :  { %5799 = vmatpush3.msra.mxu1 %v6644_v11 }
 0xada   :  { %5814 = vmatprep.subr.mxu1 %v6581_v0 }
 0xb92   :  { %v670_v61 = vpop.f32.mrf.mxu1 }
 0xb93   :  { %v675_v62 = vrot.slane %v670_v61, 4 }
 0xb94   :  { %v5780_v63 = vpop.f32.mrf.mxu1 }
 0xb95   :  { %v677_v1 = vadd.f32 %v675_v62, %v6686_v35 }
 0xb97   :  { %685 = vrot.lane.b32.xlu0 %v677_v1, %s6583_s13  ;;  %v5366_v3 = vmul.f32 -1.442695, %v677_v1 }
 0xb99   :  { %6351 = vpow2.f32 %v5366_v3 }
 0xba6   :  { %v6352_v5 = vpop.eup %6351 }
 0xba7   :  { %v681_v7 = vadd.f32 1.0, %v6352_v5 }
 0xba9   :  { %6353 = vrcp.f32 %v681_v7 }
 0xbb6   :  { %v6354_v8 = vpop.eup %6353 }
 0xbb7   :  { %v695_v15 = vsub.f32 1.0, %v6354_v8  ;;  %v703_v18 = vmul.f32 %v6354_v8, %v701_v16 }
 0xc09   :  { %v686_v9 = vpop.permute.xlu0 %685 }
 0xc0a   :  { %v688_v10 = vmul.f32 %v6354_v8, %v686_v9 }
 0xc0c   :  { %690 = vrot.lane.b32.xlu1 %v688_v10, %s6584_s14 }
 0xc7e   :  { %v691_v12 = vpop.permute.xlu1 %690 }
 0xc7f   :  { %v693_v13 = vadd.f32 %v691_v12, %v677_v1 }
 0xc81   :  { %6355 = vtanh.f32 %v693_v13 }
 0xc8e   :  { %v6356_v14 = vpop.eup %6355 }
 0xc8f   :  { %697 = vrot.lane.b32.xlu0 %v6356_v14, %s6585_s15 }
 0xd01   :  { %v698_v17 = vpop.permute.xlu0 %697 }
 0xd02   :  { %v700_v19 = vmul.f32 %v698_v17, %v695_v15 }
 0xd04   :  { %v704_v20 = vadd.f32 %v703_v18, %v700_v19  ;;  %v1045_v18 = vld [vmem:[#allocation5 + $0xb8] sm:$0xff]  ;;  %v1044_v19 = vld [vmem:[#allocation5 + $0xb0] sm:$0xff] }
 0xd06   :  { %v1029_v21 = vsel %vm84_vm4, %v1028_v58, %v704_v20  ;;  %v706_v22 = vrot.slane %v704_v20, 4  ;;  %v808_v34 = vrot.slane %v704_v20, 7  ;;  %v1042_v20 = vld [vmem:[#allocation5 + $0xa0] sm:$0xff] }
 0xd08   :  { %707 = vrot.lane.b32.xlu1 %v706_v22, %s6585_s15  ;;  %v1065_v22 = vld [vmem:[#allocation5 + $0x10] sm:$0x1] }
 0xd7a   :  { %v708_v23 = vpop.permute.xlu1 %707 }
 0xd7b   :  { %5790 = vmatmul.mubr.msk.f32.vlgmr.msra.gmra.mxu0 %vm105_vm8, %v708_v23  ;;  %v5373_v23 = vld [vmem:[%s5335_s1 + $0x10] sm:$0x1] }
 0xd7c   :  { %5804 = vmatpush3.msra.mxu0 %v6628_v2  ;;  %5811 = vmatprep.mubr.msk.f32.mxu0 %vm6582_vm0, %v6581_v0 }
 0xd7d   :  { %5805 = vmatprep.subr.mxu0 %v6581_v0 }
 0xd7e   :  { %5806 = vmatpush3.msra.mxu0 %v6633_v4 }
 0xd7f   :  { %5807 = vmatprep.subr.mxu0 %v6581_v0 }
 0xd80   :  { %5808 = vmatpush3.msra.mxu0 %v6639_v6 }
 0xd81   :  { %5809 = vmatprep.subr.mxu0 %v6581_v0 }
 0xd82   :  { %5810 = vmatpush3.msra.mxu0 %v6644_v11 }
 0xd83   :  { %5825 = vmatprep.subr.mxu0 %v6581_v0 }
 0xe3b   :  { %v777_v24 = vpop.f32.mrf.mxu0 }
 0xe3c   :  { %v782_v25 = vrot.slane %v777_v24, 3  ;;  %v5375_v24 = vld [vmem:[%s5337_s22 + $0x10] sm:$0x1] }
 0xe3d   :  { %v5791_v2 = vpop.f32.mrf.mxu0 }
 0xe3e   :  { %v784_v26 = vadd.f32 %v782_v25, %v6686_v35  ;;  %v1095_v25 = vrot.slane %v5373_v23, 7  ;;  %v5377_v2 = vld [vmem:[%s5339_s23 + $0x10] sm:$0x1]  ;;  %v6903_v23 = vld [vmem:[#allocation5 + $0x80] sm:$0xff] }
 0xe40   :  { %792 = vrot.lane.b32.xlu0 %v784_v26, %s6583_s13  ;;  %v5368_v27 = vmul.f32 -1.442695, %v784_v26 }
 0xe42   :  { %6357 = vpow2.f32 %v5368_v27  ;;  %v5379_v27 = vld [vmem:[%s5341_s24 + $0x10] sm:$0x1] }
 0xe4f   :  { %v6358_v4 = vpop.eup %6357 }
 0xe50   :  { %v788_v28 = vadd.f32 1.0, %v6358_v4  ;;  %v1101_v4 = vrot.slane %v5377_v2, 5 }
 0xe52   :  { %6359 = vrcp.f32 %v788_v28  ;;  %v1115_v28 = vsel %vm78_vm1, %v1065_v22, %v1095_v25  ;;  %v6899_v22 = vld [vmem:[#allocation5 + $0x88] sm:$0xff] }
 0xe5f   :  { %v6360_v29 = vpop.eup %6359 }
 0xe60   :  { %v802_v33 = vsub.f32 1.0, %v6360_v29  ;;  %v810_v37 = vmul.f32 %v6360_v29, %v808_v34 }
 0xeb2   :  { %v793_v6 = vpop.permute.xlu0 %792 }
 0xeb3   :  { %v795_v30 = vmul.f32 %v6360_v29, %v793_v6  ;;  %v5381_v29 = vld [vmem:[%s5343_s25 + $0x10] sm:$0x1]  ;;  %v1104_v6 = vrot.slane %v5379_v27, 4 }
 0xeb5   :  { %797 = vrot.lane.b32.xlu1 %v795_v30, %s6584_s14 }
 0xf27   :  { %v798_v11 = vpop.permute.xlu1 %797 }
 0xf28   :  { %v800_v31 = vadd.f32 %v798_v11, %v784_v26  ;;  %v1098_v26 = vrot.slane %v5375_v24, 6  ;;  %v5383_v11 = vld [vmem:[%s5345_s26 + $0x10] sm:$0x1]  ;;  %v6913_v24 = vld [vmem:[#allocation5 + $0x100] sm:$0xff] }
 0xf29   :  { %v1110_v34 = vrot.slane %v5383_v11, 2 }
 0xf2a   :  { %6361 = vtanh.f32 %v800_v31  ;;  %v1116_v30 = vsel %vm80_vm2, %v1115_v28, %v1098_v26  ;;  %v1107_v31 = vrot.slane %v5381_v29, 3  ;;  %v6924_v28 = vld [vmem:[#allocation5 + $0x70] sm:$0xff]  ;;  %v6928_v29 = vld [vmem:[#allocation5 + $0x68] sm:$0xff] }
 0xf37   :  { %v6362_v32 = vpop.eup %6361 }
 0xf38   :  { %804 = vrot.lane.b32.xlu0 %v6362_v32, %s6585_s15  ;;  %v1117_v32 = vsel %vm82_vm3, %v1116_v30, %v1101_v4  ;;  %v6920_v4 = vld [vmem:[#allocation5 + $0x78] sm:$0xff]  ;;  %v6936_v30 = vld [vmem:[#allocation5 + $0x143] sm:$0x1] }
 0xfaa   :  { %v805_v36 = vpop.permute.xlu0 %804 }
 0xfab   :  { %v807_v38 = vmul.f32 %v805_v36, %v802_v33  ;;  %v5385_v33 = vld [vmem:[%s5347_s27 + $0x10] sm:$0x1]  ;;  %v1118_v36 = vsel %vm84_vm4, %v1117_v32, %v1104_v6  ;;  %v6931_v6 = vld [vmem:[#allocation5 + $0x60] sm:$0xff] }
 0xfad   :  { %v811_v39 = vadd.f32 %v810_v37, %v807_v38  ;;  %v1113_v37 = vrot.slane %v5385_v33, 1  ;;  %v1119_v38 = vsel %vm86_vm5, %v1118_v36, %v1107_v31  ;;  %v6951_v36 = vld [vmem:[#allocation5 + $0x141] sm:$0x1] }
 0xfaf   :  { %v813_v40 = vrot.slane %v811_v39, 5  ;;  %v1030_v41 = vsel %vm86_vm5, %v1029_v21, %v811_v39  ;;  %v915_v57 = vrot.slane %v811_v39, 7  ;;  %v1120_v39 = vsel %vm88_vm6, %v1119_v38, %v1110_v34 }
 0xfb1   :  { %814 = vrot.lane.b32.xlu1 %v813_v40, %s6585_s15  ;;  %v6818_v40 = vld [vmem:[#allocation5 + $0xd8] sm:$0xff] }
0x1023   :  { %v815_v42 = vpop.permute.xlu1 %814 }
0x1024   :  { %5801 = vmatmul.mubr.msk.f32.vlgmr.msra.gmra.mxu1 %vm105_vm8, %v815_v42  ;;  %v6822_v42 = vld [vmem:[#allocation5 + $0xd0] sm:$0xff] }
0x1025   :  { %5822 = vmatprep.mubr.msk.f32.mxu1 %vm6582_vm0, %v6581_v0  ;;  %5815 = vmatpush3.msra.mxu1 %v1045_v18 }
0x1026   :  { %5816 = vmatprep.subr.mxu1 %v6581_v0 }
0x1027   :  { %5817 = vmatpush3.msra.mxu1 %v1044_v19 }
0x1028   :  { %5818 = vmatprep.subr.mxu1 %v6581_v0 }
0x10e4   :  { %v884_v43 = vpop.f32.mrf.mxu1 }
0x10e5   :  { %v889_v44 = vrot.slane %v884_v43, 2  ;;  %v6828_v43 = vld [vmem:[#allocation5 + $0xc8] sm:$0xff] }
0x10e6   :  { %v5802_v45 = vpop.f32.mrf.mxu1 }
0x10e7   :  { %v891_v46 = vadd.f32 %v889_v44, %v6686_v35  ;;  %v6832_v44 = vld [vmem:[#allocation5 + $0xc0] sm:$0xff] }
0x10e9   :  { %899 = vrot.lane.b32.xlu0 %v891_v46, %s6583_s13  ;;  %v5370_v47 = vmul.f32 -1.442695, %v891_v46 }
0x10eb   :  { %6363 = vpow2.f32 %v5370_v47 }
0x10f8   :  { %v6364_v48 = vpop.eup %6363 }
0x10f9   :  { %v895_v49 = vadd.f32 1.0, %v6364_v48 }
0x10fb   :  { %6365 = vrcp.f32 %v895_v49 }
0x1108   :  { %v6366_v50 = vpop.eup %6365 }
0x1109   :  { %v909_v56 = vsub.f32 1.0, %v6366_v50  ;;  %v917_v59 = vmul.f32 %v6366_v50, %v915_v57  ;;  %v1053_v57 = vld [vmem:[#allocation5 + $0xf0] sm:$0xff] }
0x115b   :  { %v900_v51 = vpop.permute.xlu0 %899 }
0x115c   :  { %v902_v52 = vmul.f32 %v6366_v50, %v900_v51 }
0x115e   :  { %904 = vrot.lane.b32.xlu1 %v902_v52, %s6584_s14 }
0x11d0   :  { %v905_v53 = vpop.permute.xlu1 %904 }
0x11d1   :  { %v907_v54 = vadd.f32 %v905_v53, %v891_v46 }
0x11d3   :  { %6367 = vtanh.f32 %v907_v54 }
0x11e0   :  { %v6368_v55 = vpop.eup %6367 }
0x11e1   :  { %911 = vrot.lane.b32.xlu0 %v6368_v55, %s6585_s15 }
0x1253   :  { %v912_v58 = vpop.permute.xlu0 %911 }
0x1254   :  { %v914_v60 = vmul.f32 %v912_v58, %v909_v56  ;;  %v1054_v56 = vld [vmem:[#allocation5 + $0xf8] sm:$0xff] }
0x1256   :  { %v6790_v61 = vadd.f32 %v917_v59, %v914_v60  ;;  %v6860_v59 = vld [vmem:[#allocation5 + $0x142] sm:$0x1] }
0x1258   :  { %v920_v62 = vrot.slane %v6790_v61, 6  ;;  %v6795_v63 = vsel %vm88_vm6, %v1030_v41, %v6790_v61  ;;  %v1121_v41 = vsel %vm90_vm7, %v1120_v39, %v1113_v37  ;;  %v1022_v46 = vrot.slane %v6790_v61, 7 }
0x125a   :  { %921 = vrot.lane.b32.xlu1 %v920_v62, %s6585_s15 }
0x12cc   :  { %v922_v1 = vpop.permute.xlu1 %921 }
0x12cd   :  { %5812 = vmatmul.mubr.msk.f32.vlgmr.msra.gmra.mxu0 %vm105_vm8, %v922_v1  ;;  %v1052_v1 = vld [vmem:[#allocation5 + $0xe8] sm:$0xff] }
0x12ce   :  { %5833 = vmatprep.mubr.msk.f32.mxu0 %vm6582_vm0, %v6581_v0  ;;  %5826 = vmatpush3.msra.mxu0 %v1054_v56  ;;  %v6956_v56 = vld [vmem:[#allocation5 + $0x138] sm:$0xff] }
0x12cf   :  { %5827 = vmatprep.subr.mxu0 %v6581_v0 }
0x12d0   :  { %5828 = vmatpush3.msra.mxu0 %v1053_v57  ;;  %v6958_v57 = vld [vmem:[#allocation5 + $0x130] sm:$0xff] }
0x12d1   :  { %5829 = vmatprep.subr.mxu0 %v6581_v0 }
0x12d2   :  { %5830 = vmatpush3.msra.mxu0 %v1052_v1 }
0x12d3   :  { %5831 = vmatprep.subr.mxu0 %v6581_v0 }
0x138d   :  { %v991_v3 = vpop.f32.mrf.mxu0 }
0x138e   :  { %v996_v5 = vrot.slane %v991_v3, 1  ;;  %v1051_v3 = vld [vmem:[#allocation5 + $0xe0] sm:$0xff] }
0x138f   :  { %v5813_v7 = vpop.f32.mrf.mxu0  ;;  %5832 = vmatpush3.msra.mxu0 %v1051_v3 }
0x1390   :  { %v998_v8 = vadd.f32 %v996_v5, %v6686_v35  ;;  %v1043_v35 = vld [vmem:[#allocation5 + $0xa8] sm:$0xff]  ;;  %5847 = vmatprep.subr.mxu0 %v6581_v0  ;;  %5834 = vmatmul.mubr.msk.f32.vlgmr.msra.gmra.mxu0 %vm105_vm8, %v1121_v41 }
0x1391   :  { %5819 = vmatpush3.msra.mxu1 %v1043_v35  ;;  %5849 = vmatprep.mubr.msk.f32.mxu0 %vm6582_vm0, %v6581_v0 }
0x1392   :  { %1006 = vrot.lane.b32.xlu0 %v998_v8, %s6583_s13  ;;  %v5372_v9 = vmul.f32 -1.442695, %v998_v8  ;;  %5820 = vmatprep.subr.mxu1 %v6581_v0 }
0x1393   :  { %5821 = vmatpush3.msra.mxu1 %v1042_v20  ;;  %v6890_v20 = vld [vmem:[#allocation5 + $0x98] sm:$0xff] }
0x1394   :  { %6369 = vpow2.f32 %v5372_v9  ;;  %5836 = vmatprep.subr.mxu1 %v6581_v0  ;;  %5823 = vmatmul.mubr.msk.f32.vlgmr.msra.gmra.mxu1 %vm105_vm8, %v1121_v41 }
0x1395   :  { %5837 = vmatpush3.msra.mxu1 %v6818_v40  ;;  %5844 = vmatprep.mubr.msk.f32.mxu1 %vm6582_vm0, %v6581_v0 }
0x1396   :  { %5838 = vmatprep.subr.mxu1 %v6581_v0 }
0x1397   :  { %5839 = vmatpush3.msra.mxu1 %v6822_v42 }
0x1398   :  { %5840 = vmatprep.subr.mxu1 %v6581_v0 }
0x1399   :  { %5841 = vmatpush3.msra.mxu1 %v6828_v43 }
0x139a   :  { %5842 = vmatprep.subr.mxu1 %v6581_v0 }
0x139b   :  { %5843 = vmatpush3.msra.mxu1 %v6832_v44 }
0x139c   :  { %5852 = vmatprep.subr.mxu1 %v6581_v0 }
0x13a1   :  { %v6370_v10 = vpop.eup %6369 }
0x13a2   :  { %v1002_v12 = vadd.f32 1.0, %v6370_v10 }
0x13a4   :  { %6371 = vrcp.f32 %v1002_v12 }
0x13b1   :  { %v6803_v13 = vpop.eup %6371 }
0x13b2   :  { %v1016_v45 = vsub.f32 1.0, %v6803_v13  ;;  %v1024_v48 = vmul.f32 %v6803_v13, %v1022_v46 }
0x1404   :  { %v1007_v14 = vpop.permute.xlu0 %1006 }
0x1405   :  { %v1009_v15 = vmul.f32 %v6803_v13, %v1007_v14  ;;  %v6876_v13 = vld [vmem:[#allocation5 + $0x118] sm:$0xff]  ;;  %v6878_v14 = vld [vmem:[#allocation5 + $0x110] sm:$0xff] }
0x1407   :  { %1011 = vrot.lane.b32.xlu1 %v1009_v15, %s6584_s14  ;;  %v6882_v15 = vld [vmem:[#allocation5 + $0x108] sm:$0xff] }
0x1454   :  { %v6850_v53 = vpop.f32.mrf.mxu1 }
0x1456   :  { %v5824_v54 = vpop.f32.mrf.mxu1 }
0x1479   :  { %v1012_v16 = vpop.permute.xlu1 %1011 }
0x147a   :  { %v1014_v17 = vadd.f32 %v1012_v16, %v998_v8  ;;  %v6888_v16 = vpop.f32.mrf.mxu0 }
0x147c   :  { %6373 = vtanh.f32 %v1014_v17  ;;  %v5835_v17 = vpop.f32.mrf.mxu0 }
0x1489   :  { %v6374_v21 = vpop.eup %6373 }
0x148a   :  { %1018 = vrot.lane.b32.xlu0 %v6374_v21, %s6585_s15  ;;  %v6893_v21 = vld [vmem:[#allocation5 + $0x90] sm:$0xff] }
0x14fc   :  { %v1019_v47 = vpop.permute.xlu0 %1018 }
0x14fd   :  { %v1021_v49 = vmul.f32 %v1019_v47, %v1016_v45 }
0x14ff   :  { %v6841_v50 = vadd.f32 %v1024_v48, %v1021_v49 }
0x1501   :  { %v1266_v51 = vrot.slane %v6841_v50, 7  ;;  %v1032_v52 = vsel %vm90_vm7, %v6795_v63, %v6841_v50 }
0x1503   :  { %1267 = vrot.lane.b32.xlu1 %v1266_v51, %s6585_s15 }
0x1575   :  { %v6852_v55 = vpop.permute.xlu1 %1267 }
0x1576   :  { %5845 = vmatmul.mubr.msk.f32.vlgmr.msra.gmra.mxu1 %vm105_vm8, %v6852_v55 }
0x1577   :  { %5860 = vmatprep.mubr.msk.f32.mxu1 %vm6582_vm0, %v6581_v0  ;;  %5853 = vmatpush3.msra.mxu1 %v6876_v13 }
0x1578   :  { %5854 = vmatprep.subr.mxu1 %v6581_v0 }
0x1579   :  { %5855 = vmatpush3.msra.mxu1 %v6878_v14 }
0x157a   :  { %5856 = vmatprep.subr.mxu1 %v6581_v0 }
0x157b   :  { %5857 = vmatpush3.msra.mxu1 %v6882_v15 }
0x157c   :  { %5858 = vmatprep.subr.mxu1 %v6581_v0 }
0x157d   :  { %5859 = vmatpush3.msra.mxu1 %v6913_v24 }
0x157e   :  { %5874 = vmatprep.subr.mxu1 %v6581_v0 }
0x1636   :  { %v1337_v58 = vpop.f32.mrf.mxu1 }
0x1637   :  { %v1341_v60 = vadd.f32 %v1337_v58, %v6850_v53  ;;  %v6962_v58 = vld [vmem:[#allocation5 + $0x128] sm:$0xff] }
0x1638   :  { %v5846_v61 = vpop.f32.mrf.mxu1 }
0x1639   :  { %v1342_v62 = vadd.f32 %v1341_v60, %v6860_v59  ;;  %v6966_v60 = vld [vmem:[#allocation5 + $0x120] sm:$0xff] }
0x163b   :  { %v1344_v63 = vsel %vm1343_vm9, %v1342_v62, -inf }
0x163c   :  { %1345 = vmax.xlane.f32.xlu0 %v1344_v63 }
0x1652   :  { %1356 = vrot.lane.b32.xlu0 %v1032_v52, %s6585_s15 }
0x16c5   :  { %v1346_v5 = vpop.xlane.xlu0 %1345 }
0x16c6   :  { %v1347_v7 = vsub.f32 %v1342_v62, %v1346_v5 }
0x16c8   :  { %v1348_v8 = vmul.f32 1.442695, %v1347_v7 }
0x16c9   :  { %v6871_v9 = vpop.permute.xlu0 %1356 }
0x16ca   :  { %6375 = vpow2.f32 %v1348_v8  ;;  %5848 = vmatpush3.msra.mxu0 %v6871_v9 }
0x16cb   :  { %5863 = vmatprep.subr.mxu0 %v6581_v0 }
0x16d7   :  { %v6376_v10 = vpop.eup %6375 }
0x16d8   :  { %v1350_v12 = vsel %vm1343_vm9, %v6376_v10, 0.0  ;;  %vm4356_vm9 = vcmask 63494  }
0x16d9   :  { %1351 = vadd.xlane.f32.xlu1 %v1350_v12 }
0x1762   :  { %v1352_v18 = vpop.xlane.xlu1 %1351 }
0x1763   :  { %6377 = vrcp.f32 %v1352_v18 }
0x1770   :  { %v6378_v19 = vpop.eup %6377 }
0x1771   :  { %v1354_v35 = vmul.f32 %v6378_v19, %v6376_v10  ;;  %v1842_v10 = vrot.slane %v6860_v59, 7 }
0x1773   :  { %5850 = vmatmul.mubr.msk.f32.vlgmr.msra.gmra.mxu0 %vm1359_vm10, %v1354_v35 }
0x1774   :  { %5864 = vmatpush3.msra.mxu0 %v6890_v20  ;;  %5871 = vmatprep.mubr.msk.f32.mxu0 %vm6582_vm0, %v6581_v0 }
0x1775   :  { %5865 = vmatprep.subr.mxu0 %v6581_v0 }
0x1776   :  { %5866 = vmatpush3.msra.mxu0 %v6893_v21 }
0x1777   :  { %5867 = vmatprep.subr.mxu0 %v6581_v0 }
0x1778   :  { %5868 = vmatpush3.msra.mxu0 %v6899_v22 }
0x1779   :  { %5869 = vmatprep.subr.mxu0 %v6581_v0 }
0x177a   :  { %5870 = vmatpush3.msra.mxu0 %v6903_v23 }
0x177b   :  { %5872 = vmatmul.mubr.msk.f32.vlgmr.msra.gmra.mxu0 %vm105_vm8, %v6852_v55  ;;  %5885 = vmatprep.subr.mxu0 %v6581_v0 }
0x177c   :  { %5893 = vmatprep.mubr.msk.f32.mxu0 %vm6582_vm0, %v6581_v0  ;;  %5886 = vmatpush3.msra.mxu0 %v6956_v56 }
0x177d   :  { %5887 = vmatprep.subr.mxu0 %v6581_v0 }
0x177e   :  { %5888 = vmatpush3.msra.mxu0 %v6958_v57 }
0x177f   :  { %5889 = vmatprep.subr.mxu0 %v6581_v0 }
0x1780   :  { %5890 = vmatpush3.msra.mxu0 %v6962_v58 }
0x1781   :  { %5891 = vmatprep.subr.mxu0 %v6581_v0 }
0x1782   :  { %5892 = vmatpush3.msra.mxu0 %v6966_v60 }
0x1783   :  { %5907 = vmatprep.subr.mxu0 %v6581_v0 }
0x1833   :  { %v1429_v25 = vpop.f32.mrf.mxu0 }
0x1834   :  { %5861 = vmatmul.mubr.msk.f32.vlgmr.msra.gmra.mxu1 %vm105_vm8, %v1429_v25 }
0x1835   :  { %v5851_v2 = vpop.f32.mrf.mxu0  ;;  %5882 = vmatprep.mubr.msk.f32.mxu1 %vm6582_vm0, %v6581_v0  ;;  %5875 = vmatpush3.msra.mxu1 %v6920_v4 }
0x1836   :  { %5876 = vmatprep.subr.mxu1 %v6581_v0 }
0x1837   :  { %5877 = vmatpush3.msra.mxu1 %v6924_v28 }
0x1838   :  { %5878 = vmatprep.subr.mxu1 %v6581_v0 }
0x1839   :  { %5879 = vmatpush3.msra.mxu1 %v6928_v29 }
0x183a   :  { %5880 = vmatprep.subr.mxu1 %v6581_v0 }
0x183b   :  { %v1575_v26 = vpop.f32.mrf.mxu0  ;;  %5881 = vmatpush3.msra.mxu1 %v6931_v6 }
0x183c   :  { %5896 = vmatprep.subr.mxu1 %v6581_v0 }
0x183d   :  { %v5873_v27 = vpop.f32.mrf.mxu0 }
0x18f4   :  { %v1502_v11 = vpop.f32.mrf.mxu1 }
0x18f5   :  { %v1506_v31 = vadd.f32 %v1502_v11, %v6888_v16 }
0x18f6   :  { %v5862_v32 = vpop.f32.mrf.mxu1 }
0x18f7   :  { %v1507_v33 = vadd.f32 %v1506_v31, %v6936_v30 }
0x18f9   :  { %v1508_v34 = vmax.f32 %v1507_v33, 0.0 }
0x18fb   :  { %5883 = vmatmul.mubr.msk.f32.vlgmr.msra.gmra.mxu1 %vm105_vm8, %v1508_v34 }
0x18fc   :  { %5897 = vmatpush3.msra.mxu1 %v6818_v40  ;;  %5904 = vmatprep.mubr.msk.f32.mxu1 %vm6582_vm0, %v6581_v0 }
0x18fd   :  { %5898 = vmatprep.subr.mxu1 %v6581_v0 }
0x18fe   :  { %5899 = vmatpush3.msra.mxu1 %v6822_v42 }
0x18ff   :  { %5900 = vmatprep.subr.mxu1 %v6581_v0 }
0x1900   :  { %5901 = vmatpush3.msra.mxu1 %v6828_v43 }
0x1901   :  { %5902 = vmatprep.subr.mxu1 %v6581_v0 }
0x1902   :  { %5903 = vmatpush3.msra.mxu1 %v6832_v44 }
0x1903   :  { %5923 = vmatprep.subr.mxu1 %v6581_v0 }
0x19bb   :  { %v1648_v37 = vpop.f32.mrf.mxu1 }
0x19bc   :  { %v1649_v38 = vadd.f32 %v1648_v37, %v1575_v26 }
0x19bd   :  { %v5884_v39 = vpop.f32.mrf.mxu1 }
0x19be   :  { %v1652_v41 = vadd.f32 %v1649_v38, %v6951_v36 }
0x19c0   :  { %1660 = vrot.lane.b32.xlu1 %v1652_v41, %s6583_s13  ;;  %v5393_v45 = vmul.f32 -1.442695, %v1652_v41 }
0x19c2   :  { %6379 = vpow2.f32 %v5393_v45 }
0x19cf   :  { %v6380_v46 = vpop.eup %6379 }
0x19d0   :  { %v1656_v47 = vadd.f32 1.0, %v6380_v46 }
0x19d2   :  { %6381 = vrcp.f32 %v1656_v47  ;;  %v2009_v47 = vrot.slane %v6936_v30, 7 }
0x19df   :  { %v6382_v48 = vpop.eup %6381 }
0x19e0   :  { %v1670_v62 = vsub.f32 1.0, %v6382_v48  ;;  %v1677_v1 = vmul.f32 %v6382_v48, %v1266_v51 }
0x1a32   :  { %v1661_v49 = vpop.permute.xlu1 %1660 }
0x1a33   :  { %v1663_v52 = vmul.f32 %v6382_v48, %v1661_v49 }
0x1a35   :  { %1665 = vrot.lane.b32.xlu0 %v1663_v52, %s6584_s14 }
0x1aa7   :  { %v1666_v54 = vpop.permute.xlu0 %1665 }
0x1aa8   :  { %v1668_v55 = vadd.f32 %v1666_v54, %v1652_v41 }
0x1aaa   :  { %6383 = vtanh.f32 %v1668_v55 }
0x1ab7   :  { %v6384_v61 = vpop.eup %6383 }
0x1ab8   :  { %1672 = vrot.lane.b32.xlu1 %v6384_v61, %s6585_s15 }
0x1b2a   :  { %v1673_v63 = vpop.permute.xlu1 %1672 }
0x1b2b   :  { %v1675_v3 = vmul.f32 %v1673_v63, %v1670_v62 }
0x1b2d   :  { %v6975_v5 = vadd.f32 %v1677_v1, %v1675_v3 }
0x1b2f   :  { %1680 = vrot.lane.b32.xlu0 %v6975_v5, %s6585_s15 }
0x1ba1   :  { %v1681_v7 = vpop.permute.xlu0 %1680 }
0x1ba2   :  { %5894 = vmatmul.mubr.msk.f32.vlgmr.msra.gmra.mxu0 %vm105_vm8, %v1681_v7  ;;  %5905 = vmatmul.mubr.msk.f32.vlgmr.msra.gmra.mxu1 %vm105_vm8, %v1681_v7 }
0x1ba3   :  { %5908 = vmatpush3.msra.mxu0 %v6871_v9  ;;  %5924 = vmatpush3.msra.mxu1 %v6890_v20 }
0x1ba4   :  { %5925 = vmatprep.subr.mxu1 %v6581_v0  ;;  %5931 = vmatprep.mubr.msk.f32.mxu1 %vm6582_vm0, %v6581_v0 }
0x1ba5   :  { %5926 = vmatpush3.msra.mxu1 %v6893_v21  ;;  %5909 = vmatprep.mubr.msk.f32.mxu0 %vm6582_vm0, %v6581_v0 }
0x1ba6   :  { %5927 = vmatprep.subr.mxu1 %v6581_v0  ;;  %5912 = vmatprep.subr.mxu0 %v6581_v0 }
0x1ba7   :  { %5928 = vmatpush3.msra.mxu1 %v6899_v22 }
0x1ba8   :  { %5929 = vmatprep.subr.mxu1 %v6581_v0 }
0x1ba9   :  { %5930 = vmatpush3.msra.mxu1 %v6903_v23 }
0x1baa   :  { %5932 = vmatmul.mubr.msk.f32.vlgmr.msra.gmra.mxu1 %vm105_vm8, %v1681_v7  ;;  %5945 = vmatprep.subr.mxu1 %v6581_v0 }
0x1bab   :  { %5946 = vmatpush3.msra.mxu1 %v6956_v56  ;;  %5953 = vmatprep.mubr.msk.f32.mxu1 %vm6582_vm0, %v6581_v0 }
0x1bac   :  { %5947 = vmatprep.subr.mxu1 %v6581_v0 }
0x1bad   :  { %5948 = vmatpush3.msra.mxu1 %v6958_v57 }
0x1bae   :  { %5949 = vmatprep.subr.mxu1 %v6581_v0 }
0x1baf   :  { %5950 = vmatpush3.msra.mxu1 %v6962_v58 }
0x1bb0   :  { %5951 = vmatprep.subr.mxu1 %v6581_v0 }
0x1bb1   :  { %5952 = vmatpush3.msra.mxu1 %v6966_v60 }
0x1bb2   :  { %5967 = vmatprep.subr.mxu1 %v6581_v0 }
0x1c62   :  { %v7006_v50 = vpop.f32.mrf.mxu0  ;;  %v1833_v51 = vpop.f32.mrf.mxu1 }
0x1c63   :  { %v1838_v8 = vrot.slane %v1833_v51, 7 }
0x1c64   :  { %v5895_v12 = vpop.f32.mrf.mxu0  ;;  %v5906_v17 = vpop.f32.mrf.mxu1 }
0x1c65   :  { %v1840_v18 = vadd.f32 %v1838_v8, %v6850_v53 }
0x1c67   :  { %v1844_v19 = vadd.f32 %v1842_v10, %v1840_v18 }
0x1c69   :  { %v1846_v35 = vsel %vm1845_vm11, %v1844_v19, -inf }
0x1c6a   :  { %v2079_v25 = vpop.f32.mrf.mxu1  ;;  %1847 = vmax.xlane.f32.xlu1 %v1846_v35 }
0x1c6c   :  { %v5933_v2 = vpop.f32.mrf.mxu1 }
0x1cf3   :  { %v1848_v26 = vpop.xlane.xlu1 %1847 }
0x1cf4   :  { %v1849_v27 = vsub.f32 %v1844_v19, %v1848_v26 }
0x1cf6   :  { %v1850_v11 = vmul.f32 1.442695, %v1849_v27 }
0x1cf8   :  { %6385 = vpow2.f32 %v1850_v11 }
0x1d05   :  { %v6386_v31 = vpop.eup %6385 }
0x1d06   :  { %v1852_v32 = vsel %vm1845_vm11, %v6386_v31, 0.0  ;;  %vm4858_vm11 = vcmask 64519  }
0x1d07   :  { %1853 = vadd.xlane.f32.xlu0 %v1852_v32 }
0x1d90   :  { %v1854_v33 = vpop.xlane.xlu0 %1853 }
0x1d91   :  { %6387 = vrcp.f32 %v1854_v33  ;;  %v2345_v33 = vrot.slane %v6860_v59, 6 }
0x1d9e   :  { %v6388_v34 = vpop.eup %6387 }
0x1d9f   :  { %v1856_v37 = vmul.f32 %v6388_v34, %v6386_v31 }
0x1da1   :  { %v1858_v38 = vrot.slane %v1856_v37, 1 }
0x1da3   :  { %5910 = vmatmul.mubr.msk.f32.vlgmr.msra.gmra.mxu0 %vm1359_vm10, %v1858_v38 }
0x1da4   :  { %5913 = vmatpush3.msra.mxu0 %v6876_v13  ;;  %5920 = vmatprep.mubr.msk.f32.mxu0 %vm6582_vm0, %v6581_v0 }
0x1da5   :  { %5914 = vmatprep.subr.mxu0 %v6581_v0 }
0x1da6   :  { %5915 = vmatpush3.msra.mxu0 %v6878_v14 }
0x1da7   :  { %5916 = vmatprep.subr.mxu0 %v6581_v0 }
0x1da8   :  { %5917 = vmatpush3.msra.mxu0 %v6882_v15 }
0x1da9   :  { %5918 = vmatprep.subr.mxu0 %v6581_v0 }
0x1daa   :  { %5919 = vmatpush3.msra.mxu0 %v6913_v24 }
0x1dab   :  { %5934 = vmatprep.subr.mxu0 %v6581_v0 }
0x1e63   :  { %v1927_v39 = vpop.f32.mrf.mxu0 }
0x1e64   :  { %5921 = vmatmul.mubr.msk.f32.vlgmr.msra.gmra.mxu0 %vm105_vm8, %v1927_v39 }
0x1e65   :  { %v5911_v41 = vpop.f32.mrf.mxu0  ;;  %5935 = vmatpush3.msra.mxu0 %v6920_v4  ;;  %5942 = vmatprep.mubr.msk.f32.mxu0 %vm6582_vm0, %v6581_v0 }
0x1e66   :  { %5936 = vmatprep.subr.mxu0 %v6581_v0 }
0x1e67   :  { %5937 = vmatpush3.msra.mxu0 %v6924_v28 }
0x1e68   :  { %5938 = vmatprep.subr.mxu0 %v6581_v0 }
0x1e69   :  { %5939 = vmatpush3.msra.mxu0 %v6928_v29 }
0x1e6a   :  { %5940 = vmatprep.subr.mxu0 %v6581_v0 }
0x1e6b   :  { %5941 = vmatpush3.msra.mxu0 %v6931_v6 }
0x1e6c   :  { %5956 = vmatprep.subr.mxu0 %v6581_v0 }
0x1f24   :  { %v2000_v45 = vpop.f32.mrf.mxu0 }
0x1f25   :  { %v2005_v46 = vrot.slane %v2000_v45, 7 }
0x1f26   :  { %v5922_v48 = vpop.f32.mrf.mxu0 }
0x1f27   :  { %v2007_v49 = vadd.f32 %v2005_v46, %v6888_v16 }
0x1f29   :  { %v2011_v52 = vadd.f32 %v2009_v47, %v2007_v49 }
0x1f2b   :  { %v2012_v54 = vmax.f32 %v2011_v52, 0.0 }
0x1f2d   :  { %v2084_v55 = vrot.slane %v2012_v54, 1 }
0x1f2f   :  { %5943 = vmatmul.mubr.msk.f32.vlgmr.msra.gmra.mxu0 %vm105_vm8, %v2084_v55 }
0x1f30   :  { %5957 = vmatpush3.msra.mxu0 %v6818_v40  ;;  %5964 = vmatprep.mubr.msk.f32.mxu0 %vm6582_vm0, %v6581_v0 }
0x1f31   :  { %5958 = vmatprep.subr.mxu0 %v6581_v0 }
0x1f32   :  { %5959 = vmatpush3.msra.mxu0 %v6822_v42 }
0x1f33   :  { %5960 = vmatprep.subr.mxu0 %v6581_v0 }
0x1f34   :  { %5961 = vmatpush3.msra.mxu0 %v6828_v43 }
0x1f35   :  { %5962 = vmatprep.subr.mxu0 %v6581_v0 }
0x1f36   :  { %5963 = vmatpush3.msra.mxu0 %v6832_v44 }
0x1f37   :  { %5983 = vmatprep.subr.mxu0 %v6581_v0 }
0x1fef   :  { %v2153_v61 = vpop.f32.mrf.mxu0 }
0x1ff0   :  { %v2154_v62 = vadd.f32 %v2153_v61, %v2079_v25 }
0x1ff1   :  { %v5944_v63 = vpop.f32.mrf.mxu0 }
0x1ff2   :  { %v2157_v1 = vadd.f32 %v2154_v62, %v6951_v36 }
0x1ff4   :  { %2165 = vrot.lane.b32.xlu0 %v2157_v1, %s6583_s13  ;;  %v5400_v3 = vmul.f32 -1.442695, %v2157_v1 }
0x1ff6   :  { %6389 = vpow2.f32 %v5400_v3 }
0x2003   :  { %v6390_v7 = vpop.eup %6389 }
0x2004   :  { %v2161_v51 = vadd.f32 1.0, %v6390_v7 }
0x2006   :  { %6391 = vrcp.f32 %v2161_v51 }
0x2013   :  { %v6392_v8 = vpop.eup %6391 }
0x2014   :  { %v2175_v35 = vsub.f32 1.0, %v6392_v8  ;;  %v2181_v2 = vmul.f32 %v6392_v8, %v6975_v5 }
0x2066   :  { %v2166_v10 = vpop.permute.xlu0 %2165 }
0x2067   :  { %v2168_v12 = vmul.f32 %v6392_v8, %v2166_v10  ;;  %v2511_v8 = vrot.slane %v6936_v30, 6 }
0x2069   :  { %2170 = vrot.lane.b32.xlu1 %v2168_v12, %s6584_s14 }
0x20db   :  { %v2171_v17 = vpop.permute.xlu1 %2170 }
0x20dc   :  { %v2173_v18 = vadd.f32 %v2171_v17, %v2157_v1 }
0x20de   :  { %6393 = vtanh.f32 %v2173_v18 }
0x20eb   :  { %v6394_v19 = vpop.eup %6393 }
0x20ec   :  { %2177 = vrot.lane.b32.xlu1 %v6394_v19, %s6585_s15 }
0x215e   :  { %v2178_v25 = vpop.permute.xlu1 %2177 }
0x215f   :  { %v2180_v26 = vmul.f32 %v2178_v25, %v2175_v35 }
0x2161   :  { %v7050_v27 = vadd.f32 %v2181_v2, %v2180_v26 }
0x2163   :  { %2184 = vrot.lane.b32.xlu0 %v7050_v27, %s6585_s15 }
0x21d5   :  { %v2185_v11 = vpop.permute.xlu0 %2184 }
0x21d6   :  { %5954 = vmatmul.mubr.msk.f32.vlgmr.msra.gmra.mxu1 %vm105_vm8, %v2185_v11  ;;  %5965 = vmatmul.mubr.msk.f32.vlgmr.msra.gmra.mxu0 %vm105_vm8, %v2185_v11 }
0x21d7   :  { %5968 = vmatpush3.msra.mxu1 %v6871_v9  ;;  %5984 = vmatpush3.msra.mxu0 %v6890_v20 }
0x21d8   :  { %5985 = vmatprep.subr.mxu0 %v6581_v0  ;;  %5991 = vmatprep.mubr.msk.f32.mxu0 %vm6582_vm0, %v6581_v0 }
0x21d9   :  { %5986 = vmatpush3.msra.mxu0 %v6893_v21  ;;  %5969 = vmatprep.mubr.msk.f32.mxu1 %vm6582_vm0, %v6581_v0 }
0x21da   :  { %5987 = vmatprep.subr.mxu0 %v6581_v0  ;;  %5972 = vmatprep.subr.mxu1 %v6581_v0 }
0x21db   :  { %5988 = vmatpush3.msra.mxu0 %v6899_v22 }
0x21dc   :  { %5989 = vmatprep.subr.mxu0 %v6581_v0 }
0x21dd   :  { %5990 = vmatpush3.msra.mxu0 %v6903_v23 }
0x21de   :  { %5992 = vmatmul.mubr.msk.f32.vlgmr.msra.gmra.mxu0 %vm105_vm8, %v2185_v11  ;;  %6005 = vmatprep.subr.mxu0 %v6581_v0 }
0x21df   :  { %6006 = vmatpush3.msra.mxu0 %v6956_v56  ;;  %6013 = vmatprep.mubr.msk.f32.mxu0 %vm6582_vm0, %v6581_v0 }
0x21e0   :  { %6007 = vmatprep.subr.mxu0 %v6581_v0 }
0x21e1   :  { %6008 = vmatpush3.msra.mxu0 %v6958_v57 }
0x21e2   :  { %6009 = vmatprep.subr.mxu0 %v6581_v0 }
0x21e3   :  { %6010 = vmatpush3.msra.mxu0 %v6962_v58 }
0x21e4   :  { %6011 = vmatprep.subr.mxu0 %v6581_v0 }
0x21e5   :  { %6012 = vmatpush3.msra.mxu0 %v6966_v60 }
0x21e6   :  { %6027 = vmatprep.subr.mxu0 %v6581_v0 }
0x2296   :  { %v7081_v5 = vpop.f32.mrf.mxu1  ;;  %v2337_v31 = vpop.f32.mrf.mxu0 }
0x2297   :  { %v2342_v32 = vrot.slane %v2337_v31, 6 }
0x2298   :  { %v5955_v34 = vpop.f32.mrf.mxu1  ;;  %v5966_v37 = vpop.f32.mrf.mxu0 }
0x2299   :  { %v2344_v38 = vadd.f32 %v2342_v32, %v6850_v53 }
0x229b   :  { %v2347_v39 = vadd.f32 %v2345_v33, %v2344_v38 }
0x229d   :  { %v2349_v41 = vsel %vm2348_vm12, %v2347_v39, -inf }
0x229e   :  { %v2581_v45 = vpop.f32.mrf.mxu0  ;;  %2350 = vmax.xlane.f32.xlu1 %v2349_v41 }
0x22a0   :  { %v5993_v46 = vpop.f32.mrf.mxu0 }
0x2327   :  { %v2351_v47 = vpop.xlane.xlu1 %2350 }
0x2328   :  { %v2352_v48 = vsub.f32 %v2347_v39, %v2351_v47 }
0x232a   :  { %v2353_v49 = vmul.f32 1.442695, %v2352_v48 }
0x232c   :  { %6395 = vpow2.f32 %v2353_v49 }
0x2339   :  { %v6396_v52 = vpop.eup %6395 }
0x233a   :  { %v2355_v54 = vsel %vm2348_vm12, %v6396_v52, 0.0 }
0x233b   :  { %2356 = vadd.xlane.f32.xlu0 %v2355_v54 }
0x23c4   :  { %v2357_v55 = vpop.xlane.xlu0 %2356 }
0x23c5   :  { %6397 = vrcp.f32 %v2357_v55 }
0x23d2   :  { %v6398_v61 = vpop.eup %6397 }
0x23d3   :  { %v2359_v62 = vmul.f32 %v6398_v61, %v6396_v52  ;;  %v2847_v61 = vrot.slane %v6860_v59, 5 }
0x23d5   :  { %v2361_v63 = vrot.slane %v2359_v62, 2 }
0x23d7   :  { %5970 = vmatmul.mubr.msk.f32.vlgmr.msra.gmra.mxu1 %vm1359_vm10, %v2361_v63 }
0x23d8   :  { %5973 = vmatpush3.msra.mxu1 %v6876_v13  ;;  %5980 = vmatprep.mubr.msk.f32.mxu1 %vm6582_vm0, %v6581_v0 }
0x23d9   :  { %5974 = vmatprep.subr.mxu1 %v6581_v0 }
0x23da   :  { %5975 = vmatpush3.msra.mxu1 %v6878_v14 }
0x23db   :  { %5976 = vmatprep.subr.mxu1 %v6581_v0 }
0x23dc   :  { %5977 = vmatpush3.msra.mxu1 %v6882_v15 }
0x23dd   :  { %5978 = vmatprep.subr.mxu1 %v6581_v0 }
0x23de   :  { %5979 = vmatpush3.msra.mxu1 %v6913_v24 }
0x23df   :  { %5994 = vmatprep.subr.mxu1 %v6581_v0 }
0x2497   :  { %v2430_v1 = vpop.f32.mrf.mxu1 }
0x2498   :  { %5981 = vmatmul.mubr.msk.f32.vlgmr.msra.gmra.mxu1 %vm105_vm8, %v2430_v1 }
0x2499   :  { %v5971_v3 = vpop.f32.mrf.mxu1  ;;  %5995 = vmatpush3.msra.mxu1 %v6920_v4  ;;  %6002 = vmatprep.mubr.msk.f32.mxu1 %vm6582_vm0, %v6581_v0 }
0x249a   :  { %5996 = vmatprep.subr.mxu1 %v6581_v0 }
0x249b   :  { %5997 = vmatpush3.msra.mxu1 %v6924_v28 }
0x249c   :  { %5998 = vmatprep.subr.mxu1 %v6581_v0 }
0x249d   :  { %5999 = vmatpush3.msra.mxu1 %v6928_v29 }
0x249e   :  { %6000 = vmatprep.subr.mxu1 %v6581_v0 }
0x249f   :  { %6001 = vmatpush3.msra.mxu1 %v6931_v6 }
0x24a0   :  { %6016 = vmatprep.subr.mxu1 %v6581_v0 }
0x2558   :  { %v2503_v7 = vpop.f32.mrf.mxu1 }
0x2559   :  { %v2508_v51 = vrot.slane %v2503_v7, 6 }
0x255a   :  { %v5982_v10 = vpop.f32.mrf.mxu1 }
0x255b   :  { %v2510_v12 = vadd.f32 %v2508_v51, %v6888_v16 }
0x255d   :  { %v2513_v17 = vadd.f32 %v2511_v8, %v2510_v12 }
0x255f   :  { %v2514_v18 = vmax.f32 %v2513_v17, 0.0 }
0x2561   :  { %v2586_v19 = vrot.slane %v2514_v18, 2 }
0x2563   :  { %6003 = vmatmul.mubr.msk.f32.vlgmr.msra.gmra.mxu1 %vm105_vm8, %v2586_v19 }
0x2564   :  { %6017 = vmatpush3.msra.mxu1 %v6818_v40  ;;  %6024 = vmatprep.mubr.msk.f32.mxu1 %vm6582_vm0, %v6581_v0 }
0x2565   :  { %6018 = vmatprep.subr.mxu1 %v6581_v0 }
0x2566   :  { %6019 = vmatpush3.msra.mxu1 %v6822_v42 }
0x2567   :  { %6020 = vmatprep.subr.mxu1 %v6581_v0 }
0x2568   :  { %6021 = vmatpush3.msra.mxu1 %v6828_v43 }
0x2569   :  { %6022 = vmatprep.subr.mxu1 %v6581_v0 }
0x256a   :  { %6023 = vmatpush3.msra.mxu1 %v6832_v44 }
0x256b   :  { %6043 = vmatprep.subr.mxu1 %v6581_v0 }
0x2623   :  { %v2655_v35 = vpop.f32.mrf.mxu1 }
0x2624   :  { %v2656_v25 = vadd.f32 %v2655_v35, %v2581_v45 }
0x2625   :  { %v6004_v2 = vpop.f32.mrf.mxu1 }
0x2626   :  { %v2659_v26 = vadd.f32 %v2656_v25, %v6951_v36 }
0x2628   :  { %2667 = vrot.lane.b32.xlu0 %v2659_v26, %s6583_s13  ;;  %v5407_v11 = vmul.f32 -1.442695, %v2659_v26 }
0x262a   :  { %6399 = vpow2.f32 %v5407_v11 }
0x2637   :  { %v6400_v31 = vpop.eup %6399 }
0x2638   :  { %v2663_v32 = vadd.f32 1.0, %v6400_v31 }
0x263a   :  { %6401 = vrcp.f32 %v2663_v32 }
0x2647   :  { %v6402_v33 = vpop.eup %6401 }
0x2648   :  { %v2677_v45 = vsub.f32 1.0, %v6402_v33  ;;  %v2683_v47 = vmul.f32 %v6402_v33, %v7050_v27 }
0x269a   :  { %v2668_v34 = vpop.permute.xlu0 %2667 }
0x269b   :  { %v2670_v37 = vmul.f32 %v6402_v33, %v2668_v34  ;;  %v3013_v34 = vrot.slane %v6936_v30, 5 }
0x269d   :  { %2672 = vrot.lane.b32.xlu1 %v2670_v37, %s6584_s14 }
0x270f   :  { %v2673_v38 = vpop.permute.xlu1 %2672 }
0x2710   :  { %v2675_v39 = vadd.f32 %v2673_v38, %v2659_v26 }
0x2712   :  { %6403 = vtanh.f32 %v2675_v39 }
0x271f   :  { %v6404_v41 = vpop.eup %6403 }
0x2720   :  { %2679 = vrot.lane.b32.xlu1 %v6404_v41, %s6585_s15 }
0x2792   :  { %v2680_v46 = vpop.permute.xlu1 %2679 }
0x2793   :  { %v2682_v48 = vmul.f32 %v2680_v46, %v2677_v45 }
0x2795   :  { %v7125_v49 = vadd.f32 %v2683_v47, %v2682_v48 }
0x2797   :  { %2686 = vrot.lane.b32.xlu0 %v7125_v49, %s6585_s15 }
0x2809   :  { %v2687_v52 = vpop.permute.xlu0 %2686 }
0x280a   :  { %6014 = vmatmul.mubr.msk.f32.vlgmr.msra.gmra.mxu0 %vm105_vm8, %v2687_v52  ;;  %6025 = vmatmul.mubr.msk.f32.vlgmr.msra.gmra.mxu1 %vm105_vm8, %v2687_v52 }
0x280b   :  { %6028 = vmatpush3.msra.mxu0 %v6871_v9  ;;  %6044 = vmatpush3.msra.mxu1 %v6890_v20 }
0x280c   :  { %6045 = vmatprep.subr.mxu1 %v6581_v0  ;;  %6051 = vmatprep.mubr.msk.f32.mxu1 %vm6582_vm0, %v6581_v0 }
0x280d   :  { %6046 = vmatpush3.msra.mxu1 %v6893_v21  ;;  %6029 = vmatprep.mubr.msk.f32.mxu0 %vm6582_vm0, %v6581_v0 }
0x280e   :  { %6047 = vmatprep.subr.mxu1 %v6581_v0  ;;  %6032 = vmatprep.subr.mxu0 %v6581_v0 }
0x280f   :  { %6048 = vmatpush3.msra.mxu1 %v6899_v22 }
0x2810   :  { %6049 = vmatprep.subr.mxu1 %v6581_v0 }
0x2811   :  { %6050 = vmatpush3.msra.mxu1 %v6903_v23 }
0x2812   :  { %6052 = vmatmul.mubr.msk.f32.vlgmr.msra.gmra.mxu1 %vm105_vm8, %v2687_v52  ;;  %6065 = vmatprep.subr.mxu1 %v6581_v0 }
0x2813   :  { %6066 = vmatpush3.msra.mxu1 %v6956_v56  ;;  %6073 = vmatprep.mubr.msk.f32.mxu1 %vm6582_vm0, %v6581_v0 }
0x2814   :  { %6067 = vmatprep.subr.mxu1 %v6581_v0 }
0x2815   :  { %6068 = vmatpush3.msra.mxu1 %v6958_v57 }
0x2816   :  { %6069 = vmatprep.subr.mxu1 %v6581_v0 }
0x2817   :  { %6070 = vmatpush3.msra.mxu1 %v6962_v58 }
0x2818   :  { %6071 = vmatprep.subr.mxu1 %v6581_v0 }
0x2819   :  { %6072 = vmatpush3.msra.mxu1 %v6966_v60 }
0x281a   :  { %6087 = vmatprep.subr.mxu1 %v6581_v0 }
0x28ca   :  { %v7156_v27 = vpop.f32.mrf.mxu0  ;;  %v2839_v54 = vpop.f32.mrf.mxu1 }
0x28cb   :  { %v2844_v55 = vrot.slane %v2839_v54, 5 }
0x28cc   :  { %v6015_v62 = vpop.f32.mrf.mxu0  ;;  %v6026_v63 = vpop.f32.mrf.mxu1 }
0x28cd   :  { %v2846_v1 = vadd.f32 %v2844_v55, %v6850_v53 }
0x28cf   :  { %v2849_v3 = vadd.f32 %v2847_v61, %v2846_v1 }
0x28d1   :  { %v2851_v7 = vsel %vm2850_vm13, %v2849_v3, -inf }
0x28d2   :  { %v3083_v51 = vpop.f32.mrf.mxu1  ;;  %2852 = vmax.xlane.f32.xlu1 %v2851_v7 }
0x28d4   :  { %v6053_v8 = vpop.f32.mrf.mxu1 }
0x295b   :  { %v2853_v10 = vpop.xlane.xlu1 %2852 }
0x295c   :  { %v2854_v12 = vsub.f32 %v2849_v3, %v2853_v10 }
0x295e   :  { %v2855_v17 = vmul.f32 1.442695, %v2854_v12 }
0x2960   :  { %6405 = vpow2.f32 %v2855_v17 }
0x296d   :  { %v6406_v18 = vpop.eup %6405 }
0x296e   :  { %v2857_v19 = vsel %vm2850_vm13, %v6406_v18, 0.0 }
0x296f   :  { %2858 = vadd.xlane.f32.xlu0 %v2857_v19 }
0x29f8   :  { %v2859_v35 = vpop.xlane.xlu0 %2858 }
0x29f9   :  { %6407 = vrcp.f32 %v2859_v35 }
0x2a06   :  { %v6408_v25 = vpop.eup %6407 }
0x2a07   :  { %v2861_v2 = vmul.f32 %v6408_v25, %v6406_v18 }
0x2a09   :  { %v2863_v26 = vrot.slane %v2861_v2, 3 }
0x2a0b   :  { %6030 = vmatmul.mubr.msk.f32.vlgmr.msra.gmra.mxu0 %vm1359_vm10, %v2863_v26 }
0x2a0c   :  { %6033 = vmatpush3.msra.mxu0 %v6876_v13  ;;  %6040 = vmatprep.mubr.msk.f32.mxu0 %vm6582_vm0, %v6581_v0 }
0x2a0d   :  { %6034 = vmatprep.subr.mxu0 %v6581_v0 }
0x2a0e   :  { %6035 = vmatpush3.msra.mxu0 %v6878_v14 }
0x2a0f   :  { %6036 = vmatprep.subr.mxu0 %v6581_v0 }
0x2a10   :  { %6037 = vmatpush3.msra.mxu0 %v6882_v15 }
0x2a11   :  { %6038 = vmatprep.subr.mxu0 %v6581_v0 }
0x2a12   :  { %6039 = vmatpush3.msra.mxu0 %v6913_v24 }
0x2a13   :  { %6054 = vmatprep.subr.mxu0 %v6581_v0 }
0x2acb   :  { %v2932_v11 = vpop.f32.mrf.mxu0 }
0x2acc   :  { %6041 = vmatmul.mubr.msk.f32.vlgmr.msra.gmra.mxu0 %vm105_vm8, %v2932_v11 }
0x2acd   :  { %v6031_v31 = vpop.f32.mrf.mxu0  ;;  %6055 = vmatpush3.msra.mxu0 %v6920_v4  ;;  %6062 = vmatprep.mubr.msk.f32.mxu0 %vm6582_vm0, %v6581_v0 }
0x2ace   :  { %6056 = vmatprep.subr.mxu0 %v6581_v0 }
0x2acf   :  { %6057 = vmatpush3.msra.mxu0 %v6924_v28 }
0x2ad0   :  { %6058 = vmatprep.subr.mxu0 %v6581_v0 }
0x2ad1   :  { %6059 = vmatpush3.msra.mxu0 %v6928_v29 }
0x2ad2   :  { %6060 = vmatprep.subr.mxu0 %v6581_v0 }
0x2ad3   :  { %6061 = vmatpush3.msra.mxu0 %v6931_v6 }
0x2ad4   :  { %6076 = vmatprep.subr.mxu0 %v6581_v0 }
0x2b8c   :  { %v3005_v32 = vpop.f32.mrf.mxu0 }
0x2b8d   :  { %v3010_v33 = vrot.slane %v3005_v32, 5 }
0x2b8e   :  { %v6042_v37 = vpop.f32.mrf.mxu0 }
0x2b8f   :  { %v3012_v38 = vadd.f32 %v3010_v33, %v6888_v16 }
0x2b91   :  { %v3015_v39 = vadd.f32 %v3013_v34, %v3012_v38 }
0x2b93   :  { %v3016_v41 = vmax.f32 %v3015_v39, 0.0 }
0x2b95   :  { %v3088_v45 = vrot.slane %v3016_v41, 3 }
0x2b97   :  { %6063 = vmatmul.mubr.msk.f32.vlgmr.msra.gmra.mxu0 %vm105_vm8, %v3088_v45 }
0x2b98   :  { %6077 = vmatpush3.msra.mxu0 %v6818_v40  ;;  %6084 = vmatprep.mubr.msk.f32.mxu0 %vm6582_vm0, %v6581_v0 }
0x2b99   :  { %6078 = vmatprep.subr.mxu0 %v6581_v0 }
0x2b9a   :  { %6079 = vmatpush3.msra.mxu0 %v6822_v42 }
0x2b9b   :  { %6080 = vmatprep.subr.mxu0 %v6581_v0 }
0x2b9c   :  { %6081 = vmatpush3.msra.mxu0 %v6828_v43 }
0x2b9d   :  { %6082 = vmatprep.subr.mxu0 %v6581_v0 }
0x2b9e   :  { %6083 = vmatpush3.msra.mxu0 %v6832_v44 }
0x2b9f   :  { %6103 = vmatprep.subr.mxu0 %v6581_v0 }
0x2c57   :  { %v3157_v46 = vpop.f32.mrf.mxu0 }
0x2c58   :  { %v3158_v47 = vadd.f32 %v3157_v46, %v3083_v51  ;;  %v7260_v46 = vld [vmem:[#allocation5 + $0xd8] sm:$0xff] }
0x2c59   :  { %v6064_v40 = vpop.f32.mrf.mxu0 }
0x2c5a   :  { %v3161_v48 = vadd.f32 %v3158_v47, %v6951_v36 }
0x2c5c   :  { %3169 = vrot.lane.b32.xlu0 %v3161_v48, %s6583_s13  ;;  %v5414_v52 = vmul.f32 -1.442695, %v3161_v48 }
0x2c5e   :  { %6409 = vpow2.f32 %v5414_v52 }
0x2c6b   :  { %v6410_v42 = vpop.eup %6409 }
0x2c6c   :  { %v3165_v54 = vadd.f32 1.0, %v6410_v42 }
0x2c6e   :  { %6411 = vrcp.f32 %v3165_v54 }
0x2c7b   :  { %v6412_v55 = vpop.eup %6411 }
0x2c7c   :  { %v3179_v1 = vsub.f32 1.0, %v6412_v55  ;;  %v3185_v7 = vmul.f32 %v6412_v55, %v7125_v49 }
0x2cce   :  { %v3170_v43 = vpop.permute.xlu0 %3169 }
0x2ccf   :  { %v3172_v61 = vmul.f32 %v6412_v55, %v3170_v43 }
0x2cd1   :  { %3174 = vrot.lane.b32.xlu1 %v3172_v61, %s6584_s14 }
0x2d43   :  { %v3175_v44 = vpop.permute.xlu1 %3174 }
0x2d44   :  { %v3177_v62 = vadd.f32 %v3175_v44, %v3161_v48 }
0x2d46   :  { %6413 = vtanh.f32 %v3177_v62 }
0x2d53   :  { %v6414_v63 = vpop.eup %6413 }
0x2d54   :  { %3181 = vrot.lane.b32.xlu1 %v6414_v63, %s6585_s15 }
0x2dc6   :  { %v3182_v3 = vpop.permute.xlu1 %3181 }
0x2dc7   :  { %v3184_v51 = vmul.f32 %v3182_v3, %v3179_v1 }
0x2dc9   :  { %v7200_v8 = vadd.f32 %v3185_v7, %v3184_v51 }
0x2dcb   :  { %3188 = vrot.lane.b32.xlu0 %v7200_v8, %s6585_s15 }
0x2e3d   :  { %v3189_v10 = vpop.permute.xlu0 %3188 }
0x2e3e   :  { %6074 = vmatmul.mubr.msk.f32.vlgmr.msra.gmra.mxu1 %vm105_vm8, %v3189_v10  ;;  %6085 = vmatmul.mubr.msk.f32.vlgmr.msra.gmra.mxu0 %vm105_vm8, %v3189_v10 }
0x2e3f   :  { %6088 = vmatpush3.msra.mxu1 %v6871_v9  ;;  %6104 = vmatpush3.msra.mxu0 %v6890_v20 }
0x2e40   :  { %6105 = vmatprep.subr.mxu0 %v6581_v0  ;;  %6111 = vmatprep.mubr.msk.f32.mxu0 %vm6582_vm0, %v6581_v0 }
0x2e41   :  { %6106 = vmatpush3.msra.mxu0 %v6893_v21  ;;  %6089 = vmatprep.mubr.msk.f32.mxu1 %vm6582_vm0, %v6581_v0 }
0x2e42   :  { %6107 = vmatprep.subr.mxu0 %v6581_v0  ;;  %6092 = vmatprep.subr.mxu1 %v6581_v0 }
0x2e43   :  { %6108 = vmatpush3.msra.mxu0 %v6899_v22 }
0x2e44   :  { %6109 = vmatprep.subr.mxu0 %v6581_v0 }
0x2e45   :  { %6110 = vmatpush3.msra.mxu0 %v6903_v23  ;;  %v3349_v23 = vrot.slane %v6860_v59, 4 }
0x2e46   :  { %6112 = vmatmul.mubr.msk.f32.vlgmr.msra.gmra.mxu0 %vm105_vm8, %v3189_v10  ;;  %6125 = vmatprep.subr.mxu0 %v6581_v0 }
0x2e47   :  { %6126 = vmatpush3.msra.mxu0 %v6956_v56  ;;  %6133 = vmatprep.mubr.msk.f32.mxu0 %vm6582_vm0, %v6581_v0 }
0x2e48   :  { %6127 = vmatprep.subr.mxu0 %v6581_v0 }
0x2e49   :  { %6128 = vmatpush3.msra.mxu0 %v6958_v57 }
0x2e4a   :  { %6129 = vmatprep.subr.mxu0 %v6581_v0 }
0x2e4b   :  { %6130 = vmatpush3.msra.mxu0 %v6962_v58 }
0x2e4c   :  { %6131 = vmatprep.subr.mxu0 %v6581_v0 }
0x2e4d   :  { %6132 = vmatpush3.msra.mxu0 %v6966_v60 }
0x2e4e   :  { %6147 = vmatprep.subr.mxu0 %v6581_v0 }
0x2efe   :  { %v7231_v20 = vpop.f32.mrf.mxu1  ;;  %v3341_v21 = vpop.f32.mrf.mxu0 }
0x2eff   :  { %v3346_v22 = vrot.slane %v3341_v21, 4 }
0x2f00   :  { %v6075_v49 = vpop.f32.mrf.mxu1  ;;  %v6086_v12 = vpop.f32.mrf.mxu0 }
0x2f01   :  { %v3348_v17 = vadd.f32 %v3346_v22, %v6850_v53  ;;  %v7290_v22 = vld [vmem:[#allocation5 + $0x98] sm:$0xff]  ;;  %v7307_v49 = vld [vmem:[#allocation5 + $0x80] sm:$0xff] }
0x2f03   :  { %v3351_v18 = vadd.f32 %v3349_v23, %v3348_v17  ;;  %v7303_v23 = vld [vmem:[#allocation5 + $0x88] sm:$0xff] }
0x2f05   :  { %v3353_v19 = vsel %vm3352_vm14, %v3351_v18, -inf }
0x2f06   :  { %v3585_v35 = vpop.f32.mrf.mxu0  ;;  %3354 = vmax.xlane.f32.xlu1 %v3353_v19 }
0x2f08   :  { %v6113_v25 = vpop.f32.mrf.mxu0 }
0x2f8f   :  { %v3355_v2 = vpop.xlane.xlu1 %3354 }
0x2f90   :  { %v3356_v26 = vsub.f32 %v3351_v18, %v3355_v2  ;;  %v7324_v18 = vld [vmem:[#allocation5 + $0x142] sm:$0x1] }
0x2f91   :  { %v3851_v19 = vrot.slane %v7324_v18, 3 }
0x2f92   :  { %v3357_v11 = vmul.f32 1.442695, %v3356_v26 }
0x2f94   :  { %6415 = vpow2.f32 %v3357_v11 }
0x2fa1   :  { %v6416_v31 = vpop.eup %6415 }
0x2fa2   :  { %v3359_v32 = vsel %vm3352_vm14, %v6416_v31, 0.0 }
0x2fa3   :  { %3360 = vadd.xlane.f32.xlu0 %v3359_v32 }
0x302c   :  { %v3361_v33 = vpop.xlane.xlu0 %3360 }
0x302d   :  { %6417 = vrcp.f32 %v3361_v33 }
0x303a   :  { %v6418_v59 = vpop.eup %6417 }
0x303b   :  { %v3363_v34 = vmul.f32 %v6418_v59, %v6416_v31 }
0x303d   :  { %v3365_v37 = vrot.slane %v3363_v34, 4 }
0x303f   :  { %6090 = vmatmul.mubr.msk.f32.vlgmr.msra.gmra.mxu1 %vm1359_vm10, %v3365_v37 }
0x3040   :  { %6093 = vmatpush3.msra.mxu1 %v6876_v13  ;;  %6100 = vmatprep.mubr.msk.f32.mxu1 %vm6582_vm0, %v6581_v0 }
0x3041   :  { %6094 = vmatprep.subr.mxu1 %v6581_v0 }
0x3042   :  { %6095 = vmatpush3.msra.mxu1 %v6878_v14 }
0x3043   :  { %6096 = vmatprep.subr.mxu1 %v6581_v0 }
0x3044   :  { %6097 = vmatpush3.msra.mxu1 %v6882_v15 }
0x3045   :  { %6098 = vmatprep.subr.mxu1 %v6581_v0 }
0x3046   :  { %6099 = vmatpush3.msra.mxu1 %v6913_v24  ;;  %v3515_v24 = vrot.slane %v6936_v30, 4  ;;  %v7274_v30 = vld [vmem:[#allocation5 + $0xc0] sm:$0xff] }
0x3047   :  { %6114 = vmatprep.subr.mxu1 %v6581_v0 }
0x30ff   :  { %v3434_v38 = vpop.f32.mrf.mxu1 }
0x3100   :  { %6101 = vmatmul.mubr.msk.f32.vlgmr.msra.gmra.mxu1 %vm105_vm8, %v3434_v38 }
0x3101   :  { %v6091_v13 = vpop.f32.mrf.mxu1  ;;  %6115 = vmatpush3.msra.mxu1 %v6920_v4  ;;  %6122 = vmatprep.mubr.msk.f32.mxu1 %vm6582_vm0, %v6581_v0 }
0x3102   :  { %6116 = vmatprep.subr.mxu1 %v6581_v0 }
0x3103   :  { %6117 = vmatpush3.msra.mxu1 %v6924_v28 }
0x3104   :  { %6118 = vmatprep.subr.mxu1 %v6581_v0 }
0x3105   :  { %6119 = vmatpush3.msra.mxu1 %v6928_v29  ;;  %v7266_v29 = vld [vmem:[#allocation5 + $0xd0] sm:$0xff] }
0x3106   :  { %6120 = vmatprep.subr.mxu1 %v6581_v0 }
0x3107   :  { %6121 = vmatpush3.msra.mxu1 %v6931_v6  ;;  %v7270_v6 = vld [vmem:[#allocation5 + $0xc8] sm:$0xff] }
0x3108   :  { %6136 = vmatprep.subr.mxu1 %v6581_v0 }
0x31c0   :  { %v3507_v14 = vpop.f32.mrf.mxu1 }
0x31c1   :  { %v3512_v15 = vrot.slane %v3507_v14, 4  ;;  %v7331_v14 = vld [vmem:[#allocation5 + $0x118] sm:$0xff] }
0x31c2   :  { %v6102_v4 = vpop.f32.mrf.mxu1 }
0x31c3   :  { %v3514_v39 = vadd.f32 %v3512_v15, %v6888_v16  ;;  %v7337_v15 = vld [vmem:[#allocation5 + $0x110] sm:$0xff]  ;;  %v7345_v4 = vld [vmem:[#allocation5 + $0x100] sm:$0xff] }
0x31c5   :  { %v3517_v41 = vadd.f32 %v3515_v24, %v3514_v39  ;;  %v7341_v24 = vld [vmem:[#allocation5 + $0x108] sm:$0xff] }
0x31c7   :  { %v3518_v45 = vmax.f32 %v3517_v41, 0.0 }
0x31c9   :  { %v3590_v28 = vrot.slane %v3518_v45, 4  ;;  %v7350_v45 = vld [vmem:[#allocation5 + $0x78] sm:$0xff] }
0x31cb   :  { %6123 = vmatmul.mubr.msk.f32.vlgmr.msra.gmra.mxu1 %vm105_vm8, %v3590_v28  ;;  %v7356_v28 = vld [vmem:[#allocation5 + $0x70] sm:$0xff] }
0x31cc   :  { %6137 = vmatpush3.msra.mxu1 %v7260_v46  ;;  %6144 = vmatprep.mubr.msk.f32.mxu1 %vm6582_vm0, %v6581_v0 }
0x31cd   :  { %6138 = vmatprep.subr.mxu1 %v6581_v0 }
0x31ce   :  { %6139 = vmatpush3.msra.mxu1 %v7266_v29 }
0x31cf   :  { %6140 = vmatprep.subr.mxu1 %v6581_v0 }
0x31d0   :  { %6141 = vmatpush3.msra.mxu1 %v7270_v6 }
0x31d1   :  { %6142 = vmatprep.subr.mxu1 %v6581_v0 }
0x31d2   :  { %6143 = vmatpush3.msra.mxu1 %v7274_v30 }
0x31d3   :  { %6163 = vmatprep.subr.mxu1 %v6581_v0 }
0x328b   :  { %v3659_v47 = vpop.f32.mrf.mxu1 }
0x328c   :  { %v3660_v40 = vadd.f32 %v3659_v47, %v3585_v35  ;;  %v7360_v47 = vld [vmem:[#allocation5 + $0x68] sm:$0xff] }
0x328d   :  { %v6124_v48 = vpop.f32.mrf.mxu1 }
0x328e   :  { %v3663_v52 = vadd.f32 %v3660_v40, %v6951_v36  ;;  %v7364_v40 = vld [vmem:[#allocation5 + $0x60] sm:$0xff] }
0x3290   :  { %3671 = vrot.lane.b32.xlu0 %v3663_v52, %s6583_s13  ;;  %v5421_v42 = vmul.f32 -1.442695, %v3663_v52 }
0x3292   :  { %6419 = vpow2.f32 %v5421_v42  ;;  %v7368_v42 = vld [vmem:[#allocation5 + $0x143] sm:$0x1] }
0x329f   :  { %v6420_v54 = vpop.eup %6419 }
0x32a0   :  { %v3667_v55 = vadd.f32 1.0, %v6420_v54  ;;  %v4017_v54 = vrot.slane %v7368_v42, 3 }
0x32a2   :  { %6421 = vrcp.f32 %v3667_v55 }
0x32af   :  { %v6422_v43 = vpop.eup %6421 }
0x32b0   :  { %v3681_v3 = vsub.f32 1.0, %v6422_v43  ;;  %v3687_v7 = vmul.f32 %v6422_v43, %v7200_v8  ;;  %v7296_v8 = vld [vmem:[#allocation5 + $0x90] sm:$0xff] }
0x3302   :  { %v3672_v61 = vpop.permute.xlu0 %3671 }
0x3303   :  { %v3674_v44 = vmul.f32 %v6422_v43, %v3672_v61 }
0x3305   :  { %3676 = vrot.lane.b32.xlu1 %v3674_v44, %s6584_s14 }
0x3377   :  { %v3677_v62 = vpop.permute.xlu1 %3676 }
0x3378   :  { %v3679_v63 = vadd.f32 %v3677_v62, %v3663_v52 }
0x337a   :  { %6423 = vtanh.f32 %v3679_v63 }
0x3387   :  { %v6424_v1 = vpop.eup %6423 }
0x3388   :  { %3683 = vrot.lane.b32.xlu1 %v6424_v1, %s6585_s15 }
0x33fa   :  { %v3684_v36 = vpop.permute.xlu1 %3683 }
0x33fb   :  { %v3686_v51 = vmul.f32 %v3684_v36, %v3681_v3  ;;  %v7384_v36 = vld [vmem:[#allocation5 + $0x141] sm:$0x1] }
0x33fd   :  { %v7283_v10 = vadd.f32 %v3687_v7, %v3686_v51 }
0x33ff   :  { %3690 = vrot.lane.b32.xlu0 %v7283_v10, %s6585_s15 }
0x3471   :  { %v3691_v21 = vpop.permute.xlu0 %3690 }
0x3472   :  { %6134 = vmatmul.mubr.msk.f32.vlgmr.msra.gmra.mxu0 %vm105_vm8, %v3691_v21  ;;  %6145 = vmatmul.mubr.msk.f32.vlgmr.msra.gmra.mxu1 %vm105_vm8, %v3691_v21 }
0x3473   :  { %6148 = vmatpush3.msra.mxu0 %v6871_v9  ;;  %6164 = vmatpush3.msra.mxu1 %v7290_v22 }
0x3474   :  { %6165 = vmatprep.subr.mxu1 %v6581_v0  ;;  %6171 = vmatprep.mubr.msk.f32.mxu1 %vm6582_vm0, %v6581_v0 }
0x3475   :  { %6166 = vmatpush3.msra.mxu1 %v7296_v8  ;;  %6149 = vmatprep.mubr.msk.f32.mxu0 %vm6582_vm0, %v6581_v0 }
0x3476   :  { %6167 = vmatprep.subr.mxu1 %v6581_v0  ;;  %6152 = vmatprep.subr.mxu0 %v6581_v0 }
0x3477   :  { %6168 = vmatpush3.msra.mxu1 %v7303_v23 }
0x3478   :  { %6169 = vmatprep.subr.mxu1 %v6581_v0 }
0x3479   :  { %6170 = vmatpush3.msra.mxu1 %v7307_v49 }
0x347a   :  { %6172 = vmatmul.mubr.msk.f32.vlgmr.msra.gmra.mxu1 %vm105_vm8, %v3691_v21  ;;  %6185 = vmatprep.subr.mxu1 %v6581_v0 }
0x347b   :  { %6186 = vmatpush3.msra.mxu1 %v6956_v56  ;;  %6193 = vmatprep.mubr.msk.f32.mxu1 %vm6582_vm0, %v6581_v0 }
0x347c   :  { %6187 = vmatprep.subr.mxu1 %v6581_v0 }
0x347d   :  { %6188 = vmatpush3.msra.mxu1 %v6958_v57 }
0x347e   :  { %6189 = vmatprep.subr.mxu1 %v6581_v0 }
0x347f   :  { %6190 = vmatpush3.msra.mxu1 %v6962_v58 }
0x3480   :  { %6191 = vmatprep.subr.mxu1 %v6581_v0 }
0x3481   :  { %6192 = vmatpush3.msra.mxu1 %v6966_v60 }
0x3482   :  { %6207 = vmatprep.subr.mxu1 %v6581_v0 }
0x3532   :  { %v7322_v12 = vpop.f32.mrf.mxu0  ;;  %v3843_v56 = vpop.f32.mrf.mxu1 }
0x3533   :  { %v3848_v17 = vrot.slane %v3843_v56, 3 }
0x3534   :  { %v6135_v35 = vpop.f32.mrf.mxu0  ;;  %v6146_v57 = vpop.f32.mrf.mxu1 }
0x3535   :  { %v3850_v25 = vadd.f32 %v3848_v17, %v6850_v53 }
0x3537   :  { %v3853_v58 = vadd.f32 %v3851_v19, %v3850_v25 }
0x3539   :  { %v3855_v2 = vsel %vm3854_vm15, %v3853_v58, -inf }
0x353a   :  { %v7328_v26 = vpop.f32.mrf.mxu1  ;;  %3856 = vmax.xlane.f32.xlu1 %v3855_v2 }
0x353c   :  { %v6173_v60 = vpop.f32.mrf.mxu1 }
0x35c3   :  { %v3857_v11 = vpop.xlane.xlu1 %3856 }
0x35c4   :  { %v3858_v31 = vsub.f32 %v3853_v58, %v3857_v11 }
0x35c6   :  { %v3859_v32 = vmul.f32 1.442695, %v3858_v31 }
0x35c8   :  { %6425 = vpow2.f32 %v3859_v32 }
0x35d5   :  { %v6426_v33 = vpop.eup %6425 }
0x35d6   :  { %v3861_v59 = vsel %vm3854_vm15, %v6426_v33, 0.0 }
0x35d7   :  { %3862 = vadd.xlane.f32.xlu0 %v3861_v59  ;;  %v7422_v59 = vld [vmem:[#allocation5 + $0x128] sm:$0xff] }
0x3660   :  { %v3863_v34 = vpop.xlane.xlu0 %3862 }
0x3661   :  { %6427 = vrcp.f32 %v3863_v34  ;;  %v7426_v34 = vld [vmem:[#allocation5 + $0x120] sm:$0xff] }
0x366e   :  { %v6428_v37 = vpop.eup %6427 }
0x366f   :  { %v3865_v38 = vmul.f32 %v6428_v37, %v6426_v33  ;;  %v7418_v33 = vld [vmem:[#allocation5 + $0x130] sm:$0xff] }
0x3671   :  { %v3867_v13 = vrot.slane %v3865_v38, 5 }
0x3673   :  { %6150 = vmatmul.mubr.msk.f32.vlgmr.msra.gmra.mxu0 %vm1359_vm10, %v3867_v13 }
0x3674   :  { %6153 = vmatpush3.msra.mxu0 %v7331_v14  ;;  %6160 = vmatprep.mubr.msk.f32.mxu0 %vm6582_vm0, %v6581_v0 }
0x3675   :  { %6154 = vmatprep.subr.mxu0 %v6581_v0 }
0x3676   :  { %6155 = vmatpush3.msra.mxu0 %v7337_v15 }
0x3677   :  { %6156 = vmatprep.subr.mxu0 %v6581_v0 }
0x3678   :  { %6157 = vmatpush3.msra.mxu0 %v7341_v24 }
0x3679   :  { %6158 = vmatprep.subr.mxu0 %v6581_v0 }
0x367a   :  { %6159 = vmatpush3.msra.mxu0 %v7345_v4 }
0x367b   :  { %6174 = vmatprep.subr.mxu0 %v6581_v0 }
0x3733   :  { %v3936_v39 = vpop.f32.mrf.mxu0 }
0x3734   :  { %6161 = vmatmul.mubr.msk.f32.vlgmr.msra.gmra.mxu0 %vm105_vm8, %v3936_v39  ;;  %v4353_v39 = vrot.slane %v7324_v18, 2 }
0x3735   :  { %v6151_v41 = vpop.f32.mrf.mxu0  ;;  %6175 = vmatpush3.msra.mxu0 %v7350_v45  ;;  %6182 = vmatprep.mubr.msk.f32.mxu0 %vm6582_vm0, %v6581_v0 }
0x3736   :  { %6176 = vmatprep.subr.mxu0 %v6581_v0 }
0x3737   :  { %6177 = vmatpush3.msra.mxu0 %v7356_v28 }
0x3738   :  { %6178 = vmatprep.subr.mxu0 %v6581_v0 }
0x3739   :  { %6179 = vmatpush3.msra.mxu0 %v7360_v47 }
0x373a   :  { %6180 = vmatprep.subr.mxu0 %v6581_v0 }
0x373b   :  { %6181 = vmatpush3.msra.mxu0 %v7364_v40 }
0x373c   :  { %6196 = vmatprep.subr.mxu0 %v6581_v0 }
0x37f4   :  { %v4009_v48 = vpop.f32.mrf.mxu0 }
0x37f5   :  { %v4014_v52 = vrot.slane %v4009_v48, 3 }
0x37f6   :  { %v6162_v55 = vpop.f32.mrf.mxu0 }
0x37f7   :  { %v4016_v43 = vadd.f32 %v4014_v52, %v6888_v16 }
0x37f9   :  { %v4019_v61 = vadd.f32 %v4017_v54, %v4016_v43 }
0x37fb   :  { %v4020_v44 = vmax.f32 %v4019_v61, 0.0 }
0x37fd   :  { %v4092_v62 = vrot.slane %v4020_v44, 5 }
0x37ff   :  { %6183 = vmatmul.mubr.msk.f32.vlgmr.msra.gmra.mxu0 %vm105_vm8, %v4092_v62 }
0x3800   :  { %6197 = vmatpush3.msra.mxu0 %v7260_v46  ;;  %6204 = vmatprep.mubr.msk.f32.mxu0 %vm6582_vm0, %v6581_v0 }
0x3801   :  { %6198 = vmatprep.subr.mxu0 %v6581_v0 }
0x3802   :  { %6199 = vmatpush3.msra.mxu0 %v7266_v29 }
0x3803   :  { %6200 = vmatprep.subr.mxu0 %v6581_v0 }
0x3804   :  { %6201 = vmatpush3.msra.mxu0 %v7270_v6 }
0x3805   :  { %6202 = vmatprep.subr.mxu0 %v6581_v0 }
0x3806   :  { %6203 = vmatpush3.msra.mxu0 %v7274_v30 }
0x3807   :  { %6223 = vmatprep.subr.mxu0 %v6581_v0 }
0x38bf   :  { %v4161_v63 = vpop.f32.mrf.mxu0 }
0x38c0   :  { %v4162_v1 = vadd.f32 %v4161_v63, %v7328_v26 }
0x38c1   :  { %v6184_v3 = vpop.f32.mrf.mxu0 }
0x38c2   :  { %v4165_v7 = vadd.f32 %v7384_v36, %v4162_v1 }
0x38c4   :  { %4173 = vrot.lane.b32.xlu0 %v4165_v7, %s6583_s13  ;;  %v5428_v51 = vmul.f32 -1.442695, %v4165_v7 }
0x38c6   :  { %6429 = vpow2.f32 %v5428_v51 }
0x38d3   :  { %v6430_v21 = vpop.eup %6429 }
0x38d4   :  { %v4169_v56 = vadd.f32 1.0, %v6430_v21 }
0x38d6   :  { %6431 = vrcp.f32 %v4169_v56 }
0x38e3   :  { %v6432_v17 = vpop.eup %6431 }
0x38e4   :  { %v4183_v2 = vsub.f32 1.0, %v6432_v17  ;;  %v4189_v60 = vmul.f32 %v6432_v17, %v7283_v10  ;;  %v7412_v10 = vld [vmem:[#allocation5 + $0x138] sm:$0xff] }
0x3936   :  { %v4174_v19 = vpop.permute.xlu0 %4173 }
0x3937   :  { %v4176_v35 = vmul.f32 %v6432_v17, %v4174_v19 }
0x3939   :  { %4178 = vrot.lane.b32.xlu1 %v4176_v35, %s6584_s14 }
0x39ab   :  { %v4179_v57 = vpop.permute.xlu1 %4178 }
0x39ac   :  { %v4181_v25 = vadd.f32 %v4179_v57, %v4165_v7 }
0x39ae   :  { %6433 = vtanh.f32 %v4181_v25  ;;  %v4519_v25 = vrot.slane %v7368_v42, 2 }
0x39bb   :  { %v6434_v58 = vpop.eup %6433 }
0x39bc   :  { %4185 = vrot.lane.b32.xlu1 %v6434_v58, %s6585_s15 }
0x3a2e   :  { %v4186_v26 = vpop.permute.xlu1 %4185 }
0x3a2f   :  { %v4188_v11 = vmul.f32 %v4186_v26, %v4183_v2 }
0x3a31   :  { %v7391_v31 = vadd.f32 %v4189_v60, %v4188_v11 }
0x3a33   :  { %4192 = vrot.lane.b32.xlu0 %v7391_v31, %s6585_s15 }
0x3aa5   :  { %v4193_v32 = vpop.permute.xlu0 %4192 }
0x3aa6   :  { %6194 = vmatmul.mubr.msk.f32.vlgmr.msra.gmra.mxu1 %vm105_vm8, %v4193_v32  ;;  %6205 = vmatmul.mubr.msk.f32.vlgmr.msra.gmra.mxu0 %vm105_vm8, %v4193_v32 }
0x3aa7   :  { %6208 = vmatpush3.msra.mxu1 %v6871_v9  ;;  %6224 = vmatpush3.msra.mxu0 %v7290_v22 }
0x3aa8   :  { %6225 = vmatprep.subr.mxu0 %v6581_v0  ;;  %6231 = vmatprep.mubr.msk.f32.mxu0 %vm6582_vm0, %v6581_v0 }
0x3aa9   :  { %6226 = vmatpush3.msra.mxu0 %v7296_v8  ;;  %6209 = vmatprep.mubr.msk.f32.mxu1 %vm6582_vm0, %v6581_v0 }
0x3aaa   :  { %6227 = vmatprep.subr.mxu0 %v6581_v0  ;;  %6212 = vmatprep.subr.mxu1 %v6581_v0 }
0x3aab   :  { %6228 = vmatpush3.msra.mxu0 %v7303_v23 }
0x3aac   :  { %6229 = vmatprep.subr.mxu0 %v6581_v0 }
0x3aad   :  { %6230 = vmatpush3.msra.mxu0 %v7307_v49 }
0x3aae   :  { %6232 = vmatmul.mubr.msk.f32.vlgmr.msra.gmra.mxu0 %vm105_vm8, %v4193_v32  ;;  %6245 = vmatprep.subr.mxu0 %v6581_v0 }
0x3aaf   :  { %6246 = vmatpush3.msra.mxu0 %v7412_v10  ;;  %6253 = vmatprep.mubr.msk.f32.mxu0 %vm6582_vm0, %v6581_v0 }
0x3ab0   :  { %6247 = vmatprep.subr.mxu0 %v6581_v0 }
0x3ab1   :  { %6248 = vmatpush3.msra.mxu0 %v7418_v33 }
0x3ab2   :  { %6249 = vmatprep.subr.mxu0 %v6581_v0 }
0x3ab3   :  { %6250 = vmatpush3.msra.mxu0 %v7422_v59 }
0x3ab4   :  { %6251 = vmatprep.subr.mxu0 %v6581_v0 }
0x3ab5   :  { %6252 = vmatpush3.msra.mxu0 %v7426_v34 }
0x3ab6   :  { %6267 = vmatprep.subr.mxu0 %v6581_v0 }
0x3b66   :  { %v7430_v37 = vpop.f32.mrf.mxu1  ;;  %v4345_v38 = vpop.f32.mrf.mxu0 }
0x3b67   :  { %v4350_v13 = vrot.slane %v4345_v38, 2 }
0x3b68   :  { %v6195_v41 = vpop.f32.mrf.mxu1  ;;  %v6206_v48 = vpop.f32.mrf.mxu0 }
0x3b69   :  { %v4352_v52 = vadd.f32 %v4350_v13, %v6850_v53 }
0x3b6b   :  { %v4355_v54 = vadd.f32 %v4353_v39, %v4352_v52 }
0x3b6d   :  { %v4357_v55 = vsel %vm4356_vm9, %v4355_v54, -inf }
0x3b6e   :  { %v4589_v43 = vpop.f32.mrf.mxu0  ;;  %4358 = vmax.xlane.f32.xlu1 %v4357_v55 }
0x3b70   :  { %v6233_v61 = vpop.f32.mrf.mxu0 }
0x3bf7   :  { %v4359_v44 = vpop.xlane.xlu1 %4358 }
0x3bf8   :  { %v4360_v62 = vsub.f32 %v4355_v54, %v4359_v44 }
0x3bfa   :  { %v4361_v63 = vmul.f32 1.442695, %v4360_v62 }
0x3bfc   :  { %6435 = vpow2.f32 %v4361_v63 }
0x3c09   :  { %v6436_v1 = vpop.eup %6435 }
0x3c0a   :  { %v4363_v3 = vsel %vm4356_vm9, %v6436_v1, 0.0 }
0x3c0b   :  { %4364 = vadd.xlane.f32.xlu0 %v4363_v3 }
0x3c94   :  { %v4365_v7 = vpop.xlane.xlu0 %4364 }
0x3c95   :  { %6437 = vrcp.f32 %v4365_v7 }
0x3ca2   :  { %v6438_v51 = vpop.eup %6437 }
0x3ca3   :  { %v4367_v21 = vmul.f32 %v6438_v51, %v6436_v1 }
0x3ca5   :  { %v4369_v56 = vrot.slane %v4367_v21, 6 }
0x3ca7   :  { %6210 = vmatmul.mubr.msk.f32.vlgmr.msra.gmra.mxu1 %vm1359_vm10, %v4369_v56 }
0x3ca8   :  { %6213 = vmatpush3.msra.mxu1 %v7331_v14  ;;  %6220 = vmatprep.mubr.msk.f32.mxu1 %vm6582_vm0, %v6581_v0 }
0x3ca9   :  { %6214 = vmatprep.subr.mxu1 %v6581_v0 }
0x3caa   :  { %6215 = vmatpush3.msra.mxu1 %v7337_v15 }
0x3cab   :  { %6216 = vmatprep.subr.mxu1 %v6581_v0 }
0x3cac   :  { %6217 = vmatpush3.msra.mxu1 %v7341_v24 }
0x3cad   :  { %6218 = vmatprep.subr.mxu1 %v6581_v0 }
0x3cae   :  { %6219 = vmatpush3.msra.mxu1 %v7345_v4 }
0x3caf   :  { %6234 = vmatprep.subr.mxu1 %v6581_v0 }
0x3d67   :  { %v4438_v17 = vpop.f32.mrf.mxu1 }
0x3d68   :  { %6221 = vmatmul.mubr.msk.f32.vlgmr.msra.gmra.mxu1 %vm105_vm8, %v4438_v17 }
0x3d69   :  { %v6211_v19 = vpop.f32.mrf.mxu1  ;;  %6235 = vmatpush3.msra.mxu1 %v7350_v45  ;;  %6242 = vmatprep.mubr.msk.f32.mxu1 %vm6582_vm0, %v6581_v0 }
0x3d6a   :  { %6236 = vmatprep.subr.mxu1 %v6581_v0 }
0x3d6b   :  { %6237 = vmatpush3.msra.mxu1 %v7356_v28 }
0x3d6c   :  { %6238 = vmatprep.subr.mxu1 %v6581_v0 }
0x3d6d   :  { %6239 = vmatpush3.msra.mxu1 %v7360_v47 }
0x3d6e   :  { %6240 = vmatprep.subr.mxu1 %v6581_v0 }
0x3d6f   :  { %6241 = vmatpush3.msra.mxu1 %v7364_v40 }
0x3d70   :  { %6256 = vmatprep.subr.mxu1 %v6581_v0 }
0x3e28   :  { %v4511_v35 = vpop.f32.mrf.mxu1 }
0x3e29   :  { %v4516_v57 = vrot.slane %v4511_v35, 2 }
0x3e2a   :  { %v6222_v58 = vpop.f32.mrf.mxu1 }
0x3e2b   :  { %v4518_v2 = vadd.f32 %v4516_v57, %v6888_v16 }
0x3e2d   :  { %v4521_v26 = vadd.f32 %v4519_v25, %v4518_v2 }
0x3e2f   :  { %v4522_v60 = vmax.f32 %v4521_v26, 0.0 }
0x3e31   :  { %v4594_v11 = vrot.slane %v4522_v60, 6 }
0x3e33   :  { %6243 = vmatmul.mubr.msk.f32.vlgmr.msra.gmra.mxu1 %vm105_vm8, %v4594_v11 }
0x3e34   :  { %6257 = vmatpush3.msra.mxu1 %v7260_v46  ;;  %6264 = vmatprep.mubr.msk.f32.mxu1 %vm6582_vm0, %v6581_v0 }
0x3e35   :  { %6258 = vmatprep.subr.mxu1 %v6581_v0 }
0x3e36   :  { %6259 = vmatpush3.msra.mxu1 %v7266_v29 }
0x3e37   :  { %6260 = vmatprep.subr.mxu1 %v6581_v0 }
0x3e38   :  { %6261 = vmatpush3.msra.mxu1 %v7270_v6 }
0x3e39   :  { %6262 = vmatprep.subr.mxu1 %v6581_v0 }
0x3e3a   :  { %6263 = vmatpush3.msra.mxu1 %v7274_v30 }
0x3e3b   :  { %6283 = vmatprep.subr.mxu1 %v6581_v0 }
0x3ef3   :  { %v4663_v32 = vpop.f32.mrf.mxu1 }
0x3ef4   :  { %v4664_v38 = vadd.f32 %v4663_v32, %v4589_v43 }
0x3ef5   :  { %v6244_v46 = vpop.f32.mrf.mxu1 }
0x3ef6   :  { %v4667_v13 = vadd.f32 %v7384_v36, %v4664_v38 }
0x3ef8   :  { %4675 = vrot.lane.b32.xlu0 %v4667_v13, %s6583_s13  ;;  %v5435_v39 = vmul.f32 -1.442695, %v4667_v13 }
0x3efa   :  { %6439 = vpow2.f32 %v5435_v39 }
0x3f07   :  { %v6440_v29 = vpop.eup %6439 }
0x3f08   :  { %v4671_v41 = vadd.f32 1.0, %v6440_v29  ;;  %v7536_v29 = vld [vmem:[#allocation5 + $0x144] sm:$0x1] }
0x3f0a   :  { %6441 = vrcp.f32 %v4671_v41  ;;  %v7544_v41 = vadd.f32 %v7231_v20, %v7536_v29 }
0x3f17   :  { %v6442_v48 = vpop.eup %6441 }
0x3f18   :  { %v4685_v43 = vsub.f32 1.0, %v6442_v48  ;;  %v4691_v44 = vmul.f32 %v6442_v48, %v7391_v31 }
0x3f6a   :  { %v4676_v6 = vpop.permute.xlu0 %4675 }
0x3f6b   :  { %v4678_v52 = vmul.f32 %v6442_v48, %v4676_v6  ;;  %v7550_v6 = vadd.f32 %v7430_v37, %v7536_v29  ;;  %v7560_v37 = vadd.f32 %v7156_v27, %v7536_v29 }
0x3f6d   :  { %4680 = vrot.lane.b32.xlu1 %v4678_v52, %s6584_s14  ;;  %v3262_v52 = vsel %vm78_vm1, %v7544_v41, -inf }
0x3fdf   :  { %v4681_v30 = vpop.permute.xlu1 %4680 }
0x3fe0   :  { %v4683_v54 = vadd.f32 %v4681_v30, %v4667_v13 }
0x3fe2   :  { %6443 = vtanh.f32 %v4683_v54 }
0x3fef   :  { %v6444_v55 = vpop.eup %6443 }
0x3ff0   :  { %4687 = vrot.lane.b32.xlu1 %v6444_v55, %s6585_s15 }
0x4062   :  { %v4688_v61 = vpop.permute.xlu1 %4687 }
0x4063   :  { %v4690_v62 = vmul.f32 %v4688_v61, %v4685_v43  ;;  %v7564_v61 = vadd.f32 %v7006_v50, %v7536_v29 }
0x4065   :  { %v7474_v63 = vadd.f32 %v4691_v44, %v4690_v62  ;;  %v2760_v44 = vsel %vm78_vm1, %v7560_v37, -inf  ;;  %v7570_v62 = vadd.f32 %v7322_v12, %v7536_v29 }
0x4067   :  { %4694 = vrot.lane.b32.xlu0 %v7474_v63, %s6585_s15  ;;  %v3764_v50 = vsel %vm78_vm1, %v7570_v62, -inf }
0x40d9   :  { %v4695_v1 = vpop.permute.xlu0 %4694 }
0x40da   :  { %6254 = vmatmul.mubr.msk.f32.vlgmr.msra.gmra.mxu0 %vm105_vm8, %v4695_v1  ;;  %6265 = vmatmul.mubr.msk.f32.vlgmr.msra.gmra.mxu1 %vm105_vm8, %v4695_v1 }
0x40db   :  { %6268 = vmatpush3.msra.mxu0 %v6871_v9  ;;  %6284 = vmatpush3.msra.mxu1 %v7290_v22 }
0x40dc   :  { %6285 = vmatprep.subr.mxu1 %v6581_v0  ;;  %6291 = vmatprep.mubr.msk.f32.mxu1 %vm6582_vm0, %v6581_v0 }
0x40dd   :  { %6286 = vmatpush3.msra.mxu1 %v7296_v8  ;;  %6269 = vmatprep.mubr.msk.f32.mxu0 %vm6582_vm0, %v6581_v0 }
0x40de   :  { %6287 = vmatprep.subr.mxu1 %v6581_v0  ;;  %6272 = vmatprep.subr.mxu0 %v6581_v0 }
0x40df   :  { %6288 = vmatpush3.msra.mxu1 %v7303_v23  ;;  %v4855_v23 = vrot.slane %v7324_v18, 1 }
0x40e0   :  { %6289 = vmatprep.subr.mxu1 %v6581_v0 }
0x40e1   :  { %6290 = vmatpush3.msra.mxu1 %v7307_v49 }
0x40e2   :  { %6292 = vmatmul.mubr.msk.f32.vlgmr.msra.gmra.mxu1 %vm105_vm8, %v4695_v1  ;;  %6305 = vmatprep.subr.mxu1 %v6581_v0 }
0x40e3   :  { %6306 = vmatpush3.msra.mxu1 %v7412_v10  ;;  %6313 = vmatprep.mubr.msk.f32.mxu1 %vm6582_vm0, %v6581_v0 }
0x40e4   :  { %6307 = vmatprep.subr.mxu1 %v6581_v0 }
0x40e5   :  { %6308 = vmatpush3.msra.mxu1 %v7418_v33 }
0x40e6   :  { %6309 = vmatprep.subr.mxu1 %v6581_v0 }
0x40e7   :  { %6310 = vmatpush3.msra.mxu1 %v7422_v59 }
0x40e8   :  { %6311 = vmatprep.subr.mxu1 %v6581_v0 }
0x40e9   :  { %6312 = vmatpush3.msra.mxu1 %v7426_v34 }
0x419a   :  { %v7504_v9 = vpop.f32.mrf.mxu0  ;;  %v4847_v22 = vpop.f32.mrf.mxu1 }
0x419b   :  { %v4852_v8 = vrot.slane %v4847_v22, 1  ;;  %v7576_v27 = vadd.f32 %v7504_v9, %v7536_v29 }
0x419c   :  { %v6255_v49 = vpop.f32.mrf.mxu0  ;;  %v6266_v31 = vpop.f32.mrf.mxu1 }
0x419d   :  { %v4854_v10 = vadd.f32 %v4852_v8, %v6850_v53  ;;  %v4768_v1 = vsel %vm78_vm1, %v7576_v27, -inf }
0x419f   :  { %v4857_v33 = vadd.f32 %v4855_v23, %v4854_v10 }
0x41a1   :  { %v4859_v3 = vsel %vm4858_vm11, %v4857_v33, -inf }
0x41a2   :  { %v5091_v7 = vpop.f32.mrf.mxu1  ;;  %4860 = vmax.xlane.f32.xlu1 %v4859_v3 }
0x41a4   :  { %v6293_v59 = vpop.f32.mrf.mxu1 }
0x422b   :  { %v4861_v51 = vpop.xlane.xlu1 %4860 }
0x422c   :  { %v4862_v21 = vsub.f32 %v4857_v33, %v4861_v51 }
0x422e   :  { %v4863_v56 = vmul.f32 1.442695, %v4862_v21 }
0x4230   :  { %6445 = vpow2.f32 %v4863_v56 }
0x423d   :  { %v6446_v34 = vpop.eup %6445 }
0x423e   :  { %v4865_v17 = vsel %vm4858_vm11, %v6446_v34, 0.0 }
0x423f   :  { %4866 = vadd.xlane.f32.xlu0 %v4865_v17 }
0x42c8   :  { %v4867_v19 = vpop.xlane.xlu0 %4866 }
0x42c9   :  { %6447 = vrcp.f32 %v4867_v19 }
0x42d6   :  { %v6448_v18 = vpop.eup %6447 }
0x42d7   :  { %v4869_v35 = vmul.f32 %v6448_v18, %v6446_v34 }
0x42d9   :  { %v4871_v57 = vrot.slane %v4869_v35, 7 }
0x42db   :  { %6270 = vmatmul.mubr.msk.f32.vlgmr.msra.gmra.mxu0 %vm1359_vm10, %v4871_v57 }
0x42dc   :  { %6273 = vmatpush3.msra.mxu0 %v7331_v14  ;;  %6280 = vmatprep.mubr.msk.f32.mxu0 %vm6582_vm0, %v6581_v0 }
0x42dd   :  { %6274 = vmatprep.subr.mxu0 %v6581_v0 }
0x42de   :  { %6275 = vmatpush3.msra.mxu0 %v7337_v15 }
0x42df   :  { %6276 = vmatprep.subr.mxu0 %v6581_v0 }
0x42e0   :  { %6277 = vmatpush3.msra.mxu0 %v7341_v24 }
0x42e1   :  { %6278 = vmatprep.subr.mxu0 %v6581_v0 }
0x42e2   :  { %6279 = vmatpush3.msra.mxu0 %v7345_v4  ;;  %v5021_v4 = vrot.slane %v7368_v42, 1 }
0x42e3   :  { %6294 = vmatprep.subr.mxu0 %v6581_v0 }
0x439b   :  { %v4940_v53 = vpop.f32.mrf.mxu0 }
0x439c   :  { %6281 = vmatmul.mubr.msk.f32.vlgmr.msra.gmra.mxu0 %vm105_vm8, %v4940_v53 }
0x439d   :  { %v6271_v14 = vpop.f32.mrf.mxu0  ;;  %6295 = vmatpush3.msra.mxu0 %v7350_v45  ;;  %6302 = vmatprep.mubr.msk.f32.mxu0 %vm6582_vm0, %v6581_v0 }
0x439e   :  { %6296 = vmatprep.subr.mxu0 %v6581_v0 }
0x439f   :  { %6297 = vmatpush3.msra.mxu0 %v7356_v28 }
0x43a0   :  { %6298 = vmatprep.subr.mxu0 %v6581_v0 }
0x43a1   :  { %6299 = vmatpush3.msra.mxu0 %v7360_v47 }
0x43a2   :  { %6300 = vmatprep.subr.mxu0 %v6581_v0 }
0x43a3   :  { %6301 = vmatpush3.msra.mxu0 %v7364_v40 }
0x445c   :  { %v5013_v15 = vpop.f32.mrf.mxu0 }
0x445d   :  { %v5018_v24 = vrot.slane %v5013_v15, 1 }
0x445e   :  { %v6282_v45 = vpop.f32.mrf.mxu0 }
0x445f   :  { %v5020_v25 = vadd.f32 %v5018_v24, %v6888_v16 }
0x4461   :  { %v5023_v58 = vadd.f32 %v5021_v4, %v5020_v25 }
0x4463   :  { %v5024_v2 = vmax.f32 %v5023_v58, 0.0 }
0x4465   :  { %v5096_v26 = vrot.slane %v5024_v2, 7 }
0x4467   :  { %6303 = vmatmul.mubr.msk.f32.vlgmr.msra.gmra.mxu0 %vm105_vm8, %v5096_v26 }
0x4527   :  { %v5165_v28 = vpop.f32.mrf.mxu0 }
0x4528   :  { %v5166_v60 = vadd.f32 %v5165_v28, %v5091_v7 }
0x4529   :  { %v6304_v11 = vpop.f32.mrf.mxu0 }
0x452a   :  { %v5169_v47 = vadd.f32 %v7384_v36, %v5166_v60  ;;  %v7540_v36 = vadd.f32 %v7081_v5, %v7536_v29  ;;  %v4266_v5 = vsel %vm78_vm1, %v7550_v6, -inf }
0x452c   :  { %5177 = vrot.lane.b32.xlu0 %v5169_v47, %s6583_s13  ;;  %v5442_v0 = vmul.f32 -1.442695, %v5169_v47  ;;  %v2258_v48 = vsel %vm78_vm1, %v7540_v36, -inf }
0x452e   :  { %6449 = vpow2.f32 %v5442_v0 }
0x453b   :  { %v6450_v40 = vpop.eup %6449 }
0x453c   :  { %v5173_v32 = vadd.f32 1.0, %v6450_v40 }
0x453e   :  { %6451 = vrcp.f32 %v5173_v32 }
0x454b   :  { %v6452_v42 = vpop.eup %6451 }
0x454c   :  { %v5187_v30 = vsub.f32 1.0, %v6452_v42  ;;  %v5193_v20 = vmul.f32 %v6452_v42, %v7474_v63  ;;  %v1754_v63 = vsel %vm78_vm1, %v7564_v61, -inf }
0x459e   :  { %v5178_v38 = vpop.permute.xlu0 %5177 }
0x459f   :  { %v5180_v16 = vmul.f32 %v6452_v42, %v5178_v38 }
0x45a1   :  { %5182 = vrot.lane.b32.xlu1 %v5180_v16, %s6584_s14 }
0x4613   :  { %v5183_v46 = vpop.permute.xlu1 %5182 }
0x4614   :  { %v5185_v13 = vadd.f32 %v5183_v46, %v5169_v47 }
0x4616   :  { %6453 = vtanh.f32 %v5185_v13 }
0x4623   :  { %v6454_v39 = vpop.eup %6453 }
0x4624   :  { %5189 = vrot.lane.b32.xlu1 %v6454_v39, %s6585_s15 }
0x4648   :  { %2259 = vmax.xlane.f32.xlu1 %v2258_v48 }
0x464c   :  { %3263 = vmax.xlane.f32.xlu1 %v3262_v52 }
0x4650   :  { %4267 = vmax.xlane.f32.xlu1 %v4266_v5 }
0x4696   :  { %v5190_v54 = vpop.permute.xlu1 %5189 }
0x4697   :  { %v5192_v55 = vmul.f32 %v5190_v54, %v5187_v30 }
0x4699   :  { %v5194_v43 = vadd.f32 %v5193_v20, %v5192_v55 }
0x469b   :  { %5196 = vrot.lane.b32.xlu0 %v5194_v43, %s6585_s15 }
0x46ba   :  { %2761 = vmax.xlane.f32.xlu0 %v2760_v44 }
0x46be   :  { %1755 = vmax.xlane.f32.xlu0 %v1754_v63 }
0x46c2   :  { %3765 = vmax.xlane.f32.xlu0 %v3764_v50 }
0x46c6   :  { %4769 = vmax.xlane.f32.xlu0 %v4768_v1 }
0x46d1   :  { %v7582_v22 = vpop.xlane.xlu1 %2259 }
0x46d2   :  { %v2261_v12 = vsub.f32 %v7540_v36, %v7582_v22 }
0x46d4   :  { %v2262_v8 = vmul.f32 1.442695, %v2261_v12 }
0x46d5   :  { %v3264_v14 = vpop.xlane.xlu1 %3263 }
0x46d6   :  { %6455 = vpow2.f32 %v2262_v8  ;;  %v3265_v24 = vsub.f32 %v7544_v41, %v3264_v14 }
0x46d8   :  { %v3266_v25 = vmul.f32 1.442695, %v3265_v24 }
0x46d9   :  { %v7608_v45 = vpop.xlane.xlu1 %4267 }
0x46da   :  { %v4269_v58 = vsub.f32 %v7550_v6, %v7608_v45 }
0x46dc   :  { %v4270_v2 = vmul.f32 1.442695, %v4269_v58 }
0x46e3   :  { %v6456_v23 = vpop.eup %6455 }
0x46e4   :  { %v2264_v49 = vsel %vm78_vm1, %v6456_v23, 0.0 }
0x46e5   :  { %2265 = vadd.xlane.f32.xlu0 %v2264_v49 }
0x470d   :  { %v5197_v9 = vpop.permute.xlu0 %5196 }
0x470e   :  { %6314 = vmatmul.mubr.msk.f32.vlgmr.msra.gmra.mxu1 %vm105_vm8, %v5197_v9 }
0x4743   :  { %v7588_v31 = vpop.xlane.xlu0 %2761 }
0x4744   :  { %v2763_v15 = vsub.f32 %v7560_v37, %v7588_v31 }
0x4746   :  { %v2764_v4 = vmul.f32 1.442695, %v2763_v15 }
0x4747   :  { %v7590_v10 = vpop.xlane.xlu0 %1755 }
0x4748   :  { %v1757_v33 = vsub.f32 %v7564_v61, %v7590_v10 }
0x474a   :  { %v1758_v3 = vmul.f32 1.442695, %v1757_v33 }
0x474b   :  { %v7594_v7 = vpop.xlane.xlu0 %3765 }
0x474c   :  { %6457 = vpow2.f32 %v1758_v3  ;;  %v3767_v59 = vsub.f32 %v7570_v62, %v7594_v7 }
0x474e   :  { %v3768_v51 = vmul.f32 1.442695, %v3767_v59 }
0x474f   :  { %v7598_v21 = vpop.xlane.xlu0 %4769 }
0x4750   :  { %6459 = vpow2.f32 %v3768_v51  ;;  %v4771_v56 = vsub.f32 %v7576_v27, %v7598_v21 }
0x4752   :  { %v4772_v34 = vmul.f32 1.442695, %v4771_v56 }
0x4754   :  { %6461 = vpow2.f32 %v4772_v34 }
0x4755   :  { %6463 = vpow2.f32 %v2764_v4 }
0x4756   :  { %6465 = vpow2.f32 %v3266_v25 }
0x4757   :  { %6467 = vpow2.f32 %v4270_v2 }
0x4759   :  { %v6458_v17 = vpop.eup %6457 }
0x475a   :  { %v1760_v19 = vsel %vm78_vm1, %v6458_v17, 0.0 }
0x475b   :  { %1761 = vadd.xlane.f32.xlu0 %v1760_v19 }
0x475d   :  { %v6460_v18 = vpop.eup %6459 }
0x475e   :  { %v3770_v35 = vsel %vm78_vm1, %v6460_v18, 0.0 }
0x475f   :  { %3771 = vadd.xlane.f32.xlu0 %v3770_v35 }
0x4761   :  { %v6462_v57 = vpop.eup %6461 }
0x4762   :  { %v4774_v53 = vsel %vm78_vm1, %v6462_v57, 0.0  ;;  %v6464_v47 = vpop.eup %6463 }
0x4763   :  { %4775 = vadd.xlane.f32.xlu0 %v4774_v53  ;;  %v2766_v0 = vsel %vm78_vm1, %v6464_v47, 0.0  ;;  %v6466_v40 = vpop.eup %6465 }
0x4764   :  { %v3268_v32 = vsel %vm78_vm1, %v6466_v40, 0.0  ;;  %v6468_v42 = vpop.eup %6467 }
0x4765   :  { %v4272_v38 = vsel %vm78_vm1, %v6468_v42, 0.0 }
0x476e   :  { %v2266_v52 = vpop.xlane.xlu0 %2265 }
0x47ce   :  { %v5266_v26 = vpop.f32.mrf.mxu1 }
0x47cf   :  { %v7613_v28 = vadd.f32 %v5266_v26, %v7536_v29 }
0x47d0   :  { %v6315_v60 = vpop.f32.mrf.mxu1 }
0x47d1   :  { %v5270_v11 = vsel %vm78_vm1, %v7613_v28, -inf }
0x47d2   :  { %5271 = vmax.xlane.f32.xlu1 %v5270_v11 }
0x47d6   :  { %2767 = vadd.xlane.f32.xlu1 %v2766_v0 }
0x47da   :  { %3269 = vadd.xlane.f32.xlu1 %v3268_v32 }
0x47de   :  { %4273 = vadd.xlane.f32.xlu1 %v4272_v38 }
0x47e4   :  { %v1762_v5 = vpop.xlane.xlu0 %1761 }
0x47e8   :  { %v3772_v54 = vpop.xlane.xlu0 %3771 }
0x47ec   :  { %v4776_v55 = vpop.xlane.xlu0 %4775 }
0x485b   :  { %v5272_v16 = vpop.xlane.xlu1 %5271 }
0x485c   :  { %v5273_v46 = vsub.f32 %v7613_v28, %v5272_v16 }
0x485e   :  { %v5274_v13 = vmul.f32 1.442695, %v5273_v46 }
0x485f   :  { %v2768_v48 = vpop.xlane.xlu1 %2767 }
0x4860   :  { %6469 = vpow2.f32 %v5274_v13 }
0x4861   :  { %6471 = vlog2.f32 %v2266_v52 }
0x4862   :  { %6473 = vlog2.f32 %v2768_v48 }
0x4863   :  { %v3270_v30 = vpop.xlane.xlu1 %3269 }
0x4864   :  { %6475 = vlog2.f32 %v3270_v30 }
0x4865   :  { %6477 = vlog2.f32 %v1762_v5 }
0x4867   :  { %v4274_v20 = vpop.xlane.xlu1 %4273 }
0x4868   :  { %6479 = vlog2.f32 %v4274_v20 }
0x4869   :  { %6481 = vlog2.f32 %v3772_v54 }
0x486a   :  { %6483 = vlog2.f32 %v4776_v55 }
0x486d   :  { %v6470_v39 = vpop.eup %6469 }
0x486e   :  { %v5276_v29 = vsel %vm78_vm1, %v6470_v39, 0.0  ;;  %v6472_v43 = vpop.eup %6471 }
0x486f   :  { %5277 = vadd.xlane.f32.xlu1 %v5276_v29  ;;  %v6474_v44 = vpop.eup %6473  ;;  %v2268_v12 = vmul.f32 0.6931472, %v6472_v43 }
0x4870   :  { %v2770_v1 = vmul.f32 0.6931472, %v6474_v44 }
0x4871   :  { %v6476_v63 = vpop.eup %6475  ;;  %v2269_v59 = vadd.f32 %v2268_v12, %v7582_v22 }
0x4872   :  { %v6478_v50 = vpop.eup %6477  ;;  %v3272_v8 = vmul.f32 0.6931472, %v6476_v63  ;;  %v2771_v3 = vadd.f32 %v2770_v1, %v7588_v31 }
0x4873   :  { %v1764_v33 = vmul.f32 0.6931472, %v6478_v50  ;;  %v2270_v35 = vsub.f32 %v7540_v36, %v2269_v59 }
0x4874   :  { %v3273_v51 = vadd.f32 %v3272_v8, %v3264_v14  ;;  %v2772_v18 = vsub.f32 %v7560_v37, %v2771_v3 }
0x4875   :  { %v6480_v23 = vpop.eup %6479  ;;  %v1765_v19 = vadd.f32 %v1764_v33, %v7590_v10  ;;  %v5284_v14 = vrot.slane %v2270_v35, 7 }
0x4876   :  { %v6482_v9 = vpop.eup %6481  ;;  %v4276_v56 = vmul.f32 0.6931472, %v6480_v23  ;;  %v3274_v57 = vsub.f32 %v7544_v41, %v3273_v51  ;;  %v5287_v22 = vrot.slane %v2772_v18, 6 }
0x4877   :  { %v3774_v34 = vmul.f32 0.6931472, %v6482_v9  ;;  %v6484_v17 = vpop.eup %6483  ;;  %v1766_v31 = vsub.f32 %v7564_v61, %v1765_v19 }
0x4878   :  { %v4277_v53 = vadd.f32 %v4276_v56, %v7608_v45  ;;  %v4778_v24 = vmul.f32 0.6931472, %v6484_v17  ;;  %v5290_v4 = vrot.slane %v3274_v57, 5 }
0x4879   :  { %v3775_v15 = vadd.f32 %v3774_v34, %v7594_v7  ;;  %v5304_v36 = vsel %vm78_vm1, %v1766_v31, %v5284_v14 }
0x487a   :  { %v4278_v25 = vsub.f32 %v7550_v6, %v4277_v53  ;;  %v4779_v37 = vadd.f32 %v4778_v24, %v7598_v21  ;;  %v5305_v41 = vsel %vm80_vm2, %v5304_v36, %v5287_v22 }
0x487b   :  { %v3776_v10 = vsub.f32 %v7570_v62, %v3775_v15  ;;  %v5306_v7 = vsel %vm82_vm3, %v5305_v41, %v5290_v4 }
0x487c   :  { %v5296_v45 = vrot.slane %v4278_v25, 3  ;;  %v4780_v61 = vsub.f32 %v7576_v27, %v4779_v37 }
0x487d   :  { %v5293_v26 = vrot.slane %v3776_v10, 4 }
0x487e   :  { %v5299_v21 = vrot.slane %v4780_v61, 2 }
0x487f   :  { %v5307_v11 = vsel %vm84_vm4, %v5306_v7, %v5293_v26 }
0x4880   :  { %v5308_v62 = vsel %vm86_vm5, %v5307_v11, %v5296_v45 }
0x4881   :  { %v5309_v0 = vsel %vm88_vm6, %v5308_v62, %v5299_v21 }
0x48f8   :  { %v5278_v49 = vpop.xlane.xlu1 %5277 }
0x48f9   :  { %6485 = vlog2.f32 %v5278_v49 }
0x4906   :  { %v6486_v58 = vpop.eup %6485 }
0x4907   :  { %v5280_v2 = vmul.f32 0.6931472, %v6486_v58 }
0x4909   :  { %v5281_v60 = vadd.f32 %v5280_v2, %v5272_v16 }
0x490b   :  { %v5282_v6 = vsub.f32 %v7613_v28, %v5281_v60 }
0x490d   :  { %v5302_v47 = vrot.slane %v5282_v6, 1 }
0x490f   :  { %v5310_v40 = vsel %vm90_vm7, %v5309_v0, %v5302_v47 }
0x4910   :  { %5311 = vst [vmem:[#allocation8] sm:$0xff] %v5310_v40 }
0x4911   :  { %6561 = shalt.err (!%p6558_p0)
}
0x4912   :  { %5321 = dma.vmem_to_hbm [thread:$0]  %s5319_s2, 128, %s7648_s3, [#allocation7]  }
0x4913   :  { %6574 = dma.done.wait [#allocation7], 128  }
0x4914   :  { %6575 = vsyncadd [#allocation7], 4294967168 }
0x4915   :  { %5325 = vsyncpa [#allocation6], 1 }
0x4916   :  { %5326 = vsyncpa [#allocation7], 1 }

</bundles_post_ra>
